<compile_context>
chip_gen: v5e
topology: v5e:2x2
jax: 0.10.0
libtpu: 0.0.40
codegen_flags: <defaults>
</compile_context>

<pallas_src>
import functools
import math

import numpy as np
import jax
import jax.numpy as jnp
from jax.experimental import pallas as pl
from jax.experimental.pallas import tpu as pltpu

# ---------------------------------------------------------------------------
# Model configuration (small stand-in for the EVA ViT in the module)
# ---------------------------------------------------------------------------
IMG_IN = 16            # input spatial size (small MedMNIST-like image)
IMG_RS = 28            # bicubic resize target (stand-in for 224)
PATCH = 14             # patch size (1, 14, 14) -> 2x2 = 4 patches
N_PATCHES = (IMG_RS // PATCH) ** 2
EMBED = 32             # encoder.embed_dim
HEADS = 4
HEAD_DIM = EMBED // HEADS
DEPTH = 2
MLP_HIDDEN = 4 * EMBED
N_CLASSES = 8
NC_PAD = 128           # lane-dense padded classifier width (sliced back to N_CLASSES)
LN_EPS = 1e-6
NORM_MEAN = 0.0        # transforms.Normalize(mean=[0.0], std=[1.0])
NORM_STD = 1.0


# ---------------------------------------------------------------------------
# Bicubic interpolation matrices (PyTorch semantics: a=-0.75, align_corners=False)
# ---------------------------------------------------------------------------
def _cubic_weight(t, a=-0.75):
    t = abs(t)
    if t <= 1.0:
        return (a + 2.0) * t ** 3 - (a + 3.0) * t ** 2 + 1.0
    if t < 2.0:
        return a * t ** 3 - 5.0 * a * t ** 2 + 8.0 * a * t - 4.0 * a
    return 0.0


def bicubic_matrix(n_in, n_out):
    m = np.zeros((n_out, n_in), np.float32)
    scale = n_in / n_out
    for i in range(n_out):
        src = (i + 0.5) * scale - 0.5
        f = math.floor(src)
        for k in range(-1, 3):
            idx = min(max(f + k, 0), n_in - 1)   # border replicate
            m[i, idx] += _cubic_weight(src - (f + k))
    return m


def resize_patchify_matrix(hin, win, hout, wout, ph, pw):
    """Host matrix A (hin*win, nP*ph*pw): x_flat @ A == patchify(bicubic_resize(x))."""
    mh = bicubic_matrix(hin, hout)                 # (hout, hin)
    mw = bicubic_matrix(win, wout)                 # (wout, win)
    # kron: resized_flat[i*wout+j] = sum_{p,q} mh[i,p]*mw[j,q]*x_flat[p*win+q]
    a_resize = np.kron(mh, mw).T.astype(np.float32)     # (hin*win, hout*wout)
    # patchify = column permutation (patch index (pi,pj) row-major, within-patch (r,s))
    cols = []
    for pi in range(hout // ph):
        for pj in range(wout // pw):
            for r in range(ph):
                for s in range(pw):
                    cols.append((pi * ph + r) * wout + (pj * pw + s))
    return a_resize[:, np.asarray(cols)]           # (hin*win, nP*ph*pw)


# ---------------------------------------------------------------------------
# Fused kernel: normalize+resize+patchify+patch-embed, all transformer blocks,
# final LN and the (lane-padded) classifier head -- for BM batch elements at once.
# ---------------------------------------------------------------------------
def _layernorm(x, g, b, eps):
    mu = jnp.mean(x, axis=-1, keepdims=True)
    var = jnp.mean(jnp.square(x - mu), axis=-1, keepdims=True)
    return (x - mu) * jax.lax.rsqrt(var + eps) * g + b


def _fused_eva_kernel(x_ref, pe_w_ref, tok_bias_ref,
                      ln1_g_ref, ln1_b_ref, qkv_w_ref, qkv_b_ref,
                      proj_w_ref, proj_b_ref, ln2_g_ref, ln2_b_ref,
                      fc1_w_ref, fc1_b_ref, fc2_w_ref, fc2_b_ref,
                      lnf_g_ref, lnf_b_ref, fc_w_ref, fc_b_ref,
                      logits_ref, x_scr,
                      *, depth, heads, head_dim, embed, n_patches, bm, eps):
    t = n_patches + 1
    scale = 1.0 / math.sqrt(head_dim)

    def bmm(a3, w2):
        # Batched (over BM or H*BM) matmul against a shared weight; one dot_general.
        wb = jnp.broadcast_to(w2, (a3.shape[0],) + w2.shape)
        return jnp.einsum('bte,bek->btk', a3, wb, preferred_element_type=jnp.float32)

    # ---- fused normalize + bicubic resize + patchify + patch-embed (one matmul) ----
    tok = jnp.dot(x_ref[...], pe_w_ref[...],
                  preferred_element_type=jnp.float32)          # (BM, nP*E)

    # ---- token assembly: one-time lane->token-axis shuffle through VMEM scratch ----
    # (cls token, positional embedding, patch bias and the normalize offset are all
    #  pre-folded into tok_bias on the host/wrapper side)
    x_scr[:, 0, :] = jnp.zeros((bm, embed), jnp.float32)
    for pidx in range(n_patches):
        x_scr[:, 1 + pidx, :] = tok[:, pidx * embed:(pidx + 1) * embed]
    x = x_scr[...] + tok_bias_ref[...]                          # (BM, T, E)

    for d in range(depth):                                      # static depth
        # ---- multi-head self-attention (all heads & batch in one batched dot) ----
        h1 = _layernorm(x, ln1_g_ref[d], ln1_b_ref[d], eps)
        qkv = bmm(h1, qkv_w_ref[d]) + qkv_b_ref[d]              # (BM, T, 3E)
        qs, ks, vs = [], [], []
        for hh in range(heads):                                 # static head slicing only
            lo = hh * head_dim
            qs.append(qkv[:, :, lo:lo + head_dim])
            ks.append(qkv[:, :, embed + lo:embed + lo + head_dim])
            vs.append(qkv[:, :, 2 * embed + lo:2 * embed + lo + head_dim])
        q = jnp.stack(qs, axis=0).reshape(heads * bm, t, head_dim)
        k = jnp.stack(ks, axis=0).reshape(heads * bm, t, head_dim)
        v = jnp.stack(vs, axis=0).reshape(heads * bm, t, head_dim)

        s = jnp.einsum('btd,bsd->bts', q, k,
                       preferred_element_type=jnp.float32) * scale   # (H*BM, T, T)
        s = s - jnp.max(s, axis=-1, keepdims=True)
        p = jnp.exp(s)
        p = p * pl.reciprocal(jnp.sum(p, axis=-1, keepdims=True), approx=True)
        o = jnp.einsum('bts,bsd->btd', p, v,
                       preferred_element_type=jnp.float32)            # (H*BM, T, Dh)
        o = o.reshape(heads, bm, t, head_dim)
        attn = jnp.concatenate([o[hh] for hh in range(heads)], axis=-1)  # (BM, T, E)

        x = x + bmm(attn, proj_w_ref[d]) + proj_b_ref[d]

        # ---- MLP ----
        h2 = _layernorm(x, ln2_g_ref[d], ln2_b_ref[d], eps)
        mid = jax.nn.gelu(bmm(h2, fc1_w_ref[d]) + fc1_b_ref[d], approximate=True)
        x = x + bmm(mid, fc2_w_ref[d]) + fc2_b_ref[d]

    # ---- final LN, CLS token, lane-dense classifier head ----
    xf = _layernorm(x, lnf_g_ref[...], lnf_b_ref[...], eps)
    cls3 = xf[:, 0:1, :]                                        # (BM, 1, E)
    logits_ref[...] = bmm(cls3, fc_w_ref[...]) + fc_b_ref[...]  # (BM, 1, NC_PAD)


_WEIGHT_NAMES = ["pe_w", "tok_bias",
                 "ln1_g", "ln1_b", "qkv_w", "qkv_b", "proj_w", "proj_b",
                 "ln2_g", "ln2_b", "fc1_w", "fc1_b", "fc2_w", "fc2_b",
                 "lnf_g", "lnf_b", "fc_w", "fc_b"]


def pallas_eva_forward(x2d, params, bm):
    # x2d: (B, Hin*Win) flat raw pixels (B a multiple of bm) -> (B, 1, NC_PAD) logits.
    b, hw = x2d.shape
    weights = [params[k] for k in _WEIGHT_NAMES]

    def full(a):
        nd = a.ndim
        return pl.BlockSpec(a.shape, lambda i, _nd=nd: (0,) * _nd)

    return pl.pallas_call(
        functools.partial(_fused_eva_kernel, depth=DEPTH, heads=HEADS,
                          head_dim=HEAD_DIM, embed=EMBED, n_patches=N_PATCHES,
                          bm=bm, eps=LN_EPS),
        out_shape=jax.ShapeDtypeStruct((b, 1, NC_PAD), jnp.float32),
        grid=(b // bm,),
        in_specs=[pl.BlockSpec((bm, hw), lambda i: (i, 0))] + [full(w) for w in weights],
        out_specs=pl.BlockSpec((bm, 1, NC_PAD), lambda i: (i, 0, 0)),
        scratch_shapes=[pltpu.VMEM((bm, N_PATCHES + 1, EMBED), jnp.float32)],
        compiler_params=pltpu.CompilerParams(dimension_semantics=("parallel",)),
    )(x2d, *weights)


# ---------------------------------------------------------------------------
# Parameter initialization (deterministic, synthetic) + inference-time folding
# of Normalize / bicubic resize / patchify / patch-embed into one matrix.
# ---------------------------------------------------------------------------
def init_params(key, mean=NORM_MEAN, std=NORM_STD):
    def nrm(k, shape, s=0.02):
        return jax.random.normal(k, shape, jnp.float32) * s

    keys = iter(jax.random.split(key, 16))
    patch_dim = 1 * 1 * PATCH * PATCH                  # (C=1, pd=1, ph, pw)
    t = N_PATCHES + 1
    hw = IMG_IN * IMG_IN

    patch_w = nrm(next(keys), (patch_dim, EMBED))
    patch_b = jnp.zeros((EMBED,), jnp.float32)
    cls_token = nrm(next(keys), (1, EMBED))
    pos_embed = nrm(next(keys), (t, EMBED))

    # ---- fold Normalize + bicubic resize + patchify + patch-embed ----
    a_pp = jnp.asarray(resize_patchify_matrix(IMG_IN, IMG_IN, IMG_RS, IMG_RS,
                                              PATCH, PATCH))           # (hw, nP*pd)
    w_full = jnp.einsum('ipd,de->ipe',
                        a_pp.reshape(hw, N_PATCHES, patch_dim),
                        patch_w).reshape(hw, N_PATCHES * EMBED)        # (hw, nP*E)
    inv_std = 1.0 / float(std)
    pe_w = inv_std * w_full
    pe_bias_norm = (-float(mean) * inv_std) * jnp.sum(w_full, axis=0)  # (nP*E,)

    # token bias: row 0 = cls + pos[0]; row 1+p = pos[1+p] + patch_b + normalize offset
    tok_bias = jnp.concatenate(
        [cls_token + pos_embed[0:1],
         pos_embed[1:] + patch_b[None, :] + pe_bias_norm.reshape(N_PATCHES, EMBED)],
        axis=0)                                                        # (T, E)

    # ---- lane-dense classifier head (zero-padded to 128 output lanes) ----
    fc_w_raw = nrm(next(keys), (EMBED, N_CLASSES))
    fc_b_raw = jnp.zeros((N_CLASSES,), jnp.float32)
    fc_w = jnp.pad(fc_w_raw, ((0, 0), (0, NC_PAD - N_CLASSES)))
    fc_b = jnp.pad(fc_b_raw, (0, NC_PAD - N_CLASSES)).reshape(1, NC_PAD)

    params = {
        "pe_w": pe_w,
        "tok_bias": tok_bias,
        "ln1_g": jnp.ones((DEPTH, 1, EMBED), jnp.float32),
        "ln1_b": jnp.zeros((DEPTH, 1, EMBED), jnp.float32),
        "qkv_w": nrm(next(keys), (DEPTH, EMBED, 3 * EMBED)),
        "qkv_b": jnp.zeros((DEPTH, 1, 3 * EMBED), jnp.float32),
        "proj_w": nrm(next(keys), (DEPTH, EMBED, EMBED)),
        "proj_b": jnp.zeros((DEPTH, 1, EMBED), jnp.float32),
        "ln2_g": jnp.ones((DEPTH, 1, EMBED), jnp.float32),
        "ln2_b": jnp.zeros((DEPTH, 1, EMBED), jnp.float32),
        "fc1_w": nrm(next(keys), (DEPTH, EMBED, MLP_HIDDEN)),
        "fc1_b": jnp.zeros((DEPTH, 1, MLP_HIDDEN), jnp.float32),
        "fc2_w": nrm(next(keys), (DEPTH, MLP_HIDDEN, EMBED)),
        "fc2_b": jnp.zeros((DEPTH, 1, EMBED), jnp.float32),
        "lnf_g": jnp.ones((1, EMBED), jnp.float32),
        "lnf_b": jnp.zeros((1, EMBED), jnp.float32),
        "fc_w": fc_w,
        "fc_b": fc_b,
    }
    return params


# ---------------------------------------------------------------------------
# Forward pass (thin glue: just a flatten, the single fused kernel, and a slice)
# ---------------------------------------------------------------------------
def eva_classifier_forward(x, params):
    # x: (B, 1, IMG_IN, IMG_IN) NCHW, single channel (Normalize(mean=[0.], std=[1.])).
    b, c, h, w = x.shape
    x2d = x.reshape(b, c * h * w)                      # free reshape, no transpose

    bm = b if b <= 8 else 8                            # batch chunk per grid step
    pad = (-b) % bm
    if pad:
        x2d = jnp.concatenate([x2d, jnp.zeros((pad, x2d.shape[1]), x2d.dtype)], axis=0)

    logits_padded = pallas_eva_forward(x2d, params, bm)   # (B+pad, 1, NC_PAD)
    return logits_padded[:b, 0, :N_CLASSES]


# ---------------------------------------------------------------------------
if __name__ == "__main__":
    key = jax.random.PRNGKey(0)
    k_in, k_par = jax.random.split(key)
    x = jax.random.normal(k_in, (2, 1, IMG_IN, IMG_IN), dtype=jnp.float32)  # NCHW
    params = init_params(k_par)

    fwd = jax.jit(eva_classifier_forward)
    logits = jax.block_until_ready(fwd(x, params))
    assert logits.shape == (2, N_CLASSES)
    assert bool(jnp.all(jnp.isfinite(logits)))
    print("KERNEL_OK")
</pallas_src>

<mosaic_0001>
module attributes {stable_mosaic.version = 11 : i64} {
  func.func @_fused_eva_kernel(%arg0: i32, %arg1: memref<2x256xf32, #tpu.memory_space<vmem>>, %arg2: memref<256x128xf32, #tpu.memory_space<vmem>>, %arg3: memref<5x32xf32, #tpu.memory_space<vmem>>, %arg4: memref<2x1x32xf32, #tpu.memory_space<vmem>>, %arg5: memref<2x1x32xf32, #tpu.memory_space<vmem>>, %arg6: memref<2x32x96xf32, #tpu.memory_space<vmem>>, %arg7: memref<2x1x96xf32, #tpu.memory_space<vmem>>, %arg8: memref<2x32x32xf32, #tpu.memory_space<vmem>>, %arg9: memref<2x1x32xf32, #tpu.memory_space<vmem>>, %arg10: memref<2x1x32xf32, #tpu.memory_space<vmem>>, %arg11: memref<2x1x32xf32, #tpu.memory_space<vmem>>, %arg12: memref<2x32x128xf32, #tpu.memory_space<vmem>>, %arg13: memref<2x1x128xf32, #tpu.memory_space<vmem>>, %arg14: memref<2x128x32xf32, #tpu.memory_space<vmem>>, %arg15: memref<2x1x32xf32, #tpu.memory_space<vmem>>, %arg16: memref<1x32xf32, #tpu.memory_space<vmem>>, %arg17: memref<1x32xf32, #tpu.memory_space<vmem>>, %arg18: memref<32x128xf32, #tpu.memory_space<vmem>>, %arg19: memref<1x128xf32, #tpu.memory_space<vmem>>, %arg20: memref<2x1x128xf32, #tpu.memory_space<vmem>>, %arg21: memref<2x5x32xf32, #tpu.memory_space<vmem>>) attributes {dimension_semantics = [#tpu.dimension_semantics<parallel>], iteration_bounds = array<i64: 1>, scalar_prefetch = 0 : i64, scratch_operands = 1 : i64, tpu.core_type = #tpu.core_type<tc>, window_params = [{transform_indices = @transform_0, window_bounds = array<i64: 2, 256>}, {pipeline_mode = #tpu.pipeline_mode<synchronous>, transform_indices = @transform_1, window_bounds = array<i64: 256, 128>}, {pipeline_mode = #tpu.pipeline_mode<synchronous>, transform_indices = @transform_2, window_bounds = array<i64: 5, 32>}, {pipeline_mode = #tpu.pipeline_mode<synchronous>, transform_indices = @transform_3, window_bounds = array<i64: 2, 1, 32>}, {pipeline_mode = #tpu.pipeline_mode<synchronous>, transform_indices = @transform_4, window_bounds = array<i64: 2, 1, 32>}, {pipeline_mode = #tpu.pipeline_mode<synchronous>, transform_indices = @transform_5, window_bounds = array<i64: 2, 32, 96>}, {pipeline_mode = #tpu.pipeline_mode<synchronous>, transform_indices = @transform_6, window_bounds = array<i64: 2, 1, 96>}, {pipeline_mode = #tpu.pipeline_mode<synchronous>, transform_indices = @transform_7, window_bounds = array<i64: 2, 32, 32>}, {pipeline_mode = #tpu.pipeline_mode<synchronous>, transform_indices = @transform_8, window_bounds = array<i64: 2, 1, 32>}, {pipeline_mode = #tpu.pipeline_mode<synchronous>, transform_indices = @transform_9, window_bounds = array<i64: 2, 1, 32>}, {pipeline_mode = #tpu.pipeline_mode<synchronous>, transform_indices = @transform_10, window_bounds = array<i64: 2, 1, 32>}, {pipeline_mode = #tpu.pipeline_mode<synchronous>, transform_indices = @transform_11, window_bounds = array<i64: 2, 32, 128>}, {pipeline_mode = #tpu.pipeline_mode<synchronous>, transform_indices = @transform_12, window_bounds = array<i64: 2, 1, 128>}, {pipeline_mode = #tpu.pipeline_mode<synchronous>, transform_indices = @transform_13, window_bounds = array<i64: 2, 128, 32>}, {pipeline_mode = #tpu.pipeline_mode<synchronous>, transform_indices = @transform_14, window_bounds = array<i64: 2, 1, 32>}, {pipeline_mode = #tpu.pipeline_mode<synchronous>, transform_indices = @transform_15, window_bounds = array<i64: 1, 32>}, {pipeline_mode = #tpu.pipeline_mode<synchronous>, transform_indices = @transform_16, window_bounds = array<i64: 1, 32>}, {pipeline_mode = #tpu.pipeline_mode<synchronous>, transform_indices = @transform_17, window_bounds = array<i64: 32, 128>}, {pipeline_mode = #tpu.pipeline_mode<synchronous>, transform_indices = @transform_18, window_bounds = array<i64: 1, 128>}, {transform_indices = @transform_19, window_bounds = array<i64: 2, 1, 128>}]} {
    %c0 = arith.constant 0 : index
    %c0_0 = arith.constant 0 : index
    %0 = vector.load %arg1[%c0, %c0_0] : memref<2x256xf32, #tpu.memory_space<vmem>>, vector<2x256xf32>
    %c0_1 = arith.constant 0 : index
    %c0_2 = arith.constant 0 : index
    %1 = vector.load %arg2[%c0_1, %c0_2] : memref<256x128xf32, #tpu.memory_space<vmem>>, vector<256x128xf32>
    %cst = arith.constant dense<0.000000e+00> : vector<2x128xf32>
    %2 = tpu.matmul %0, %1, %cst {dimension_numbers = #tpu.dot_dimension_numbers<[1], [0], [0], [1], [0, 0, 1, 1], [], []>} : vector<2x256xf32>, vector<256x128xf32>, vector<2x128xf32> -> vector<2x128xf32>
    %cst_3 = arith.constant 0.000000e+00 : f32
    %3 = vector.broadcast %cst_3 : f32 to vector<2x32xf32>
    %c0_4 = arith.constant 0 : index
    %c0_5 = arith.constant 0 : index
    %c0_6 = arith.constant 0 : index
    %4 = vector.load %arg21[%c0_4, %c0_5, %c0_6] : memref<2x5x32xf32, #tpu.memory_space<vmem>>, vector<2x1x32xf32>
    %5 = vector.shape_cast %4 : vector<2x1x32xf32> to vector<2x32xf32>
    %6 = vector.shape_cast %3 : vector<2x32xf32> to vector<2x1x32xf32>
    tpu.vector_store %arg21[%c0_4, %c0_5, %c0_6], %6 {strides = array<i32>} : memref<2x5x32xf32, #tpu.memory_space<vmem>>, vector<2x1x32xf32>,
    %7 = vector.extract_strided_slice %2 {offsets = [0, 0], sizes = [2, 32], strides = [1, 1]} : vector<2x128xf32> to vector<2x32xf32>
    %c0_7 = arith.constant 0 : index
    %c1 = arith.constant 1 : index
    %c0_8 = arith.constant 0 : index
    %8 = vector.load %arg21[%c0_7, %c1, %c0_8] : memref<2x5x32xf32, #tpu.memory_space<vmem>>, vector<2x1x32xf32>
    %9 = vector.shape_cast %8 : vector<2x1x32xf32> to vector<2x32xf32>
    %10 = vector.shape_cast %7 : vector<2x32xf32> to vector<2x1x32xf32>
    tpu.vector_store %arg21[%c0_7, %c1, %c0_8], %10 {strides = array<i32>} : memref<2x5x32xf32, #tpu.memory_space<vmem>>, vector<2x1x32xf32>,
    %11 = vector.extract_strided_slice %2 {offsets = [0, 32], sizes = [2, 32], strides = [1, 1]} : vector<2x128xf32> to vector<2x32xf32>
    %c0_9 = arith.constant 0 : index
    %c2 = arith.constant 2 : index
    %c0_10 = arith.constant 0 : index
    %12 = vector.load %arg21[%c0_9, %c2, %c0_10] : memref<2x5x32xf32, #tpu.memory_space<vmem>>, vector<2x1x32xf32>
    %13 = vector.shape_cast %12 : vector<2x1x32xf32> to vector<2x32xf32>
    %14 = vector.shape_cast %11 : vector<2x32xf32> to vector<2x1x32xf32>
    tpu.vector_store %arg21[%c0_9, %c2, %c0_10], %14 {strides = array<i32>} : memref<2x5x32xf32, #tpu.memory_space<vmem>>, vector<2x1x32xf32>,
    %15 = vector.extract_strided_slice %2 {offsets = [0, 64], sizes = [2, 32], strides = [1, 1]} : vector<2x128xf32> to vector<2x32xf32>
    %c0_11 = arith.constant 0 : index
    %c3 = arith.constant 3 : index
    %c0_12 = arith.constant 0 : index
    %16 = vector.load %arg21[%c0_11, %c3, %c0_12] : memref<2x5x32xf32, #tpu.memory_space<vmem>>, vector<2x1x32xf32>
    %17 = vector.shape_cast %16 : vector<2x1x32xf32> to vector<2x32xf32>
    %18 = vector.shape_cast %15 : vector<2x32xf32> to vector<2x1x32xf32>
    tpu.vector_store %arg21[%c0_11, %c3, %c0_12], %18 {strides = array<i32>} : memref<2x5x32xf32, #tpu.memory_space<vmem>>, vector<2x1x32xf32>,
    %19 = vector.extract_strided_slice %2 {offsets = [0, 96], sizes = [2, 32], strides = [1, 1]} : vector<2x128xf32> to vector<2x32xf32>
    %c0_13 = arith.constant 0 : index
    %c4 = arith.constant 4 : index
    %c0_14 = arith.constant 0 : index
    %20 = vector.load %arg21[%c0_13, %c4, %c0_14] : memref<2x5x32xf32, #tpu.memory_space<vmem>>, vector<2x1x32xf32>
    %21 = vector.shape_cast %20 : vector<2x1x32xf32> to vector<2x32xf32>
    %22 = vector.shape_cast %19 : vector<2x32xf32> to vector<2x1x32xf32>
    tpu.vector_store %arg21[%c0_13, %c4, %c0_14], %22 {strides = array<i32>} : memref<2x5x32xf32, #tpu.memory_space<vmem>>, vector<2x1x32xf32>,
    %c0_15 = arith.constant 0 : index
    %c0_16 = arith.constant 0 : index
    %c0_17 = arith.constant 0 : index
    %23 = vector.load %arg21[%c0_15, %c0_16, %c0_17] : memref<2x5x32xf32, #tpu.memory_space<vmem>>, vector<2x5x32xf32>
    %c0_18 = arith.constant 0 : index
    %c0_19 = arith.constant 0 : index
    %24 = vector.load %arg3[%c0_18, %c0_19] : memref<5x32xf32, #tpu.memory_space<vmem>>, vector<5x32xf32>
    %25 = vector.shape_cast %24 : vector<5x32xf32> to vector<1x5x32xf32>
    %26 = vector.broadcast %25 : vector<1x5x32xf32> to vector<2x5x32xf32>
    %27 = arith.addf %23, %26 : vector<2x5x32xf32>
    %c0_20 = arith.constant 0 : index
    %c0_21 = arith.constant 0 : index
    %c0_22 = arith.constant 0 : index
    %28 = vector.load %arg4[%c0_20, %c0_21, %c0_22] : memref<2x1x32xf32, #tpu.memory_space<vmem>>, vector<1x1x32xf32>
    %29 = vector.shape_cast %28 : vector<1x1x32xf32> to vector<1x32xf32>
    %c0_23 = arith.constant 0 : index
    %c0_24 = arith.constant 0 : index
    %c0_25 = arith.constant 0 : index
    %30 = vector.load %arg5[%c0_23, %c0_24, %c0_25] : memref<2x1x32xf32, #tpu.memory_space<vmem>>, vector<1x1x32xf32>
    %31 = vector.shape_cast %30 : vector<1x1x32xf32> to vector<1x32xf32>
    %cst_26 = arith.constant dense<0.000000e+00> : vector<2x5xf32>
    %32 = vector.multi_reduction <add>, %27, %cst_26 [2] : vector<2x5x32xf32> to vector<2x5xf32>
    %33 = vector.shape_cast %32 : vector<2x5xf32> to vector<2x5x1xf32>
    %cst_27 = arith.constant 3.200000e+01 : f32
    %34 = vector.broadcast %cst_27 : f32 to vector<2x5x1xf32>
    %35 = arith.divf %33, %34 : vector<2x5x1xf32>
    %36 = vector.broadcast %35 : vector<2x5x1xf32> to vector<2x5x32xf32>
    %37 = arith.subf %27, %36 : vector<2x5x32xf32>
    %38 = arith.mulf %37, %37 : vector<2x5x32xf32>
    %cst_28 = arith.constant dense<0.000000e+00> : vector<2x5xf32>
    %39 = vector.multi_reduction <add>, %38, %cst_28 [2] : vector<2x5x32xf32> to vector<2x5xf32>
    %40 = vector.shape_cast %39 : vector<2x5xf32> to vector<2x5x1xf32>
    %cst_29 = arith.constant 3.200000e+01 : f32
    %41 = vector.broadcast %cst_29 : f32 to vector<2x5x1xf32>
    %42 = arith.divf %40, %41 : vector<2x5x1xf32>
    %43 = vector.broadcast %35 : vector<2x5x1xf32> to vector<2x5x32xf32>
    %44 = arith.subf %27, %43 : vector<2x5x32xf32>
    %cst_30 = arith.constant 9.99999997E-7 : f32
    %45 = vector.broadcast %cst_30 : f32 to vector<2x5x1xf32>
    %46 = arith.addf %42, %45 : vector<2x5x1xf32>
    %47 = math.rsqrt %46 : vector<2x5x1xf32>
    %48 = vector.broadcast %47 : vector<2x5x1xf32> to vector<2x5x32xf32>
    %49 = arith.mulf %44, %48 : vector<2x5x32xf32>
    %50 = vector.shape_cast %29 : vector<1x32xf32> to vector<1x1x32xf32>
    %51 = vector.broadcast %50 : vector<1x1x32xf32> to vector<2x5x32xf32>
    %52 = arith.mulf %49, %51 : vector<2x5x32xf32>
    %53 = vector.shape_cast %31 : vector<1x32xf32> to vector<1x1x32xf32>
    %54 = vector.broadcast %53 : vector<1x1x32xf32> to vector<2x5x32xf32>
    %55 = arith.addf %52, %54 : vector<2x5x32xf32>
    %c0_31 = arith.constant 0 : index
    %c0_32 = arith.constant 0 : index
    %c0_33 = arith.constant 0 : index
    %56 = vector.load %arg6[%c0_31, %c0_32, %c0_33] : memref<2x32x96xf32, #tpu.memory_space<vmem>>, vector<1x32x96xf32>
    %57 = vector.shape_cast %56 : vector<1x32x96xf32> to vector<32x96xf32>
    %58 = vector.shape_cast %57 : vector<32x96xf32> to vector<1x32x96xf32>
    %59 = vector.broadcast %58 : vector<1x32x96xf32> to vector<2x32x96xf32>
    "tpu.trace_start"() <{level = 10 : i32, message = "bte,bek->btk"}> : () -> ()
    %cst_34 = arith.constant dense<0.000000e+00> : vector<2x5x96xf32>
    %60 = tpu.matmul %55, %59, %cst_34 {dimension_numbers = #tpu.dot_dimension_numbers<[2], [1], [1], [2], [0, 0, 0, 1, 1, 2], [0], [0]>} : vector<2x5x32xf32>, vector<2x32x96xf32>, vector<2x5x96xf32> -> vector<2x5x96xf32>
    "tpu.trace_stop"() : () -> ()
    %c0_35 = arith.constant 0 : index
    %c0_36 = arith.constant 0 : index
    %c0_37 = arith.constant 0 : index
    %61 = vector.load %arg7[%c0_35, %c0_36, %c0_37] : memref<2x1x96xf32, #tpu.memory_space<vmem>>, vector<1x1x96xf32>
    %62 = vector.shape_cast %61 : vector<1x1x96xf32> to vector<1x96xf32>
    %63 = vector.shape_cast %62 : vector<1x96xf32> to vector<1x1x96xf32>
    %64 = vector.broadcast %63 : vector<1x1x96xf32> to vector<2x5x96xf32>
    %65 = arith.addf %60, %64 : vector<2x5x96xf32>
    %66 = vector.extract_strided_slice %65 {offsets = [0, 0, 0], sizes = [2, 5, 8], strides = [1, 1, 1]} : vector<2x5x96xf32> to vector<2x5x8xf32>
    %67 = vector.extract_strided_slice %65 {offsets = [0, 0, 32], sizes = [2, 5, 8], strides = [1, 1, 1]} : vector<2x5x96xf32> to vector<2x5x8xf32>
    %68 = vector.extract_strided_slice %65 {offsets = [0, 0, 64], sizes = [2, 5, 8], strides = [1, 1, 1]} : vector<2x5x96xf32> to vector<2x5x8xf32>
    %69 = vector.extract_strided_slice %65 {offsets = [0, 0, 8], sizes = [2, 5, 8], strides = [1, 1, 1]} : vector<2x5x96xf32> to vector<2x5x8xf32>
    %70 = vector.extract_strided_slice %65 {offsets = [0, 0, 40], sizes = [2, 5, 8], strides = [1, 1, 1]} : vector<2x5x96xf32> to vector<2x5x8xf32>
    %71 = vector.extract_strided_slice %65 {offsets = [0, 0, 72], sizes = [2, 5, 8], strides = [1, 1, 1]} : vector<2x5x96xf32> to vector<2x5x8xf32>
    %72 = vector.extract_strided_slice %65 {offsets = [0, 0, 16], sizes = [2, 5, 8], strides = [1, 1, 1]} : vector<2x5x96xf32> to vector<2x5x8xf32>
    %73 = vector.extract_strided_slice %65 {offsets = [0, 0, 48], sizes = [2, 5, 8], strides = [1, 1, 1]} : vector<2x5x96xf32> to vector<2x5x8xf32>
    %74 = vector.extract_strided_slice %65 {offsets = [0, 0, 80], sizes = [2, 5, 8], strides = [1, 1, 1]} : vector<2x5x96xf32> to vector<2x5x8xf32>
    %75 = vector.extract_strided_slice %65 {offsets = [0, 0, 24], sizes = [2, 5, 8], strides = [1, 1, 1]} : vector<2x5x96xf32> to vector<2x5x8xf32>
    %76 = vector.extract_strided_slice %65 {offsets = [0, 0, 56], sizes = [2, 5, 8], strides = [1, 1, 1]} : vector<2x5x96xf32> to vector<2x5x8xf32>
    %77 = vector.extract_strided_slice %65 {offsets = [0, 0, 88], sizes = [2, 5, 8], strides = [1, 1, 1]} : vector<2x5x96xf32> to vector<2x5x8xf32>
    %78 = vector.shape_cast %66 : vector<2x5x8xf32> to vector<1x2x5x8xf32>
    %79 = vector.shape_cast %69 : vector<2x5x8xf32> to vector<1x2x5x8xf32>
    %80 = vector.shape_cast %72 : vector<2x5x8xf32> to vector<1x2x5x8xf32>
    %81 = vector.shape_cast %75 : vector<2x5x8xf32> to vector<1x2x5x8xf32>
    %82 = tpu.concatenate %78, %79, %80, %81 in 0 : vector<1x2x5x8xf32>, vector<1x2x5x8xf32>, vector<1x2x5x8xf32>, vector<1x2x5x8xf32> -> vector<4x2x5x8xf32>
    %83 = vector.shape_cast %82 : vector<4x2x5x8xf32> to vector<8x5x8xf32>
    %84 = vector.shape_cast %67 : vector<2x5x8xf32> to vector<1x2x5x8xf32>
    %85 = vector.shape_cast %70 : vector<2x5x8xf32> to vector<1x2x5x8xf32>
    %86 = vector.shape_cast %73 : vector<2x5x8xf32> to vector<1x2x5x8xf32>
    %87 = vector.shape_cast %76 : vector<2x5x8xf32> to vector<1x2x5x8xf32>
    %88 = tpu.concatenate %84, %85, %86, %87 in 0 : vector<1x2x5x8xf32>, vector<1x2x5x8xf32>, vector<1x2x5x8xf32>, vector<1x2x5x8xf32> -> vector<4x2x5x8xf32>
    %89 = vector.shape_cast %88 : vector<4x2x5x8xf32> to vector<8x5x8xf32>
    %90 = vector.shape_cast %68 : vector<2x5x8xf32> to vector<1x2x5x8xf32>
    %91 = vector.shape_cast %71 : vector<2x5x8xf32> to vector<1x2x5x8xf32>
    %92 = vector.shape_cast %74 : vector<2x5x8xf32> to vector<1x2x5x8xf32>
    %93 = vector.shape_cast %77 : vector<2x5x8xf32> to vector<1x2x5x8xf32>
    %94 = tpu.concatenate %90, %91, %92, %93 in 0 : vector<1x2x5x8xf32>, vector<1x2x5x8xf32>, vector<1x2x5x8xf32>, vector<1x2x5x8xf32> -> vector<4x2x5x8xf32>
    %95 = vector.shape_cast %94 : vector<4x2x5x8xf32> to vector<8x5x8xf32>
    "tpu.trace_start"() <{level = 10 : i32, message = "btd,bsd->bts"}> : () -> ()
    %cst_38 = arith.constant dense<0.000000e+00> : vector<8x5x5xf32>
    %96 = tpu.matmul %83, %89, %cst_38 {dimension_numbers = #tpu.dot_dimension_numbers<[2], [2], [1], [1], [0, 0, 0, 1, 1, 1], [0], [0]>} : vector<8x5x8xf32>, vector<8x5x8xf32>, vector<8x5x5xf32> -> vector<8x5x5xf32>
    "tpu.trace_stop"() : () -> ()
    %cst_39 = arith.constant 0.353553385 : f32
    %97 = vector.broadcast %cst_39 : f32 to vector<8x5x5xf32>
    %98 = arith.mulf %96, %97 : vector<8x5x5xf32>
    %cst_40 = arith.constant dense<0xFF800000> : vector<8x5xf32>
    %99 = vector.multi_reduction <maximumf>, %98, %cst_40 [2] : vector<8x5x5xf32> to vector<8x5xf32>
    %100 = vector.shape_cast %99 : vector<8x5xf32> to vector<8x5x1xf32>
    %101 = vector.broadcast %100 : vector<8x5x1xf32> to vector<8x5x5xf32>
    %102 = arith.subf %98, %101 : vector<8x5x5xf32>
    %103 = math.exp %102 : vector<8x5x5xf32>
    %cst_41 = arith.constant dense<0.000000e+00> : vector<8x5xf32>
    %104 = vector.multi_reduction <add>, %103, %cst_41 [2] : vector<8x5x5xf32> to vector<8x5xf32>
    %105 = vector.shape_cast %104 : vector<8x5xf32> to vector<8x5x1xf32>
    %106 = tpu.reciprocal %105 {approx = true} : vector<8x5x1xf32> -> vector<8x5x1xf32>
    %107 = vector.broadcast %106 : vector<8x5x1xf32> to vector<8x5x5xf32>
    %108 = arith.mulf %103, %107 : vector<8x5x5xf32>
    "tpu.trace_start"() <{level = 10 : i32, message = "bts,bsd->btd"}> : () -> ()
    %cst_42 = arith.constant dense<0.000000e+00> : vector<8x5x8xf32>
    %109 = tpu.matmul %108, %95, %cst_42 {dimension_numbers = #tpu.dot_dimension_numbers<[2], [1], [1], [2], [0, 0, 0, 1, 1, 2], [0], [0]>} : vector<8x5x5xf32>, vector<8x5x8xf32>, vector<8x5x8xf32> -> vector<8x5x8xf32>
    "tpu.trace_stop"() : () -> ()
    %110 = vector.shape_cast %109 : vector<8x5x8xf32> to vector<4x2x5x8xf32>
    %111 = vector.extract_strided_slice %110 {offsets = [0, 0, 0, 0], sizes = [1, 2, 5, 8], strides = [1, 1, 1, 1]} : vector<4x2x5x8xf32> to vector<1x2x5x8xf32>
    %112 = vector.shape_cast %111 : vector<1x2x5x8xf32> to vector<2x5x8xf32>
    %113 = vector.extract_strided_slice %110 {offsets = [1, 0, 0, 0], sizes = [1, 2, 5, 8], strides = [1, 1, 1, 1]} : vector<4x2x5x8xf32> to vector<1x2x5x8xf32>
    %114 = vector.shape_cast %113 : vector<1x2x5x8xf32> to vector<2x5x8xf32>
    %115 = vector.extract_strided_slice %110 {offsets = [2, 0, 0, 0], sizes = [1, 2, 5, 8], strides = [1, 1, 1, 1]} : vector<4x2x5x8xf32> to vector<1x2x5x8xf32>
    %116 = vector.shape_cast %115 : vector<1x2x5x8xf32> to vector<2x5x8xf32>
    %117 = vector.extract_strided_slice %110 {offsets = [3, 0, 0, 0], sizes = [1, 2, 5, 8], strides = [1, 1, 1, 1]} : vector<4x2x5x8xf32> to vector<1x2x5x8xf32>
    %118 = vector.shape_cast %117 : vector<1x2x5x8xf32> to vector<2x5x8xf32>
    %119 = tpu.concatenate %112, %114, %116, %118 in 2 : vector<2x5x8xf32>, vector<2x5x8xf32>, vector<2x5x8xf32>, vector<2x5x8xf32> -> vector<2x5x32xf32>
    %c0_43 = arith.constant 0 : index
    %c0_44 = arith.constant 0 : index
    %c0_45 = arith.constant 0 : index
    %120 = vector.load %arg8[%c0_43, %c0_44, %c0_45] : memref<2x32x32xf32, #tpu.memory_space<vmem>>, vector<1x32x32xf32>
    %121 = vector.shape_cast %120 : vector<1x32x32xf32> to vector<32x32xf32>
    %122 = vector.shape_cast %121 : vector<32x32xf32> to vector<1x32x32xf32>
    %123 = vector.broadcast %122 : vector<1x32x32xf32> to vector<2x32x32xf32>
    "tpu.trace_start"() <{level = 10 : i32, message = "bte,bek->btk"}> : () -> ()
    %cst_46 = arith.constant dense<0.000000e+00> : vector<2x5x32xf32>
    %124 = tpu.matmul %119, %123, %cst_46 {dimension_numbers = #tpu.dot_dimension_numbers<[2], [1], [1], [2], [0, 0, 0, 1, 1, 2], [0], [0]>} : vector<2x5x32xf32>, vector<2x32x32xf32>, vector<2x5x32xf32> -> vector<2x5x32xf32>
    "tpu.trace_stop"() : () -> ()
    %125 = arith.addf %27, %124 : vector<2x5x32xf32>
    %c0_47 = arith.constant 0 : index
    %c0_48 = arith.constant 0 : index
    %c0_49 = arith.constant 0 : index
    %126 = vector.load %arg9[%c0_47, %c0_48, %c0_49] : memref<2x1x32xf32, #tpu.memory_space<vmem>>, vector<1x1x32xf32>
    %127 = vector.shape_cast %126 : vector<1x1x32xf32> to vector<1x32xf32>
    %128 = vector.shape_cast %127 : vector<1x32xf32> to vector<1x1x32xf32>
    %129 = vector.broadcast %128 : vector<1x1x32xf32> to vector<2x5x32xf32>
    %130 = arith.addf %125, %129 : vector<2x5x32xf32>
    %c0_50 = arith.constant 0 : index
    %c0_51 = arith.constant 0 : index
    %c0_52 = arith.constant 0 : index
    %131 = vector.load %arg10[%c0_50, %c0_51, %c0_52] : memref<2x1x32xf32, #tpu.memory_space<vmem>>, vector<1x1x32xf32>
    %132 = vector.shape_cast %131 : vector<1x1x32xf32> to vector<1x32xf32>
    %c0_53 = arith.constant 0 : index
    %c0_54 = arith.constant 0 : index
    %c0_55 = arith.constant 0 : index
    %133 = vector.load %arg11[%c0_53, %c0_54, %c0_55] : memref<2x1x32xf32, #tpu.memory_space<vmem>>, vector<1x1x32xf32>
    %134 = vector.shape_cast %133 : vector<1x1x32xf32> to vector<1x32xf32>
    %cst_56 = arith.constant dense<0.000000e+00> : vector<2x5xf32>
    %135 = vector.multi_reduction <add>, %130, %cst_56 [2] : vector<2x5x32xf32> to vector<2x5xf32>
    %136 = vector.shape_cast %135 : vector<2x5xf32> to vector<2x5x1xf32>
    %cst_57 = arith.constant 3.200000e+01 : f32
    %137 = vector.broadcast %cst_57 : f32 to vector<2x5x1xf32>
    %138 = arith.divf %136, %137 : vector<2x5x1xf32>
    %139 = vector.broadcast %138 : vector<2x5x1xf32> to vector<2x5x32xf32>
    %140 = arith.subf %130, %139 : vector<2x5x32xf32>
    %141 = arith.mulf %140, %140 : vector<2x5x32xf32>
    %cst_58 = arith.constant dense<0.000000e+00> : vector<2x5xf32>
    %142 = vector.multi_reduction <add>, %141, %cst_58 [2] : vector<2x5x32xf32> to vector<2x5xf32>
    %143 = vector.shape_cast %142 : vector<2x5xf32> to vector<2x5x1xf32>
    %cst_59 = arith.constant 3.200000e+01 : f32
    %144 = vector.broadcast %cst_59 : f32 to vector<2x5x1xf32>
    %145 = arith.divf %143, %144 : vector<2x5x1xf32>
    %146 = vector.broadcast %138 : vector<2x5x1xf32> to vector<2x5x32xf32>
    %147 = arith.subf %130, %146 : vector<2x5x32xf32>
    %cst_60 = arith.constant 9.99999997E-7 : f32
    %148 = vector.broadcast %cst_60 : f32 to vector<2x5x1xf32>
    %149 = arith.addf %145, %148 : vector<2x5x1xf32>
    %150 = math.rsqrt %149 : vector<2x5x1xf32>
    %151 = vector.broadcast %150 : vector<2x5x1xf32> to vector<2x5x32xf32>
    %152 = arith.mulf %147, %151 : vector<2x5x32xf32>
    %153 = vector.shape_cast %132 : vector<1x32xf32> to vector<1x1x32xf32>
    %154 = vector.broadcast %153 : vector<1x1x32xf32> to vector<2x5x32xf32>
    %155 = arith.mulf %152, %154 : vector<2x5x32xf32>
    %156 = vector.shape_cast %134 : vector<1x32xf32> to vector<1x1x32xf32>
    %157 = vector.broadcast %156 : vector<1x1x32xf32> to vector<2x5x32xf32>
    %158 = arith.addf %155, %157 : vector<2x5x32xf32>
    %c0_61 = arith.constant 0 : index
    %c0_62 = arith.constant 0 : index
    %c0_63 = arith.constant 0 : index
    %159 = vector.load %arg12[%c0_61, %c0_62, %c0_63] : memref<2x32x128xf32, #tpu.memory_space<vmem>>, vector<1x32x128xf32>
    %160 = vector.shape_cast %159 : vector<1x32x128xf32> to vector<32x128xf32>
    %161 = vector.shape_cast %160 : vector<32x128xf32> to vector<1x32x128xf32>
    %162 = vector.broadcast %161 : vector<1x32x128xf32> to vector<2x32x128xf32>
    "tpu.trace_start"() <{level = 10 : i32, message = "bte,bek->btk"}> : () -> ()
    %cst_64 = arith.constant dense<0.000000e+00> : vector<2x5x128xf32>
    %163 = tpu.matmul %158, %162, %cst_64 {dimension_numbers = #tpu.dot_dimension_numbers<[2], [1], [1], [2], [0, 0, 0, 1, 1, 2], [0], [0]>} : vector<2x5x32xf32>, vector<2x32x128xf32>, vector<2x5x128xf32> -> vector<2x5x128xf32>
    "tpu.trace_stop"() : () -> ()
    %c0_65 = arith.constant 0 : index
    %c0_66 = arith.constant 0 : index
    %c0_67 = arith.constant 0 : index
    %164 = vector.load %arg13[%c0_65, %c0_66, %c0_67] : memref<2x1x128xf32, #tpu.memory_space<vmem>>, vector<1x1x128xf32>
    %165 = vector.shape_cast %164 : vector<1x1x128xf32> to vector<1x128xf32>
    %166 = vector.shape_cast %165 : vector<1x128xf32> to vector<1x1x128xf32>
    %167 = vector.broadcast %166 : vector<1x1x128xf32> to vector<2x5x128xf32>
    %168 = arith.addf %163, %167 : vector<2x5x128xf32>
    %169 = arith.mulf %168, %168 : vector<2x5x128xf32>
    %170 = arith.mulf %168, %169 : vector<2x5x128xf32>
    %cst_68 = arith.constant 4.471500e-02 : f32
    %171 = vector.broadcast %cst_68 : f32 to vector<2x5x128xf32>
    %172 = arith.mulf %171, %170 : vector<2x5x128xf32>
    %173 = arith.addf %168, %172 : vector<2x5x128xf32>
    %cst_69 = arith.constant 0.797884583 : f32
    %174 = vector.broadcast %cst_69 : f32 to vector<2x5x128xf32>
    %175 = arith.mulf %174, %173 : vector<2x5x128xf32>
    %176 = math.tanh %175 : vector<2x5x128xf32>
    %cst_70 = arith.constant 1.000000e+00 : f32
    %177 = vector.broadcast %cst_70 : f32 to vector<2x5x128xf32>
    %178 = arith.addf %177, %176 : vector<2x5x128xf32>
    %cst_71 = arith.constant 5.000000e-01 : f32
    %179 = vector.broadcast %cst_71 : f32 to vector<2x5x128xf32>
    %180 = arith.mulf %179, %178 : vector<2x5x128xf32>
    %181 = arith.mulf %168, %180 : vector<2x5x128xf32>
    %c0_72 = arith.constant 0 : index
    %c0_73 = arith.constant 0 : index
    %c0_74 = arith.constant 0 : index
    %182 = vector.load %arg14[%c0_72, %c0_73, %c0_74] : memref<2x128x32xf32, #tpu.memory_space<vmem>>, vector<1x128x32xf32>
    %183 = vector.shape_cast %182 : vector<1x128x32xf32> to vector<128x32xf32>
    %184 = vector.shape_cast %183 : vector<128x32xf32> to vector<1x128x32xf32>
    %185 = vector.broadcast %184 : vector<1x128x32xf32> to vector<2x128x32xf32>
    "tpu.trace_start"() <{level = 10 : i32, message = "bte,bek->btk"}> : () -> ()
    %cst_75 = arith.constant dense<0.000000e+00> : vector<2x5x32xf32>
    %186 = tpu.matmul %181, %185, %cst_75 {dimension_numbers = #tpu.dot_dimension_numbers<[2], [1], [1], [2], [0, 0, 0, 1, 1, 2], [0], [0]>} : vector<2x5x128xf32>, vector<2x128x32xf32>, vector<2x5x32xf32> -> vector<2x5x32xf32>
    "tpu.trace_stop"() : () -> ()
    %187 = arith.addf %130, %186 : vector<2x5x32xf32>
    %c0_76 = arith.constant 0 : index
    %c0_77 = arith.constant 0 : index
    %c0_78 = arith.constant 0 : index
    %188 = vector.load %arg15[%c0_76, %c0_77, %c0_78] : memref<2x1x32xf32, #tpu.memory_space<vmem>>, vector<1x1x32xf32>
    %189 = vector.shape_cast %188 : vector<1x1x32xf32> to vector<1x32xf32>
    %190 = vector.shape_cast %189 : vector<1x32xf32> to vector<1x1x32xf32>
    %191 = vector.broadcast %190 : vector<1x1x32xf32> to vector<2x5x32xf32>
    %192 = arith.addf %187, %191 : vector<2x5x32xf32>
    %c1_79 = arith.constant 1 : index
    %c0_80 = arith.constant 0 : index
    %c0_81 = arith.constant 0 : index
    %193 = vector.load %arg4[%c1_79, %c0_80, %c0_81] : memref<2x1x32xf32, #tpu.memory_space<vmem>>, vector<1x1x32xf32>
    %194 = vector.shape_cast %193 : vector<1x1x32xf32> to vector<1x32xf32>
    %c1_82 = arith.constant 1 : index
    %c0_83 = arith.constant 0 : index
    %c0_84 = arith.constant 0 : index
    %195 = vector.load %arg5[%c1_82, %c0_83, %c0_84] : memref<2x1x32xf32, #tpu.memory_space<vmem>>, vector<1x1x32xf32>
    %196 = vector.shape_cast %195 : vector<1x1x32xf32> to vector<1x32xf32>
    %cst_85 = arith.constant dense<0.000000e+00> : vector<2x5xf32>
    %197 = vector.multi_reduction <add>, %192, %cst_85 [2] : vector<2x5x32xf32> to vector<2x5xf32>
    %198 = vector.shape_cast %197 : vector<2x5xf32> to vector<2x5x1xf32>
    %cst_86 = arith.constant 3.200000e+01 : f32
    %199 = vector.broadcast %cst_86 : f32 to vector<2x5x1xf32>
    %200 = arith.divf %198, %199 : vector<2x5x1xf32>
    %201 = vector.broadcast %200 : vector<2x5x1xf32> to vector<2x5x32xf32>
    %202 = arith.subf %192, %201 : vector<2x5x32xf32>
    %203 = arith.mulf %202, %202 : vector<2x5x32xf32>
    %cst_87 = arith.constant dense<0.000000e+00> : vector<2x5xf32>
    %204 = vector.multi_reduction <add>, %203, %cst_87 [2] : vector<2x5x32xf32> to vector<2x5xf32>
    %205 = vector.shape_cast %204 : vector<2x5xf32> to vector<2x5x1xf32>
    %cst_88 = arith.constant 3.200000e+01 : f32
    %206 = vector.broadcast %cst_88 : f32 to vector<2x5x1xf32>
    %207 = arith.divf %205, %206 : vector<2x5x1xf32>
    %208 = vector.broadcast %200 : vector<2x5x1xf32> to vector<2x5x32xf32>
    %209 = arith.subf %192, %208 : vector<2x5x32xf32>
    %cst_89 = arith.constant 9.99999997E-7 : f32
    %210 = vector.broadcast %cst_89 : f32 to vector<2x5x1xf32>
    %211 = arith.addf %207, %210 : vector<2x5x1xf32>
    %212 = math.rsqrt %211 : vector<2x5x1xf32>
    %213 = vector.broadcast %212 : vector<2x5x1xf32> to vector<2x5x32xf32>
    %214 = arith.mulf %209, %213 : vector<2x5x32xf32>
    %215 = vector.shape_cast %194 : vector<1x32xf32> to vector<1x1x32xf32>
    %216 = vector.broadcast %215 : vector<1x1x32xf32> to vector<2x5x32xf32>
    %217 = arith.mulf %214, %216 : vector<2x5x32xf32>
    %218 = vector.shape_cast %196 : vector<1x32xf32> to vector<1x1x32xf32>
    %219 = vector.broadcast %218 : vector<1x1x32xf32> to vector<2x5x32xf32>
    %220 = arith.addf %217, %219 : vector<2x5x32xf32>
    %c1_90 = arith.constant 1 : index
    %c0_91 = arith.constant 0 : index
    %c0_92 = arith.constant 0 : index
    %221 = vector.load %arg6[%c1_90, %c0_91, %c0_92] : memref<2x32x96xf32, #tpu.memory_space<vmem>>, vector<1x32x96xf32>
    %222 = vector.shape_cast %221 : vector<1x32x96xf32> to vector<32x96xf32>
    %223 = vector.shape_cast %222 : vector<32x96xf32> to vector<1x32x96xf32>
    %224 = vector.broadcast %223 : vector<1x32x96xf32> to vector<2x32x96xf32>
    "tpu.trace_start"() <{level = 10 : i32, message = "bte,bek->btk"}> : () -> ()
    %cst_93 = arith.constant dense<0.000000e+00> : vector<2x5x96xf32>
    %225 = tpu.matmul %220, %224, %cst_93 {dimension_numbers = #tpu.dot_dimension_numbers<[2], [1], [1], [2], [0, 0, 0, 1, 1, 2], [0], [0]>} : vector<2x5x32xf32>, vector<2x32x96xf32>, vector<2x5x96xf32> -> vector<2x5x96xf32>
    "tpu.trace_stop"() : () -> ()
    %c1_94 = arith.constant 1 : index
    %c0_95 = arith.constant 0 : index
    %c0_96 = arith.constant 0 : index
    %226 = vector.load %arg7[%c1_94, %c0_95, %c0_96] : memref<2x1x96xf32, #tpu.memory_space<vmem>>, vector<1x1x96xf32>
    %227 = vector.shape_cast %226 : vector<1x1x96xf32> to vector<1x96xf32>
    %228 = vector.shape_cast %227 : vector<1x96xf32> to vector<1x1x96xf32>
    %229 = vector.broadcast %228 : vector<1x1x96xf32> to vector<2x5x96xf32>
    %230 = arith.addf %225, %229 : vector<2x5x96xf32>
    %231 = vector.extract_strided_slice %230 {offsets = [0, 0, 0], sizes = [2, 5, 8], strides = [1, 1, 1]} : vector<2x5x96xf32> to vector<2x5x8xf32>
    %232 = vector.extract_strided_slice %230 {offsets = [0, 0, 32], sizes = [2, 5, 8], strides = [1, 1, 1]} : vector<2x5x96xf32> to vector<2x5x8xf32>
    %233 = vector.extract_strided_slice %230 {offsets = [0, 0, 64], sizes = [2, 5, 8], strides = [1, 1, 1]} : vector<2x5x96xf32> to vector<2x5x8xf32>
    %234 = vector.extract_strided_slice %230 {offsets = [0, 0, 8], sizes = [2, 5, 8], strides = [1, 1, 1]} : vector<2x5x96xf32> to vector<2x5x8xf32>
    %235 = vector.extract_strided_slice %230 {offsets = [0, 0, 40], sizes = [2, 5, 8], strides = [1, 1, 1]} : vector<2x5x96xf32> to vector<2x5x8xf32>
    %236 = vector.extract_strided_slice %230 {offsets = [0, 0, 72], sizes = [2, 5, 8], strides = [1, 1, 1]} : vector<2x5x96xf32> to vector<2x5x8xf32>
    %237 = vector.extract_strided_slice %230 {offsets = [0, 0, 16], sizes = [2, 5, 8], strides = [1, 1, 1]} : vector<2x5x96xf32> to vector<2x5x8xf32>
    %238 = vector.extract_strided_slice %230 {offsets = [0, 0, 48], sizes = [2, 5, 8], strides = [1, 1, 1]} : vector<2x5x96xf32> to vector<2x5x8xf32>
    %239 = vector.extract_strided_slice %230 {offsets = [0, 0, 80], sizes = [2, 5, 8], strides = [1, 1, 1]} : vector<2x5x96xf32> to vector<2x5x8xf32>
    %240 = vector.extract_strided_slice %230 {offsets = [0, 0, 24], sizes = [2, 5, 8], strides = [1, 1, 1]} : vector<2x5x96xf32> to vector<2x5x8xf32>
    %241 = vector.extract_strided_slice %230 {offsets = [0, 0, 56], sizes = [2, 5, 8], strides = [1, 1, 1]} : vector<2x5x96xf32> to vector<2x5x8xf32>
    %242 = vector.extract_strided_slice %230 {offsets = [0, 0, 88], sizes = [2, 5, 8], strides = [1, 1, 1]} : vector<2x5x96xf32> to vector<2x5x8xf32>
    %243 = vector.shape_cast %231 : vector<2x5x8xf32> to vector<1x2x5x8xf32>
    %244 = vector.shape_cast %234 : vector<2x5x8xf32> to vector<1x2x5x8xf32>
    %245 = vector.shape_cast %237 : vector<2x5x8xf32> to vector<1x2x5x8xf32>
    %246 = vector.shape_cast %240 : vector<2x5x8xf32> to vector<1x2x5x8xf32>
    %247 = tpu.concatenate %243, %244, %245, %246 in 0 : vector<1x2x5x8xf32>, vector<1x2x5x8xf32>, vector<1x2x5x8xf32>, vector<1x2x5x8xf32> -> vector<4x2x5x8xf32>
    %248 = vector.shape_cast %247 : vector<4x2x5x8xf32> to vector<8x5x8xf32>
    %249 = vector.shape_cast %232 : vector<2x5x8xf32> to vector<1x2x5x8xf32>
    %250 = vector.shape_cast %235 : vector<2x5x8xf32> to vector<1x2x5x8xf32>
    %251 = vector.shape_cast %238 : vector<2x5x8xf32> to vector<1x2x5x8xf32>
    %252 = vector.shape_cast %241 : vector<2x5x8xf32> to vector<1x2x5x8xf32>
    %253 = tpu.concatenate %249, %250, %251, %252 in 0 : vector<1x2x5x8xf32>, vector<1x2x5x8xf32>, vector<1x2x5x8xf32>, vector<1x2x5x8xf32> -> vector<4x2x5x8xf32>
    %254 = vector.shape_cast %253 : vector<4x2x5x8xf32> to vector<8x5x8xf32>
    %255 = vector.shape_cast %233 : vector<2x5x8xf32> to vector<1x2x5x8xf32>
    %256 = vector.shape_cast %236 : vector<2x5x8xf32> to vector<1x2x5x8xf32>
    %257 = vector.shape_cast %239 : vector<2x5x8xf32> to vector<1x2x5x8xf32>
    %258 = vector.shape_cast %242 : vector<2x5x8xf32> to vector<1x2x5x8xf32>
    %259 = tpu.concatenate %255, %256, %257, %258 in 0 : vector<1x2x5x8xf32>, vector<1x2x5x8xf32>, vector<1x2x5x8xf32>, vector<1x2x5x8xf32> -> vector<4x2x5x8xf32>
    %260 = vector.shape_cast %259 : vector<4x2x5x8xf32> to vector<8x5x8xf32>
    "tpu.trace_start"() <{level = 10 : i32, message = "btd,bsd->bts"}> : () -> ()
    %cst_97 = arith.constant dense<0.000000e+00> : vector<8x5x5xf32>
    %261 = tpu.matmul %248, %254, %cst_97 {dimension_numbers = #tpu.dot_dimension_numbers<[2], [2], [1], [1], [0, 0, 0, 1, 1, 1], [0], [0]>} : vector<8x5x8xf32>, vector<8x5x8xf32>, vector<8x5x5xf32> -> vector<8x5x5xf32>
    "tpu.trace_stop"() : () -> ()
    %cst_98 = arith.constant 0.353553385 : f32
    %262 = vector.broadcast %cst_98 : f32 to vector<8x5x5xf32>
    %263 = arith.mulf %261, %262 : vector<8x5x5xf32>
    %cst_99 = arith.constant dense<0xFF800000> : vector<8x5xf32>
    %264 = vector.multi_reduction <maximumf>, %263, %cst_99 [2] : vector<8x5x5xf32> to vector<8x5xf32>
    %265 = vector.shape_cast %264 : vector<8x5xf32> to vector<8x5x1xf32>
    %266 = vector.broadcast %265 : vector<8x5x1xf32> to vector<8x5x5xf32>
    %267 = arith.subf %263, %266 : vector<8x5x5xf32>
    %268 = math.exp %267 : vector<8x5x5xf32>
    %cst_100 = arith.constant dense<0.000000e+00> : vector<8x5xf32>
    %269 = vector.multi_reduction <add>, %268, %cst_100 [2] : vector<8x5x5xf32> to vector<8x5xf32>
    %270 = vector.shape_cast %269 : vector<8x5xf32> to vector<8x5x1xf32>
    %271 = tpu.reciprocal %270 {approx = true} : vector<8x5x1xf32> -> vector<8x5x1xf32>
    %272 = vector.broadcast %271 : vector<8x5x1xf32> to vector<8x5x5xf32>
    %273 = arith.mulf %268, %272 : vector<8x5x5xf32>
    "tpu.trace_start"() <{level = 10 : i32, message = "bts,bsd->btd"}> : () -> ()
    %cst_101 = arith.constant dense<0.000000e+00> : vector<8x5x8xf32>
    %274 = tpu.matmul %273, %260, %cst_101 {dimension_numbers = #tpu.dot_dimension_numbers<[2], [1], [1], [2], [0, 0, 0, 1, 1, 2], [0], [0]>} : vector<8x5x5xf32>, vector<8x5x8xf32>, vector<8x5x8xf32> -> vector<8x5x8xf32>
    "tpu.trace_stop"() : () -> ()
    %275 = vector.shape_cast %274 : vector<8x5x8xf32> to vector<4x2x5x8xf32>
    %276 = vector.extract_strided_slice %275 {offsets = [0, 0, 0, 0], sizes = [1, 2, 5, 8], strides = [1, 1, 1, 1]} : vector<4x2x5x8xf32> to vector<1x2x5x8xf32>
    %277 = vector.shape_cast %276 : vector<1x2x5x8xf32> to vector<2x5x8xf32>
    %278 = vector.extract_strided_slice %275 {offsets = [1, 0, 0, 0], sizes = [1, 2, 5, 8], strides = [1, 1, 1, 1]} : vector<4x2x5x8xf32> to vector<1x2x5x8xf32>
    %279 = vector.shape_cast %278 : vector<1x2x5x8xf32> to vector<2x5x8xf32>
    %280 = vector.extract_strided_slice %275 {offsets = [2, 0, 0, 0], sizes = [1, 2, 5, 8], strides = [1, 1, 1, 1]} : vector<4x2x5x8xf32> to vector<1x2x5x8xf32>
    %281 = vector.shape_cast %280 : vector<1x2x5x8xf32> to vector<2x5x8xf32>
    %282 = vector.extract_strided_slice %275 {offsets = [3, 0, 0, 0], sizes = [1, 2, 5, 8], strides = [1, 1, 1, 1]} : vector<4x2x5x8xf32> to vector<1x2x5x8xf32>
    %283 = vector.shape_cast %282 : vector<1x2x5x8xf32> to vector<2x5x8xf32>
    %284 = tpu.concatenate %277, %279, %281, %283 in 2 : vector<2x5x8xf32>, vector<2x5x8xf32>, vector<2x5x8xf32>, vector<2x5x8xf32> -> vector<2x5x32xf32>
    %c1_102 = arith.constant 1 : index
    %c0_103 = arith.constant 0 : index
    %c0_104 = arith.constant 0 : index
    %285 = vector.load %arg8[%c1_102, %c0_103, %c0_104] : memref<2x32x32xf32, #tpu.memory_space<vmem>>, vector<1x32x32xf32>
    %286 = vector.shape_cast %285 : vector<1x32x32xf32> to vector<32x32xf32>
    %287 = vector.shape_cast %286 : vector<32x32xf32> to vector<1x32x32xf32>
    %288 = vector.broadcast %287 : vector<1x32x32xf32> to vector<2x32x32xf32>
    "tpu.trace_start"() <{level = 10 : i32, message = "bte,bek->btk"}> : () -> ()
    %cst_105 = arith.constant dense<0.000000e+00> : vector<2x5x32xf32>
    %289 = tpu.matmul %284, %288, %cst_105 {dimension_numbers = #tpu.dot_dimension_numbers<[2], [1], [1], [2], [0, 0, 0, 1, 1, 2], [0], [0]>} : vector<2x5x32xf32>, vector<2x32x32xf32>, vector<2x5x32xf32> -> vector<2x5x32xf32>
    "tpu.trace_stop"() : () -> ()
    %290 = arith.addf %192, %289 : vector<2x5x32xf32>
    %c1_106 = arith.constant 1 : index
    %c0_107 = arith.constant 0 : index
    %c0_108 = arith.constant 0 : index
    %291 = vector.load %arg9[%c1_106, %c0_107, %c0_108] : memref<2x1x32xf32, #tpu.memory_space<vmem>>, vector<1x1x32xf32>
    %292 = vector.shape_cast %291 : vector<1x1x32xf32> to vector<1x32xf32>
    %293 = vector.shape_cast %292 : vector<1x32xf32> to vector<1x1x32xf32>
    %294 = vector.broadcast %293 : vector<1x1x32xf32> to vector<2x5x32xf32>
    %295 = arith.addf %290, %294 : vector<2x5x32xf32>
    %c1_109 = arith.constant 1 : index
    %c0_110 = arith.constant 0 : index
    %c0_111 = arith.constant 0 : index
    %296 = vector.load %arg10[%c1_109, %c0_110, %c0_111] : memref<2x1x32xf32, #tpu.memory_space<vmem>>, vector<1x1x32xf32>
    %297 = vector.shape_cast %296 : vector<1x1x32xf32> to vector<1x32xf32>
    %c1_112 = arith.constant 1 : index
    %c0_113 = arith.constant 0 : index
    %c0_114 = arith.constant 0 : index
    %298 = vector.load %arg11[%c1_112, %c0_113, %c0_114] : memref<2x1x32xf32, #tpu.memory_space<vmem>>, vector<1x1x32xf32>
    %299 = vector.shape_cast %298 : vector<1x1x32xf32> to vector<1x32xf32>
    %cst_115 = arith.constant dense<0.000000e+00> : vector<2x5xf32>
    %300 = vector.multi_reduction <add>, %295, %cst_115 [2] : vector<2x5x32xf32> to vector<2x5xf32>
    %301 = vector.shape_cast %300 : vector<2x5xf32> to vector<2x5x1xf32>
    %cst_116 = arith.constant 3.200000e+01 : f32
    %302 = vector.broadcast %cst_116 : f32 to vector<2x5x1xf32>
    %303 = arith.divf %301, %302 : vector<2x5x1xf32>
    %304 = vector.broadcast %303 : vector<2x5x1xf32> to vector<2x5x32xf32>
    %305 = arith.subf %295, %304 : vector<2x5x32xf32>
    %306 = arith.mulf %305, %305 : vector<2x5x32xf32>
    %cst_117 = arith.constant dense<0.000000e+00> : vector<2x5xf32>
    %307 = vector.multi_reduction <add>, %306, %cst_117 [2] : vector<2x5x32xf32> to vector<2x5xf32>
    %308 = vector.shape_cast %307 : vector<2x5xf32> to vector<2x5x1xf32>
    %cst_118 = arith.constant 3.200000e+01 : f32
    %309 = vector.broadcast %cst_118 : f32 to vector<2x5x1xf32>
    %310 = arith.divf %308, %309 : vector<2x5x1xf32>
    %311 = vector.broadcast %303 : vector<2x5x1xf32> to vector<2x5x32xf32>
    %312 = arith.subf %295, %311 : vector<2x5x32xf32>
    %cst_119 = arith.constant 9.99999997E-7 : f32
    %313 = vector.broadcast %cst_119 : f32 to vector<2x5x1xf32>
    %314 = arith.addf %310, %313 : vector<2x5x1xf32>
    %315 = math.rsqrt %314 : vector<2x5x1xf32>
    %316 = vector.broadcast %315 : vector<2x5x1xf32> to vector<2x5x32xf32>
    %317 = arith.mulf %312, %316 : vector<2x5x32xf32>
    %318 = vector.shape_cast %297 : vector<1x32xf32> to vector<1x1x32xf32>
    %319 = vector.broadcast %318 : vector<1x1x32xf32> to vector<2x5x32xf32>
    %320 = arith.mulf %317, %319 : vector<2x5x32xf32>
    %321 = vector.shape_cast %299 : vector<1x32xf32> to vector<1x1x32xf32>
    %322 = vector.broadcast %321 : vector<1x1x32xf32> to vector<2x5x32xf32>
    %323 = arith.addf %320, %322 : vector<2x5x32xf32>
    %c1_120 = arith.constant 1 : index
    %c0_121 = arith.constant 0 : index
    %c0_122 = arith.constant 0 : index
    %324 = vector.load %arg12[%c1_120, %c0_121, %c0_122] : memref<2x32x128xf32, #tpu.memory_space<vmem>>, vector<1x32x128xf32>
    %325 = vector.shape_cast %324 : vector<1x32x128xf32> to vector<32x128xf32>
    %326 = vector.shape_cast %325 : vector<32x128xf32> to vector<1x32x128xf32>
    %327 = vector.broadcast %326 : vector<1x32x128xf32> to vector<2x32x128xf32>
    "tpu.trace_start"() <{level = 10 : i32, message = "bte,bek->btk"}> : () -> ()
    %cst_123 = arith.constant dense<0.000000e+00> : vector<2x5x128xf32>
    %328 = tpu.matmul %323, %327, %cst_123 {dimension_numbers = #tpu.dot_dimension_numbers<[2], [1], [1], [2], [0, 0, 0, 1, 1, 2], [0], [0]>} : vector<2x5x32xf32>, vector<2x32x128xf32>, vector<2x5x128xf32> -> vector<2x5x128xf32>
    "tpu.trace_stop"() : () -> ()
    %c1_124 = arith.constant 1 : index
    %c0_125 = arith.constant 0 : index
    %c0_126 = arith.constant 0 : index
    %329 = vector.load %arg13[%c1_124, %c0_125, %c0_126] : memref<2x1x128xf32, #tpu.memory_space<vmem>>, vector<1x1x128xf32>
    %330 = vector.shape_cast %329 : vector<1x1x128xf32> to vector<1x128xf32>
    %331 = vector.shape_cast %330 : vector<1x128xf32> to vector<1x1x128xf32>
    %332 = vector.broadcast %331 : vector<1x1x128xf32> to vector<2x5x128xf32>
    %333 = arith.addf %328, %332 : vector<2x5x128xf32>
    %334 = arith.mulf %333, %333 : vector<2x5x128xf32>
    %335 = arith.mulf %333, %334 : vector<2x5x128xf32>
    %cst_127 = arith.constant 4.471500e-02 : f32
    %336 = vector.broadcast %cst_127 : f32 to vector<2x5x128xf32>
    %337 = arith.mulf %336, %335 : vector<2x5x128xf32>
    %338 = arith.addf %333, %337 : vector<2x5x128xf32>
    %cst_128 = arith.constant 0.797884583 : f32
    %339 = vector.broadcast %cst_128 : f32 to vector<2x5x128xf32>
    %340 = arith.mulf %339, %338 : vector<2x5x128xf32>
    %341 = math.tanh %340 : vector<2x5x128xf32>
    %cst_129 = arith.constant 1.000000e+00 : f32
    %342 = vector.broadcast %cst_129 : f32 to vector<2x5x128xf32>
    %343 = arith.addf %342, %341 : vector<2x5x128xf32>
    %cst_130 = arith.constant 5.000000e-01 : f32
    %344 = vector.broadcast %cst_130 : f32 to vector<2x5x128xf32>
    %345 = arith.mulf %344, %343 : vector<2x5x128xf32>
    %346 = arith.mulf %333, %345 : vector<2x5x128xf32>
    %c1_131 = arith.constant 1 : index
    %c0_132 = arith.constant 0 : index
    %c0_133 = arith.constant 0 : index
    %347 = vector.load %arg14[%c1_131, %c0_132, %c0_133] : memref<2x128x32xf32, #tpu.memory_space<vmem>>, vector<1x128x32xf32>
    %348 = vector.shape_cast %347 : vector<1x128x32xf32> to vector<128x32xf32>
    %349 = vector.shape_cast %348 : vector<128x32xf32> to vector<1x128x32xf32>
    %350 = vector.broadcast %349 : vector<1x128x32xf32> to vector<2x128x32xf32>
    "tpu.trace_start"() <{level = 10 : i32, message = "bte,bek->btk"}> : () -> ()
    %cst_134 = arith.constant dense<0.000000e+00> : vector<2x5x32xf32>
    %351 = tpu.matmul %346, %350, %cst_134 {dimension_numbers = #tpu.dot_dimension_numbers<[2], [1], [1], [2], [0, 0, 0, 1, 1, 2], [0], [0]>} : vector<2x5x128xf32>, vector<2x128x32xf32>, vector<2x5x32xf32> -> vector<2x5x32xf32>
    "tpu.trace_stop"() : () -> ()
    %352 = arith.addf %295, %351 : vector<2x5x32xf32>
    %c1_135 = arith.constant 1 : index
    %c0_136 = arith.constant 0 : index
    %c0_137 = arith.constant 0 : index
    %353 = vector.load %arg15[%c1_135, %c0_136, %c0_137] : memref<2x1x32xf32, #tpu.memory_space<vmem>>, vector<1x1x32xf32>
    %354 = vector.shape_cast %353 : vector<1x1x32xf32> to vector<1x32xf32>
    %355 = vector.shape_cast %354 : vector<1x32xf32> to vector<1x1x32xf32>
    %356 = vector.broadcast %355 : vector<1x1x32xf32> to vector<2x5x32xf32>
    %357 = arith.addf %352, %356 : vector<2x5x32xf32>
    %c0_138 = arith.constant 0 : index
    %c0_139 = arith.constant 0 : index
    %358 = vector.load %arg16[%c0_138, %c0_139] : memref<1x32xf32, #tpu.memory_space<vmem>>, vector<1x32xf32>
    %c0_140 = arith.constant 0 : index
    %c0_141 = arith.constant 0 : index
    %359 = vector.load %arg17[%c0_140, %c0_141] : memref<1x32xf32, #tpu.memory_space<vmem>>, vector<1x32xf32>
    %cst_142 = arith.constant dense<0.000000e+00> : vector<2x5xf32>
    %360 = vector.multi_reduction <add>, %357, %cst_142 [2] : vector<2x5x32xf32> to vector<2x5xf32>
    %361 = vector.shape_cast %360 : vector<2x5xf32> to vector<2x5x1xf32>
    %cst_143 = arith.constant 3.200000e+01 : f32
    %362 = vector.broadcast %cst_143 : f32 to vector<2x5x1xf32>
    %363 = arith.divf %361, %362 : vector<2x5x1xf32>
    %364 = vector.broadcast %363 : vector<2x5x1xf32> to vector<2x5x32xf32>
    %365 = arith.subf %357, %364 : vector<2x5x32xf32>
    %366 = arith.mulf %365, %365 : vector<2x5x32xf32>
    %cst_144 = arith.constant dense<0.000000e+00> : vector<2x5xf32>
    %367 = vector.multi_reduction <add>, %366, %cst_144 [2] : vector<2x5x32xf32> to vector<2x5xf32>
    %368 = vector.shape_cast %367 : vector<2x5xf32> to vector<2x5x1xf32>
    %cst_145 = arith.constant 3.200000e+01 : f32
    %369 = vector.broadcast %cst_145 : f32 to vector<2x5x1xf32>
    %370 = arith.divf %368, %369 : vector<2x5x1xf32>
    %371 = vector.broadcast %363 : vector<2x5x1xf32> to vector<2x5x32xf32>
    %372 = arith.subf %357, %371 : vector<2x5x32xf32>
    %cst_146 = arith.constant 9.99999997E-7 : f32
    %373 = vector.broadcast %cst_146 : f32 to vector<2x5x1xf32>
    %374 = arith.addf %370, %373 : vector<2x5x1xf32>
    %375 = math.rsqrt %374 : vector<2x5x1xf32>
    %376 = vector.broadcast %375 : vector<2x5x1xf32> to vector<2x5x32xf32>
    %377 = arith.mulf %372, %376 : vector<2x5x32xf32>
    %378 = vector.shape_cast %358 : vector<1x32xf32> to vector<1x1x32xf32>
    %379 = vector.broadcast %378 : vector<1x1x32xf32> to vector<2x5x32xf32>
    %380 = arith.mulf %377, %379 : vector<2x5x32xf32>
    %381 = vector.shape_cast %359 : vector<1x32xf32> to vector<1x1x32xf32>
    %382 = vector.broadcast %381 : vector<1x1x32xf32> to vector<2x5x32xf32>
    %383 = arith.addf %380, %382 : vector<2x5x32xf32>
    %384 = vector.extract_strided_slice %383 {offsets = [0, 0, 0], sizes = [2, 1, 32], strides = [1, 1, 1]} : vector<2x5x32xf32> to vector<2x1x32xf32>
    %c0_147 = arith.constant 0 : index
    %c0_148 = arith.constant 0 : index
    %385 = vector.load %arg18[%c0_147, %c0_148] : memref<32x128xf32, #tpu.memory_space<vmem>>, vector<32x128xf32>
    %386 = vector.shape_cast %385 : vector<32x128xf32> to vector<1x32x128xf32>
    %387 = vector.broadcast %386 : vector<1x32x128xf32> to vector<2x32x128xf32>
    "tpu.trace_start"() <{level = 10 : i32, message = "bte,bek->btk"}> : () -> ()
    %cst_149 = arith.constant dense<0.000000e+00> : vector<2x1x128xf32>
    %388 = tpu.matmul %384, %387, %cst_149 {dimension_numbers = #tpu.dot_dimension_numbers<[2], [1], [1], [2], [0, 0, 0, 1, 1, 2], [0], [0]>} : vector<2x1x32xf32>, vector<2x32x128xf32>, vector<2x1x128xf32> -> vector<2x1x128xf32>
    "tpu.trace_stop"() : () -> ()
    %c0_150 = arith.constant 0 : index
    %c0_151 = arith.constant 0 : index
    %389 = vector.load %arg19[%c0_150, %c0_151] : memref<1x128xf32, #tpu.memory_space<vmem>>, vector<1x128xf32>
    %390 = vector.shape_cast %389 : vector<1x128xf32> to vector<1x1x128xf32>
    %391 = vector.broadcast %390 : vector<1x1x128xf32> to vector<2x1x128xf32>
    %392 = arith.addf %388, %391 : vector<2x1x128xf32>
    %c0_152 = arith.constant 0 : index
    %c0_153 = arith.constant 0 : index
    %c0_154 = arith.constant 0 : index
    %393 = vector.load %arg20[%c0_152, %c0_153, %c0_154] : memref<2x1x128xf32, #tpu.memory_space<vmem>>, vector<2x1x128xf32>
    tpu.vector_store %arg20[%c0_152, %c0_153, %c0_154], %392 {strides = array<i32>} : memref<2x1x128xf32, #tpu.memory_space<vmem>>, vector<2x1x128xf32>,
    return
  }
  func.func @transform_0(%arg0: i32) -> (i32, i32) {
    %c0_i32 = arith.constant 0 : i32
    %c0_i32_0 = arith.constant 0 : i32
    return %arg0, %c0_i32 : i32, i32
  }
  func.func @transform_1(%arg0: i32) -> (i32, i32) {
    %c0_i32 = arith.constant 0 : i32
    %c0_i32_0 = arith.constant 0 : i32
    %c0_i32_1 = arith.constant 0 : i32
    return %c0_i32, %c0_i32_0 : i32, i32
  }
  func.func @transform_2(%arg0: i32) -> (i32, i32) {
    %c0_i32 = arith.constant 0 : i32
    %c0_i32_0 = arith.constant 0 : i32
    %c0_i32_1 = arith.constant 0 : i32
    return %c0_i32, %c0_i32_0 : i32, i32
  }
  func.func @transform_3(%arg0: i32) -> (i32, i32, i32) {
    %c0_i32 = arith.constant 0 : i32
    %c0_i32_0 = arith.constant 0 : i32
    %c0_i32_1 = arith.constant 0 : i32
    %c0_i32_2 = arith.constant 0 : i32
    return %c0_i32, %c0_i32_0, %c0_i32_1 : i32, i32, i32
  }
  func.func @transform_4(%arg0: i32) -> (i32, i32, i32) {
    %c0_i32 = arith.constant 0 : i32
    %c0_i32_0 = arith.constant 0 : i32
    %c0_i32_1 = arith.constant 0 : i32
    %c0_i32_2 = arith.constant 0 : i32
    return %c0_i32, %c0_i32_0, %c0_i32_1 : i32, i32, i32
  }
  func.func @transform_5(%arg0: i32) -> (i32, i32, i32) {
    %c0_i32 = arith.constant 0 : i32
    %c0_i32_0 = arith.constant 0 : i32
    %c0_i32_1 = arith.constant 0 : i32
    %c0_i32_2 = arith.constant 0 : i32
    return %c0_i32, %c0_i32_0, %c0_i32_1 : i32, i32, i32
  }
  func.func @transform_6(%arg0: i32) -> (i32, i32, i32) {
    %c0_i32 = arith.constant 0 : i32
    %c0_i32_0 = arith.constant 0 : i32
    %c0_i32_1 = arith.constant 0 : i32
    %c0_i32_2 = arith.constant 0 : i32
    return %c0_i32, %c0_i32_0, %c0_i32_1 : i32, i32, i32
  }
  func.func @transform_7(%arg0: i32) -> (i32, i32, i32) {
    %c0_i32 = arith.constant 0 : i32
    %c0_i32_0 = arith.constant 0 : i32
    %c0_i32_1 = arith.constant 0 : i32
    %c0_i32_2 = arith.constant 0 : i32
    return %c0_i32, %c0_i32_0, %c0_i32_1 : i32, i32, i32
  }
  func.func @transform_8(%arg0: i32) -> (i32, i32, i32) {
    %c0_i32 = arith.constant 0 : i32
    %c0_i32_0 = arith.constant 0 : i32
    %c0_i32_1 = arith.constant 0 : i32
    %c0_i32_2 = arith.constant 0 : i32
    return %c0_i32, %c0_i32_0, %c0_i32_1 : i32, i32, i32
  }
  func.func @transform_9(%arg0: i32) -> (i32, i32, i32) {
    %c0_i32 = arith.constant 0 : i32
    %c0_i32_0 = arith.constant 0 : i32
    %c0_i32_1 = arith.constant 0 : i32
    %c0_i32_2 = arith.constant 0 : i32
    return %c0_i32, %c0_i32_0, %c0_i32_1 : i32, i32, i32
  }
  func.func @transform_10(%arg0: i32) -> (i32, i32, i32) {
    %c0_i32 = arith.constant 0 : i32
    %c0_i32_0 = arith.constant 0 : i32
    %c0_i32_1 = arith.constant 0 : i32
    %c0_i32_2 = arith.constant 0 : i32
    return %c0_i32, %c0_i32_0, %c0_i32_1 : i32, i32, i32
  }
  func.func @transform_11(%arg0: i32) -> (i32, i32, i32) {
    %c0_i32 = arith.constant 0 : i32
    %c0_i32_0 = arith.constant 0 : i32
    %c0_i32_1 = arith.constant 0 : i32
    %c0_i32_2 = arith.constant 0 : i32
    return %c0_i32, %c0_i32_0, %c0_i32_1 : i32, i32, i32
  }
  func.func @transform_12(%arg0: i32) -> (i32, i32, i32) {
    %c0_i32 = arith.constant 0 : i32
    %c0_i32_0 = arith.constant 0 : i32
    %c0_i32_1 = arith.constant 0 : i32
    %c0_i32_2 = arith.constant 0 : i32
    return %c0_i32, %c0_i32_0, %c0_i32_1 : i32, i32, i32
  }
  func.func @transform_13(%arg0: i32) -> (i32, i32, i32) {
    %c0_i32 = arith.constant 0 : i32
    %c0_i32_0 = arith.constant 0 : i32
    %c0_i32_1 = arith.constant 0 : i32
    %c0_i32_2 = arith.constant 0 : i32
    return %c0_i32, %c0_i32_0, %c0_i32_1 : i32, i32, i32
  }
  func.func @transform_14(%arg0: i32) -> (i32, i32, i32) {
    %c0_i32 = arith.constant 0 : i32
    %c0_i32_0 = arith.constant 0 : i32
    %c0_i32_1 = arith.constant 0 : i32
    %c0_i32_2 = arith.constant 0 : i32
    return %c0_i32, %c0_i32_0, %c0_i32_1 : i32, i32, i32
  }
  func.func @transform_15(%arg0: i32) -> (i32, i32) {
    %c0_i32 = arith.constant 0 : i32
    %c0_i32_0 = arith.constant 0 : i32
    %c0_i32_1 = arith.constant 0 : i32
    return %c0_i32, %c0_i32_0 : i32, i32
  }
  func.func @transform_16(%arg0: i32) -> (i32, i32) {
    %c0_i32 = arith.constant 0 : i32
    %c0_i32_0 = arith.constant 0 : i32
    %c0_i32_1 = arith.constant 0 : i32
    return %c0_i32, %c0_i32_0 : i32, i32
  }
  func.func @transform_17(%arg0: i32) -> (i32, i32) {
    %c0_i32 = arith.constant 0 : i32
    %c0_i32_0 = arith.constant 0 : i32
    %c0_i32_1 = arith.constant 0 : i32
    return %c0_i32, %c0_i32_0 : i32, i32
  }
  func.func @transform_18(%arg0: i32) -> (i32, i32) {
    %c0_i32 = arith.constant 0 : i32
    %c0_i32_0 = arith.constant 0 : i32
    %c0_i32_1 = arith.constant 0 : i32
    return %c0_i32, %c0_i32_0 : i32, i32
  }
  func.func @transform_19(%arg0: i32) -> (i32, i32, i32) {
    %c0_i32 = arith.constant 0 : i32
    %c0_i32_0 = arith.constant 0 : i32
    %c0_i32_1 = arith.constant 0 : i32
    return %arg0, %c0_i32, %c0_i32_0 : i32, i32, i32
  }
}

</mosaic_0001>

<bundles_post_ra>
// kernel: eva_classifier_forward.1
= control target key start
LH: loop header
LB: loop body
LE: loop exit
PB: predicated region body
PF: predicated region fallthrough
CT: control target
= control target key end

     0   :  { %s3623_s0 = inlined_call_operand.vmem [shape: f32[2,256], index: 0, kind: input, shape index: {}]   ;;  %s3624_s1 = inlined_call_operand.vmem [shape: f32[256,128], index: 1, kind: input, shape index: {}]   ;;  %s3625_s2 = inlined_call_operand.vmem [shape: f32[5,32], index: 2, kind: input, shape index: {}]   ;;  %s3626_s3 = inlined_call_operand.vmem [shape: f32[2,1,32], index: 3, kind: input, shape index: {}]   ;;  %s3627_s4 = inlined_call_operand.vmem [shape: f32[2,1,32], index: 4, kind: input, shape index: {}]   ;;  %s3628_s5 = inlined_call_operand.vmem [shape: f32[2,32,96], index: 5, kind: input, shape index: {}]   ;;  %s3629_s6 = inlined_call_operand.vmem [shape: f32[2,1,96], index: 6, kind: input, shape index: {}]   ;;  %s3630_s7 = inlined_call_operand.hbm [shape: f32[2,32,32], index: 7, kind: input, shape index: {}]   ;;  %s3631_s8 = inlined_call_operand.vmem [shape: f32[2,1,32], index: 8, kind: input, shape index: {}]   ;;  %s3632_s9 = inlined_call_operand.hbm [shape: f32[2,1,32], index: 9, kind: input, shape index: {}]   ;;  %s3633_s10 = inlined_call_operand.hbm [shape: f32[2,1,32], index: 10, kind: input, shape index: {}]   ;;  %s3634_s11 = inlined_call_operand.hbm [shape: f32[2,32,128], index: 11, kind: input, shape index: {}]   ;;  %s3635_s12 = inlined_call_operand.hbm [shape: f32[2,1,128], index: 12, kind: input, shape index: {}]   ;;  %s3636_s13 = inlined_call_operand.vmem [shape: f32[2,128,32], index: 13, kind: input, shape index: {}]   ;;  %s3637_s14 = inlined_call_operand.hbm [shape: f32[2,1,32], index: 14, kind: input, shape index: {}]   ;;  %s3638_s15 = inlined_call_operand.hbm [shape: f32[1,32], index: 15, kind: input, shape index: {}]   ;;  %s3639_s16 = inlined_call_operand.hbm [shape: f32[1,32], index: 16, kind: input, shape index: {}]   ;;  %s3640_s17 = inlined_call_operand.vmem [shape: f32[32,128], index: 17, kind: input, shape index: {}]   ;;  %s3641_s18 = inlined_call_operand.hbm [shape: f32[1,128], index: 18, kind: input, shape index: {}]   ;;  %s3642_s19 = inlined_call_operand.hbm [shape: f32[2,1,128], index: 19, kind: output, shape index: {}]  }
   0x1   :  { %3645 = sst [smem:[#allocation25_spill]] %s3623_s0 }
   0x2   :  { %3646 = sst [smem:[#allocation26_spill]] %s3624_s1 }
   0x3   :  { %3647 = sst [smem:[#allocation27_spill]] %s3625_s2 }
   0x4   :  { %3648 = sst [smem:[#allocation28_spill]] %s3626_s3 }
   0x5   :  { %24 = vsyncpa [#allocation4], 0 }
   0x6   :  { %25 = vsyncpa [#allocation7], 0 }
   0x7   :  { %26 = vsyncpa [#allocation10], 0 }
   0x8   :  { %27 = vsyncpa [#allocation13], 0 }
   0x9   :  { %28 = vsyncpa [#allocation16], 0  ;;  %s63_s20 = sshll.u32 %s3632_s9, 4  ;;  %s64_s20 = int_to_ptr.hbm [resolvable:$true] %s63_s20 }
   0xa   :  { %29 = vsyncpa [#allocation5], 0  ;;  %s2811_s21 = smov [#allocation6]   ;;  %s2812_s22 = smov 16  }
   0xb   :  { %s65_s1 = sshll.u32 %s2811_s21, 4  ;;  %s2813_s2 = smov 1   ;;  %s66_s1 = int_to_ptr.vmem [resolvable:$true] %s65_s1 }
   0xc   :  { %71 = dma.hbm_to_vmem [thread:$0]  %s64_s20, 32, %s66_s1, [#allocation7], %s2812_s22, %s2812_s22, %s2813_s2  }
   0xd   :  { %s89_s25 = sshll.u32 %s3634_s11, 4  ;;  %s2814_s3 = smov [#allocation9]   ;;  %s90_s25 = int_to_ptr.hbm [resolvable:$true] %s89_s25 }
   0xe   :  { %s91_s26 = sshll.u32 %s2814_s3, 4  ;;  %s117_s28 = sshll.u32 %s3637_s14, 4  ;;  %s92_s26 = int_to_ptr.vmem [resolvable:$true] %s91_s26  ;;  %s118_s28 = int_to_ptr.hbm [resolvable:$true] %s117_s28 }
   0xf   :  { %s2815_s29 = smov 128   ;;  %s2816_s0 = smov 8  }
  0x10   :  { %97 = dma.hbm_to_vmem [thread:$0]  %s90_s25, 1024, %s92_s26, [#allocation10], %s2815_s29, %s2815_s29, %s2816_s0  }
  0x11   :  { %s142_s20 = sshll.u32 %s3639_s16, 4  ;;  %s2817_s1 = smov [#allocation12]   ;;  %s143_s20 = int_to_ptr.hbm [resolvable:$true] %s142_s20 }
  0x12   :  { %s119_s23 = sshll.u32 %s2817_s1, 4  ;;  %s2818_s11 = smov [#allocation15]   ;;  %s120_s23 = int_to_ptr.vmem [resolvable:$true] %s119_s23 }
  0x13   :  { %125 = dma.hbm_to_vmem [thread:$0]  %s118_s28, 32, %s120_s23, [#allocation13], %s2812_s22, %s2812_s22, %s2813_s2  }
  0x14   :  { %s144_s14 = sshll.u32 %s2818_s11, 4  ;;  %s48_s27 = sshll.u32 %s3630_s7, 4  ;;  %s145_s14 = int_to_ptr.vmem [resolvable:$true] %s144_s14  ;;  %s49_s27 = int_to_ptr.hbm [resolvable:$true] %s48_s27 }
  0x15   :  { %147 = dma.hbm_to_vmem [thread:$0]  %s143_s20, 16, %s145_s14, [#allocation16]  }
  0x16   :  { %s76_s16 = sshll.u32 %s3633_s10, 4  ;;  %s2819_s9 = smov [#allocation3]   ;;  %s77_s16 = int_to_ptr.hbm [resolvable:$true] %s76_s16 }
  0x17   :  { %s50_s30 = sshll.u32 %s2819_s9, 4  ;;  %s2820_s28 = smov [#allocation8]   ;;  %s51_s30 = int_to_ptr.vmem [resolvable:$true] %s50_s30 }
  0x18   :  { %56 = dma.hbm_to_vmem [thread:$0]  %s49_s27, 1024, %s51_s30, [#allocation4], %s2815_s29, %s2815_s29, %s2816_s0  }
  0x19   :  { %s78_s21 = sshll.u32 %s2820_s28, 4  ;;  %s102_s11 = sshll.u32 %s3635_s12, 4  ;;  %s79_s21 = int_to_ptr.vmem [resolvable:$true] %s78_s21  ;;  %s103_s11 = int_to_ptr.hbm [resolvable:$true] %s102_s11 }
  0x1a   :  { %84 = dma.hbm_to_vmem [thread:$0]  %s77_s16, 32, %s79_s21, [#allocation7], %s2812_s22, %s2812_s22, %s2813_s2  }
  0x1b   :  { %s131_s20 = sshll.u32 %s3638_s15, 4  ;;  %s2821_s14 = smov [#allocation11]   ;;  %s132_s20 = int_to_ptr.hbm [resolvable:$true] %s131_s20 }
  0x1c   :  { %s104_s24 = sshll.u32 %s2821_s14, 4  ;;  %s2822_s29 = smov [#allocation14]   ;;  %s105_s24 = int_to_ptr.vmem [resolvable:$true] %s104_s24 }
  0x1d   :  { %110 = dma.hbm_to_vmem [thread:$0]  %s103_s11, 32, %s105_s24, [#allocation10], %s2812_s22, %s2812_s22, %s2813_s2  }
  0x1e   :  { %s133_s12 = sshll.u32 %s2822_s29, 4  ;;  %s155_s25 = sshll.u32 %s3641_s18, 4  ;;  %s134_s12 = int_to_ptr.vmem [resolvable:$true] %s133_s12  ;;  %s156_s25 = int_to_ptr.hbm [resolvable:$true] %s155_s25 }
  0x1f   :  { %136 = dma.hbm_to_vmem [thread:$0]  %s132_s20, 16, %s134_s12, [#allocation13]  }
  0x20   :  { %s2823_s26 = smov [#allocation17]  }
  0x21   :  { %s157_s16 = sshll.u32 %s2823_s26, 4  ;;  %s158_s16 = int_to_ptr.vmem [resolvable:$true] %s157_s16 }
  0x22   :  { %160 = dma.hbm_to_vmem [thread:$0]  %s156_s25, 16, %s158_s16, [#allocation16]  }
  0x23   :  { %2799 = dma.done.wait [#allocation4], 1024  }
  0x24   :  { %2800 = vsyncadd [#allocation4], 4294966272 }
  0x25   :  { %2801 = dma.done.wait [#allocation7], 64  }
  0x26   :  { %2802 = vsyncadd [#allocation7], 4294967232 }
  0x27   :  { %2803 = dma.done.wait [#allocation10], 1056  }
  0x28   :  { %2804 = vsyncadd [#allocation10], 4294966240 }
  0x29   :  { %2805 = dma.done.wait [#allocation13], 48  }
  0x2a   :  { %2806 = vsyncadd [#allocation13], 4294967248 }
  0x2b   :  { %2807 = dma.done.wait [#allocation16], 32  }
  0x2c   :  { %2808 = vsyncadd [#allocation16], 4294967264  ;;  %s3649_s18 = sld [smem:[#allocation26_spill]]  ;;  %vm276_vm0 = vcmask 253952   ;;  %s2824_s11 = smov 32   ;;  %v2827_v41 = vmov 0.0  }
  0x2d   :  { %s3650_s12 = sld [smem:[#allocation25_spill]]  ;;  %s2826_s7 = smov 96   ;;  %277 = vst.msk [vmem:[#allocation2] sm:$0x1] %vm276_vm0, %v2827_v41  ;;  %vm317_vm1 = vcmask 258048   ;;  %v2828_v55 = vmov 32.0  }
  0x2e   :  { %278 = vst.msk [vmem:[#allocation2 + $0x8] sm:$0x1] %vm276_vm0, %v2827_v41  ;;  %s3651_s14 = sld [smem:[#allocation27_spill]]  ;;  %2465 = vrcp.f32 %v2828_v55  ;;  %vm387_vm7 = vcmask 261120   ;;  %s2830_s10 = smov 112   ;;  %vm450_vm10 = vcmask 64512  }
  0x2f   :  { %s3652_s30 = sld [smem:[#allocation28_spill]]  ;;  %s2831_s20 = smov 104   ;;  %vm665_vm11 = vcmask 36864   ;;  %vm760_vm12 = vcmask 1044480   ;;  %vm756_vm13 = vcmask 39936   ;;  %vm998_vm14 = vcmask 130048  }
  0x30   :  { %vm1001_vm15 = vcmask 195584   ;;  %s2305_s1 = sshll.u32 %s3642_s19, 4  ;;  %s2306_s1 = int_to_ptr.hbm [resolvable:$true] %s2305_s1 }
  0x32   :  { %v213_v0 = vld [vmem:[%s3649_s18 + $0x78] sm:$0xff]  ;;  %v212_v2 = vld [vmem:[%s3649_s18 + $0x70] sm:$0xff]  ;;  %v211_v4 = vld [vmem:[%s3649_s18 + $0x68] sm:$0xff] }
  0x33   :  { %v229_v1 = vld [vmem:[%s3649_s18 + $0xf8] sm:$0xff]  ;;  %236 = vmatpush.msra.mxu0 %v213_v0  ;;  %v228_v3 = vld [vmem:[%s3649_s18 + $0xf0] sm:$0xff]  ;;  %v227_v5 = vld [vmem:[%s3649_s18 + $0xe8] sm:$0xff] }
  0x34   :  { %256 = vmatpush.msra.mxu1 %v229_v1  ;;  %v210_v6 = vld [vmem:[%s3649_s18 + $0x60] sm:$0xff]  ;;  %v209_v8 = vld [vmem:[%s3649_s18 + $0x58] sm:$0xff]  ;;  %v208_v10 = vld [vmem:[%s3649_s18 + $0x50] sm:$0xff]  ;;  %v2466_v56 = vpop.eup %2465 }
  0x35   :  { %237 = vmatpush.msra.mxu0 %v212_v2  ;;  %v226_v7 = vld [vmem:[%s3649_s18 + $0xe0] sm:$0xff]  ;;  %v225_v9 = vld [vmem:[%s3649_s18 + $0xd8] sm:$0xff]  ;;  %v224_v11 = vld [vmem:[%s3649_s18 + $0xd0] sm:$0xff]  ;;  %v325_v57 = vmul.f32 32.0, %v2466_v56  ;;  %vm329_vm2 = vweird.f32 %v2466_v56 }
  0x36   :  { %257 = vmatpush.msra.mxu1 %v228_v3  ;;  %v207_v12 = vld [vmem:[%s3649_s18 + $0x48] sm:$0xff]  ;;  %v206_v14 = vld [vmem:[%s3649_s18 + $0x40] sm:$0xff]  ;;  %v205_v17 = vld [vmem:[%s3649_s18 + $0x38] sm:$0xff] }
  0x37   :  { %238 = vmatpush.msra.mxu0 %v211_v4  ;;  %v223_v13 = vld [vmem:[%s3649_s18 + $0xc8] sm:$0xff]  ;;  %v222_v15 = vld [vmem:[%s3649_s18 + $0xc0] sm:$0xff]  ;;  %v221_v18 = vld [vmem:[%s3649_s18 + $0xb8] sm:$0xff]  ;;  %v326_v58 = vsub.f32 1.0, %v325_v57 }
  0x38   :  { %258 = vmatpush.msra.mxu1 %v227_v5  ;;  %v197_v16 = vld [vmem:[%s3650_s12] sm:$0xf]  ;;  %v204_v19 = vld [vmem:[%s3649_s18 + $0x30] sm:$0xff]  ;;  %v203_v21 = vld [vmem:[%s3649_s18 + $0x28] sm:$0xff] }
  0x39   :  { %239 = vmatpush.msra.mxu0 %v210_v6  ;;  %231 = vst [vmem:[#allocation1] ss:$4 sm:$0xff] %v197_v16  ;;  %v220_v20 = vld [vmem:[%s3649_s18 + $0xb0] sm:$0xff]  ;;  %v219_v22 = vld [vmem:[%s3649_s18 + $0xa8] sm:$0xff]  ;;  %v202_v23 = vld [vmem:[%s3649_s18 + $0x20] sm:$0xff]  ;;  %v327_v59 = vmul.f32 %v2466_v56, %v326_v58 }
  0x3a   :  { %259 = vmatpush.msra.mxu1 %v226_v7  ;;  %v218_v24 = vld [vmem:[%s3649_s18 + $0xa0] sm:$0xff]  ;;  %v201_v25 = vld [vmem:[%s3649_s18 + $0x18] sm:$0xff]  ;;  %v200_v27 = vld [vmem:[%s3649_s18 + $0x10] sm:$0xff] }
  0x3b   :  { %240 = vmatpush.msra.mxu0 %v209_v8  ;;  %v217_v26 = vld [vmem:[%s3649_s18 + $0x98] sm:$0xff]  ;;  %v216_v28 = vld [vmem:[%s3649_s18 + $0x90] sm:$0xff]  ;;  %v199_v29 = vld [vmem:[%s3649_s18 + $0x8] sm:$0xff]  ;;  %v328_v60 = vadd.f32 %v2466_v56, %v327_v59 }
  0x3c   :  { %260 = vmatpush.msra.mxu1 %v225_v9  ;;  %v215_v30 = vld [vmem:[%s3649_s18 + $0x88] sm:$0xff]  ;;  %v198_v31 = vld [vmem:[%s3649_s18] sm:$0xff]  ;;  %v382_v8 = vld [vmem:[%s3628_s5 + $0x18] sm:$0xff] }
  0x3d   :  { %241 = vmatpush.msra.mxu0 %v208_v10  ;;  %v214_v32 = vld [vmem:[%s3649_s18 + $0x80] sm:$0xff]  ;;  %s2825_s18 = smov 64   ;;  %v3099_v61 = vsel %vm329_vm2, %v2466_v56, %v328_v60  ;;  %403 = vmatpush.msra.mxu2 %v382_v8  ;;  %v381_v9 = vld [vmem:[%s3628_s5 + $0x10] sm:$0xff]  ;;  %v380_v10 = vld [vmem:[%s3628_s5 + $0x8] sm:$0xff] }
  0x3e   :  { %261 = vmatpush.msra.mxu1 %v224_v11  ;;  %v312_v46 = vld [vmem:[%s3651_s14] sm:$0x1f]  ;;  %426 = vmatpush.msra.mxu3 %v382_v8  ;;  %s2832_s14 = smov 24  }
  0x3f   :  { %242 = vmatpush.msra.mxu0 %v207_v12  ;;  %404 = vmatpush.msra.mxu2 %v381_v9  ;;  %v379_v11 = vld [vmem:[%s3628_s5] sm:$0xff] }
  0x40   :  { %262 = vmatpush.msra.mxu1 %v223_v13  ;;  %v232_v33 = vld.sshfl [vmem:[#allocation1] sm:$0xff pattern:$0x73625140]  ;;  %v233_v34 = vld.sshfl [vmem:[#allocation1 + $0x8] sm:$0xff pattern:$0x73625140]  ;;  %427 = vmatpush.msra.mxu3 %v381_v9 }
  0x41   :  { %243 = vmatpush.msra.mxu0 %v206_v14  ;;  %405 = vmatpush.msra.mxu2 %v380_v10 }
  0x42   :  { %263 = vmatpush.msra.mxu1 %v222_v15  ;;  %428 = vmatpush.msra.mxu3 %v380_v10 }
  0x43   :  { %244 = vmatpush.msra.mxu0 %v205_v17  ;;  %406 = vmatpush.msra.mxu2 %v379_v11 }
  0x44   :  { %264 = vmatpush.msra.mxu1 %v221_v18  ;;  %429 = vmatpush.msra.mxu3 %v379_v11 }
  0x45   :  { %245 = vmatpush.msra.mxu0 %v204_v19 }
  0x46   :  { %265 = vmatpush.msra.mxu1 %v220_v20 }
  0x47   :  { %246 = vmatpush.msra.mxu0 %v203_v21 }
  0x48   :  { %266 = vmatpush.msra.mxu1 %v219_v22 }
  0x49   :  { %247 = vmatpush.msra.mxu0 %v202_v23 }
  0x4a   :  { %267 = vmatpush.msra.mxu1 %v218_v24 }
  0x4b   :  { %248 = vmatpush.msra.mxu0 %v201_v25 }
  0x4c   :  { %268 = vmatpush.msra.mxu1 %v217_v26  ;;  %v2447_v26 = vld [vmem:[%s3652_s30] ss:$0 sm:$0xff] }
  0x4d   :  { %249 = vmatpush.msra.mxu0 %v200_v27 }
  0x4e   :  { %269 = vmatpush.msra.mxu1 %v216_v28 }
  0x4f   :  { %250 = vmatpush.msra.mxu0 %v199_v29 }
  0x50   :  { %270 = vmatpush.msra.mxu1 %v215_v30  ;;  %v2448_v30 = vld [vmem:[%s3627_s4] ss:$0 sm:$0xff] }
  0x51   :  { %251 = vmatpush.msra.mxu0 %v198_v31 }
  0x52   :  { %271 = vmatpush.msra.mxu1 %v214_v32  ;;  %252 = vmatmul.f32.vlgmr.msra.gmra.mxu0 %v232_v33 }
  0x53   :  { %272 = vmatmul.f32.vlgmr.msra.gmra.mxu1 %v233_v34 }
  0xcf   :  { %v253_v35 = vpop.f32.mrf.mxu0 }
  0xd0   :  { %v273_v36 = vpop.f32.mrf.mxu1 }
  0xd1   :  { %v274_v37 = vadd.f32 %v273_v36, %v253_v35 }
  0xd3   :  { %v280_v38 = vrot.slane %v274_v37, 1  ;;  %282 = vst.msk [vmem:[#allocation2 + $0x1] sm:$0x1] %vm276_vm0, %v274_v37  ;;  %v284_v39 = vperm.slane %v274_v37, 0 }
  0xd5   :  { %283 = vst.msk [vmem:[#allocation2 + $0x9] sm:$0x1] %vm276_vm0, %v280_v38  ;;  %302 = vrot.lane.b32.xlu2 %v284_v39, %s2824_s11  ;;  %294 = vrot.lane.b32.xlu1 %v284_v39, %s2825_s18  ;;  %v285_v40 = vperm.slane %v280_v38, 0 }
  0xd6   :  { %286 = vrot.lane.b32.xlu0 %v284_v39, %s2826_s7 }
  0xdd   :  { %304 = vrot.lane.b32.xlu2 %v285_v40, %s2824_s11  ;;  %296 = vrot.lane.b32.xlu1 %v285_v40, %s2825_s18  ;;  %s2829_s11 = smov 120  }
  0xde   :  { %288 = vrot.lane.b32.xlu0 %v285_v40, %s2826_s7  ;;  %v2449_v40 = vld [vmem:[%s3629_s6] ss:$0 sm:$0xff] }
 0x12f   :  { %v303_v42 = vpop.permute.xlu2 %302 }
 0x130   :  { %308 = vst.msk [vmem:[#allocation2 + $0x4] sm:$0x1] %vm276_vm0, %v303_v42 }
 0x137   :  { %v305_v43 = vpop.permute.xlu2 %304 }
 0x138   :  { %309 = vst.msk [vmem:[#allocation2 + $0xc] sm:$0x1] %vm276_vm0, %v305_v43 }
 0x147   :  { %v295_v44 = vpop.permute.xlu1 %294 }
 0x148   :  { %300 = vst.msk [vmem:[#allocation2 + $0x3] sm:$0x1] %vm276_vm0, %v295_v44  ;;  %v287_v45 = vpop.permute.xlu0 %286 }
 0x149   :  { %292 = vst.msk [vmem:[#allocation2 + $0x2] sm:$0x1] %vm276_vm0, %v287_v45 }
 0x14f   :  { %v297_v47 = vpop.permute.xlu1 %296 }
 0x150   :  { %301 = vst.msk [vmem:[#allocation2 + $0xb] sm:$0x1] %vm276_vm0, %v297_v47  ;;  %v289_v48 = vpop.permute.xlu0 %288  ;;  %v310_v49 = vld [vmem:[#allocation2] sm:$0x1f] }
 0x151   :  { %293 = vst.msk [vmem:[#allocation2 + $0xa] sm:$0x1] %vm276_vm0, %v289_v48  ;;  %v3091_v50 = vadd.f32 %v312_v46, %v310_v49 }
 0x153   :  { %v318_v51 = vsel %vm317_vm1, %v3091_v50, 0.0 }
 0x154   :  { %319 = vadd.xlane.f32.xlu0 %v318_v51 }
 0x158   :  { %v311_v52 = vld [vmem:[#allocation2 + $0x8] sm:$0x1f] }
 0x159   :  { %v3095_v53 = vadd.f32 %v312_v46, %v311_v52 }
 0x15b   :  { %v321_v54 = vsel %vm317_vm1, %v3095_v53, 0.0 }
 0x15c   :  { %322 = vadd.xlane.f32.xlu1 %v321_v54 }
 0x1c7   :  { %v320_v62 = vpop.xlane.xlu0 %319 }
 0x1c8   :  { %v331_v63 = vmul.f32 %v3099_v61, %v320_v62 }
 0x1ca   :  { %v333_v0 = vsub.f32 %v3091_v50, %v331_v63 }
 0x1cc   :  { %v335_v1 = vmul.f32 %v333_v0, %v333_v0 }
 0x1ce   :  { %v337_v2 = vsel %vm317_vm1, %v335_v1, 0.0 }
 0x1cf   :  { %338 = vadd.xlane.f32.xlu2 %v337_v2  ;;  %v323_v3 = vpop.xlane.xlu1 %322 }
 0x1d0   :  { %v332_v4 = vmul.f32 %v3099_v61, %v323_v3 }
 0x1d2   :  { %v334_v5 = vsub.f32 %v3095_v53, %v332_v4 }
 0x1d4   :  { %v336_v6 = vmul.f32 %v334_v5, %v334_v5 }
 0x1d6   :  { %v340_v7 = vsel %vm317_vm1, %v336_v6, 0.0 }
 0x1d7   :  { %341 = vadd.xlane.f32.xlu2 %v340_v7 }
 0x242   :  { %v339_v12 = vpop.xlane.xlu2 %338 }
 0x243   :  { %v343_v13 = vmul.f32 %v339_v12, %v3099_v61 }
 0x245   :  { %v345_v14 = vadd.f32 1e-06, %v343_v13 }
 0x247   :  { %2467 = vrsqrt.f32 %v345_v14  ;;  %vm353_vm4 = vweird.f32 %v345_v14 }
 0x24a   :  { %v342_v15 = vpop.xlane.xlu2 %341 }
 0x24b   :  { %v344_v16 = vmul.f32 %v342_v15, %v3099_v61 }
 0x24d   :  { %v2468_v17 = vpop.eup %2467  ;;  %v346_v18 = vadd.f32 1e-06, %v344_v16 }
 0x24e   :  { %v348_v19 = vmul.f32 %v2468_v17, %v345_v14  ;;  %vm354_vm3 = vweird.f32 %v2468_v17 }
 0x24f   :  { %2469 = vrsqrt.f32 %v346_v18  ;;  %vm355_vm5 = vmor %vm353_vm4, %vm354_vm3  ;;  %vm363_vm8 = vweird.f32 %v346_v18 }
 0x250   :  { %v349_v20 = vmul.f32 %v2468_v17, %v348_v19 }
 0x252   :  { %v350_v21 = vmul.f32 0.5, %v349_v20 }
 0x254   :  { %v351_v22 = vsub.f32 1.5, %v350_v21 }
 0x255   :  { %v2470_v23 = vpop.eup %2469 }
 0x256   :  { %v352_v24 = vmul.f32 %v2468_v17, %v351_v22  ;;  %v358_v25 = vmul.f32 %v2470_v23, %v346_v18  ;;  %vm364_vm6 = vweird.f32 %v2470_v23 }
 0x257   :  { %vm365_vm9 = vmor %vm363_vm8, %vm364_vm6 }
 0x258   :  { %v356_v27 = vsel %vm355_vm5, %v2468_v17, %v352_v24  ;;  %v359_v28 = vmul.f32 %v2470_v23, %v358_v25 }
 0x259   :  { %v367_v29 = vmul.f32 %v356_v27, %v333_v0 }
 0x25a   :  { %v360_v31 = vmul.f32 0.5, %v359_v28 }
 0x25b   :  { %v372_v32 = vmul.f32 %v2447_v26, %v367_v29 }
 0x25c   :  { %v361_v33 = vsub.f32 1.5, %v360_v31 }
 0x25d   :  { %v377_v34 = vadd.f32 %v2448_v30, %v372_v32 }
 0x25e   :  { %v362_v35 = vmul.f32 %v2470_v23, %v361_v33 }
 0x25f   :  { %2322 = vmatmul.msk.f32.vlgmr.msra.gmra.mxu2 %vm387_vm7, %v377_v34 }
 0x260   :  { %v366_v36 = vsel %vm365_vm9, %v2470_v23, %v362_v35 }
 0x261   :  { %v368_v37 = vmul.f32 %v366_v36, %v334_v5 }
 0x263   :  { %v373_v38 = vmul.f32 %v2447_v26, %v368_v37 }
 0x265   :  { %v378_v39 = vadd.f32 %v2448_v30, %v373_v38 }
 0x267   :  { %2323 = vmatmul.msk.f32.vlgmr.msra.gmra.mxu3 %vm387_vm7, %v378_v39 }
 0x2e2   :  { %v408_v41 = vpop.f32.mrf.mxu2 }
 0x2e3   :  { %v3132_v42 = vadd.f32 %v2449_v40, %v408_v41 }
 0x2e5   :  { %436 = vrot.lane.b32.xlu0 %v3132_v42, %s2829_s11  ;;  %440 = vrot.lane.b32.xlu2 %v3132_v42, %s2830_s10 }
 0x2ea   :  { %v431_v43 = vpop.f32.mrf.mxu3 }
 0x2eb   :  { %v3138_v44 = vadd.f32 %v2449_v40, %v431_v43 }
 0x2ed   :  { %448 = vrot.lane.b32.xlu2 %v3132_v42, %s2826_s7  ;;  %442 = vrot.lane.b32.xlu0 %v3138_v44, %s2830_s10 }
 0x2ee   :  { %438 = vrot.lane.b32.xlu1 %v3138_v44, %s2829_s11 }
 0x2f5   :  { %446 = vrot.lane.b32.xlu0 %v3138_v44, %s2831_s20 }
 0x2f6   :  { %444 = vrot.lane.b32.xlu1 %v3132_v42, %s2831_s20 }
 0x2fe   :  { %475 = vrot.lane.b32.xlu1 %v3138_v44, %s2826_s7 }
 0x33f   :  { %v3152_v45 = vpop.permute.xlu2 %440 }
 0x340   :  { %553 = vrot.lane.b32.xlu1 %v3152_v45, %s2826_s7 }
 0x347   :  { %v449_v46 = vpop.permute.xlu2 %448 }
 0x348   :  { %2324 = vmatpush.xpose.msk.msrb.mxu2 %vm450_vm10, %v449_v46 }
 0x34b   :  { %2325 = vmatmul.msk.f32.vlgmr.msrb.gmra.mxu2 %vm450_vm10, %v3132_v42 }
 0x357   :  { %v3159_v47 = vpop.permute.xlu0 %436 }
 0x358   :  { %501 = vrot.lane.b32.xlu0 %v3159_v47, %s2826_s7 }
 0x35f   :  { %v3163_v48 = vpop.permute.xlu0 %442 }
 0x360   :  { %v3165_v49 = vpop.permute.xlu1 %438  ;;  %579 = vrot.lane.b32.xlu0 %v3163_v48, %s2826_s7 }
 0x361   :  { %527 = vrot.lane.b32.xlu2 %v3165_v49, %s2826_s7 }
 0x367   :  { %v3171_v51 = vpop.permute.xlu0 %446 }
 0x368   :  { %v3173_v52 = vpop.permute.xlu1 %444  ;;  %631 = vrot.lane.b32.xlu1 %v3171_v51, %s2826_s7 }
 0x369   :  { %605 = vrot.lane.b32.xlu2 %v3173_v52, %s2826_s7 }
 0x370   :  { %v476_v54 = vpop.permute.xlu1 %475 }
 0x371   :  { %2326 = vmatpush.xpose.msk.msrb.mxu3 %vm450_vm10, %v476_v54 }
 0x374   :  { %2327 = vmatmul.msk.f32.vlgmr.msrb.gmra.mxu3 %vm450_vm10, %v3138_v44 }
 0x3b2   :  { %v554_v57 = vpop.permute.xlu1 %553 }
 0x3bb   :  { %v528_v55 = vpop.permute.xlu2 %527 }
 0x3bc   :  { %2330 = vmatpush.xpose.msk.msra.mxu3 %vm450_vm10, %v528_v55 }
 0x3bf   :  { %2331 = vmatmul.msk.f32.vlgmr.msra.gmra.mxu3 %vm450_vm10, %v3165_v49 }
 0x3c3   :  { %v606_v58 = vpop.permute.xlu2 %605 }
 0x3ca   :  { %v502_v56 = vpop.permute.xlu0 %501 }
 0x3cb   :  { %2328 = vmatpush.xpose.msk.msra.mxu2 %vm450_vm10, %v502_v56 }
 0x3ce   :  { %v472_v59 = vpop.f32.mrf.mxu2  ;;  %2329 = vmatmul.msk.f32.vlgmr.msra.gmra.mxu2 %vm450_vm10, %v3159_v47 }
 0x3cf   :  { %2332 = vmatpush.xpose.msk.msrb.mxu2 %vm450_vm10, %v554_v57  ;;  %v657_v60 = vmul.f32 0.35355338, %v472_v59 }
 0x3d1   :  { %v666_v62 = vsel %vm665_vm11, %v657_v60, -inf }
 0x3d2   :  { %v580_v63 = vpop.permute.xlu0 %579  ;;  %667 = vmax.xlane.f32.xlu0 %v666_v62 }
 0x3d3   :  { %2336 = vmatpush.xpose.msk.msra.mxu2 %vm450_vm10, %v606_v58  ;;  %2334 = vmatpush.xpose.msk.msrb.mxu3 %vm450_vm10, %v580_v63 }
 0x3d6   :  { %2333 = vmatmul.msk.f32.vlgmr.msrb.gmra.mxu2 %vm450_vm10, %v3152_v45  ;;  %2335 = vmatmul.msk.f32.vlgmr.msrb.gmra.mxu3 %vm450_vm10, %v3163_v48 }
 0x3da   :  { %v632_v0 = vpop.permute.xlu1 %631 }
 0x3db   :  { %2338 = vmatpush.xpose.msk.msra.mxu3 %vm450_vm10, %v632_v0 }
 0x3de   :  { %2337 = vmatmul.msk.f32.vlgmr.msra.gmra.mxu2 %vm450_vm10, %v3173_v52  ;;  %2339 = vmatmul.msk.f32.vlgmr.msra.gmra.mxu3 %vm450_vm10, %v3171_v51 }
 0x3f7   :  { %v498_v1 = vpop.f32.mrf.mxu3 }
 0x3f8   :  { %v658_v2 = vmul.f32 0.35355338, %v498_v1 }
 0x3fa   :  { %v669_v3 = vsel %vm665_vm11, %v658_v2, -inf }
 0x3fb   :  { %670 = vmax.xlane.f32.xlu2 %v669_v3 }
 0x442   :  { %v550_v4 = vpop.f32.mrf.mxu3 }
 0x443   :  { %v660_v5 = vmul.f32 0.35355338, %v550_v4 }
 0x445   :  { %v675_v6 = vsel %vm665_vm11, %v660_v5, -inf  ;;  %v668_v26 = vpop.xlane.xlu0 %667 }
 0x446   :  { %676 = vmax.xlane.f32.xlu0 %v675_v6  ;;  %v690_v28 = vsub.f32 %v657_v60, %v668_v26 }
 0x448   :  { %v698_v29 = vmul.f32 1.442695, %v690_v28 }
 0x451   :  { %v524_v7 = vpop.f32.mrf.mxu2 }
 0x452   :  { %v659_v8 = vmul.f32 0.35355338, %v524_v7 }
 0x454   :  { %v672_v9 = vsel %vm665_vm11, %v659_v8, -inf }
 0x455   :  { %673 = vmax.xlane.f32.xlu1 %v672_v9 }
 0x459   :  { %v576_v10 = vpop.f32.mrf.mxu2  ;;  %v602_v11 = vpop.f32.mrf.mxu3 }
 0x45a   :  { %v661_v12 = vmul.f32 0.35355338, %v576_v10  ;;  %783 = vrot.lane.b32.xlu0 %v3138_v44, %s2825_s18  ;;  %v662_v13 = vmul.f32 0.35355338, %v602_v11 }
 0x45c   :  { %v678_v14 = vsel %vm665_vm11, %v661_v12, -inf  ;;  %v681_v15 = vsel %vm665_vm11, %v662_v13, -inf }
 0x45d   :  { %679 = vmax.xlane.f32.xlu2 %v678_v14  ;;  %682 = vmax.xlane.f32.xlu1 %v681_v15 }
 0x461   :  { %v654_v16 = vpop.f32.mrf.mxu3  ;;  %v628_v24 = vpop.f32.mrf.mxu2 }
 0x462   :  { %v3208_v17 = vmul.f32 0.35355338, %v654_v16  ;;  %v663_v25 = vmul.f32 0.35355338, %v628_v24 }
 0x464   :  { %v687_v18 = vsel %vm665_vm11, %v3208_v17, -inf  ;;  %v684_v27 = vsel %vm665_vm11, %v663_v25, -inf }
 0x465   :  { %688 = vmax.xlane.f32.xlu2 %v687_v18 }
 0x46e   :  { %v671_v19 = vpop.xlane.xlu2 %670 }
 0x46f   :  { %v691_v20 = vsub.f32 %v658_v2, %v671_v19 }
 0x471   :  { %v700_v21 = vmul.f32 1.442695, %v691_v20 }
 0x473   :  { %2471 = vpow2.f32 %v700_v21 }
 0x474   :  { %2473 = vpow2.f32 %v698_v29 }
 0x476   :  { %754 = vrot.lane.b32.xlu1 %v3132_v42, %s2825_s18 }
 0x479   :  { %v2472_v22 = vpop.eup %2471 }
 0x47a   :  { %v717_v23 = vsel %vm665_vm11, %v2472_v22, 0.0  ;;  %v3216_v30 = vpop.eup %2473 }
 0x47b   :  { %v714_v31 = vsel %vm665_vm11, %v3216_v30, 0.0 }
 0x484   :  { %718 = vadd.xlane.f32.xlu0 %v717_v23 }
 0x48c   :  { %685 = vmax.xlane.f32.xlu0 %v684_v27 }
 0x4a0   :  { %715 = vadd.xlane.f32.xlu1 %v714_v31 }
 0x4b9   :  { %v677_v32 = vpop.xlane.xlu0 %676 }
 0x4ba   :  { %v693_v33 = vsub.f32 %v660_v5, %v677_v32 }
 0x4bc   :  { %v704_v34 = vmul.f32 1.442695, %v693_v33 }
 0x4be   :  { %2475 = vpow2.f32 %v704_v34 }
 0x4c4   :  { %v3220_v35 = vpop.eup %2475 }
 0x4c5   :  { %v723_v36 = vsel %vm665_vm11, %v3220_v35, 0.0 }
 0x4c6   :  { %724 = vadd.xlane.f32.xlu1 %v723_v36 }
 0x4c8   :  { %v674_v37 = vpop.xlane.xlu1 %673 }
 0x4c9   :  { %v692_v38 = vsub.f32 %v659_v8, %v674_v37 }
 0x4cb   :  { %v702_v39 = vmul.f32 1.442695, %v692_v38 }
 0x4cc   :  { %v784_v40 = vpop.permute.xlu0 %783 }
 0x4cd   :  { %2477 = vpow2.f32 %v702_v39  ;;  %2342 = vmatpush.msk.msrb.mxu3 %vm760_vm12, %v784_v40 }
 0x4d0   :  { %v683_v41 = vpop.xlane.xlu1 %682  ;;  %v680_v42 = vpop.xlane.xlu2 %679 }
 0x4d1   :  { %v695_v43 = vsub.f32 %v662_v13, %v683_v41  ;;  %v694_v44 = vsub.f32 %v661_v12, %v680_v42  ;;  %v1007_v41 = vld [vmem:[#allocation3 + $0x18] sm:$0xff]  ;;  %v1006_v42 = vld [vmem:[#allocation3 + $0x10] sm:$0xff] }
 0x4d3   :  { %v3225_v46 = vpop.eup %2477  ;;  %v708_v54 = vmul.f32 1.442695, %v695_v43  ;;  %v706_v55 = vmul.f32 1.442695, %v694_v44  ;;  %v1005_v43 = vld [vmem:[#allocation3 + $0x8] sm:$0xff]  ;;  %v1004_v44 = vld [vmem:[#allocation3] sm:$0xff] }
 0x4d4   :  { %v720_v56 = vsel %vm665_vm11, %v3225_v46, 0.0 }
 0x4d5   :  { %2479 = vpow2.f32 %v708_v54  ;;  %721 = vadd.xlane.f32.xlu2 %v720_v56 }
 0x4d6   :  { %2481 = vpow2.f32 %v706_v55 }
 0x4d8   :  { %v689_v1 = vpop.xlane.xlu2 %688 }
 0x4db   :  { %v2480_v57 = vpop.eup %2479 }
 0x4dc   :  { %v2482_v58 = vpop.eup %2481  ;;  %v729_v59 = vsel %vm665_vm11, %v2480_v57, 0.0 }
 0x4dd   :  { %730 = vadd.xlane.f32.xlu2 %v729_v59  ;;  %v726_v60 = vsel %vm665_vm11, %v2482_v58, 0.0 }
 0x4de   :  { %727 = vadd.xlane.f32.xlu0 %v726_v60 }
 0x4df   :  { %864 = vrot.lane.b32.xlu1 %v3152_v45, %s2825_s18 }
 0x4e7   :  { %918 = vrot.lane.b32.xlu1 %v3173_v52, %s2825_s18  ;;  %v697_v52 = vsub.f32 %v3208_v17, %v689_v1 }
 0x4e8   :  { %v755_v62 = vpop.permute.xlu1 %754 }
 0x4e9   :  { %2340 = vmatpush.msk.msrb.mxu2 %vm760_vm12, %v755_v62 }
 0x4f2   :  { %837 = vrot.lane.b32.xlu0 %v3165_v49, %s2825_s18  ;;  %v712_v49 = vmul.f32 1.442695, %v697_v52 }
 0x4f7   :  { %v719_v63 = vpop.xlane.xlu0 %718 }
 0x4f8   :  { %2483 = vrcp.f32 %v719_v63 }
 0x4fa   :  { %891 = vrot.lane.b32.xlu0 %v3163_v48, %s2825_s18 }
 0x4fe   :  { %v2484_v0 = vpop.eup %2483 }
 0x4ff   :  { %v747_v2 = vmul.f32 %v2484_v0, %v2472_v22  ;;  %v686_v3 = vpop.xlane.xlu0 %685 }
 0x500   :  { %v696_v45 = vsub.f32 %v663_v25, %v686_v3 }
 0x501   :  { %2343 = vmatmul.msk.f32.vlgmr.msrb.gmra.mxu3 %vm756_vm13, %v747_v2  ;;  %v2450_v2 = vld [vmem:[%s3631_s8] ss:$0 sm:$0xff] }
 0x502   :  { %v710_v4 = vmul.f32 1.442695, %v696_v45  ;;  %945 = vrot.lane.b32.xlu0 %v3171_v51, %s2825_s18 }
 0x504   :  { %2485 = vpow2.f32 %v710_v4 }
 0x505   :  { %2487 = vpow2.f32 %v712_v49 }
 0x50a   :  { %v2486_v5 = vpop.eup %2485 }
 0x50b   :  { %v732_v48 = vsel %vm665_vm11, %v2486_v5, 0.0  ;;  %v2488_v6 = vpop.eup %2487 }
 0x50c   :  { %733 = vadd.xlane.f32.xlu2 %v732_v48  ;;  %v735_v8 = vsel %vm665_vm11, %v2488_v6, 0.0 }
 0x513   :  { %v716_v7 = vpop.xlane.xlu1 %715 }
 0x514   :  { %2489 = vrcp.f32 %v716_v7  ;;  %736 = vadd.xlane.f32.xlu2 %v735_v8 }
 0x51a   :  { %v2490_v9 = vpop.eup %2489 }
 0x51b   :  { %v746_v10 = vmul.f32 %v2490_v9, %v3216_v30 }
 0x51d   :  { %2341 = vmatmul.msk.f32.vlgmr.msrb.gmra.mxu2 %vm756_vm13, %v746_v10 }
 0x52c   :  { %810 = vrot.lane.b32.xlu2 %v3159_v47, %s2825_s18 }
 0x539   :  { %v725_v51 = vpop.xlane.xlu1 %724 }
 0x548   :  { %v722_v13 = vpop.xlane.xlu2 %721 }
 0x550   :  { %v731_v16 = vpop.xlane.xlu2 %730 }
 0x551   :  { %v865_v11 = vpop.permute.xlu1 %864  ;;  %v728_v12 = vpop.xlane.xlu0 %727 }
 0x552   :  { %2491 = vrcp.f32 %v728_v12  ;;  %2348 = vmatpush.msk.msra.mxu2 %vm760_vm12, %v865_v11 }
 0x553   :  { %2493 = vrcp.f32 %v725_v51 }
 0x554   :  { %2495 = vrcp.f32 %v731_v16  ;;  %1023 = vmatpush.msrb.mxu2 %v1007_v41  ;;  %v1119_v16 = vld [vmem:[#allocation9 + $0x8] sm:$0xff] }
 0x555   :  { %2497 = vrcp.f32 %v722_v13 }
 0x556   :  { %1024 = vmatpush.msrb.mxu2 %v1006_v42 }
 0x558   :  { %v2492_v14 = vpop.eup %2491  ;;  %1025 = vmatpush.msrb.mxu2 %v1005_v43 }
 0x559   :  { %v750_v15 = vmul.f32 %v2492_v14, %v2482_v58  ;;  %v2494_v17 = vpop.eup %2493  ;;  %v919_v30 = vpop.permute.xlu1 %918  ;;  %v1121_v14 = vld [vmem:[#allocation9 + $0x18] sm:$0xff] }
 0x55a   :  { %v749_v19 = vmul.f32 %v2494_v17, %v3220_v35  ;;  %v2496_v47 = vpop.eup %2495  ;;  %1026 = vmatpush.msrb.mxu2 %v1004_v44  ;;  %v1118_v17 = vld [vmem:[#allocation9] sm:$0xff] }
 0x55b   :  { %2349 = vmatmul.msk.f32.vlgmr.msra.gmra.mxu2 %vm756_vm13, %v750_v15  ;;  %v751_v20 = vmul.f32 %v2496_v47, %v2480_v57  ;;  %v2498_v25 = vpop.eup %2497  ;;  %v1120_v15 = vld [vmem:[#allocation9 + $0x10] sm:$0xff] }
 0x55c   :  { %v748_v29 = vmul.f32 %v2498_v25, %v3225_v46 }
 0x564   :  { %v838_v18 = vpop.permute.xlu0 %837 }
 0x565   :  { %2346 = vmatpush.msk.msrb.mxu1 %vm760_vm12, %v838_v18 }
 0x566   :  { %2347 = vmatmul.msk.f32.vlgmr.msrb.gmra.mxu1 %vm756_vm13, %v749_v19 }
 0x56c   :  { %v892_v21 = vpop.permute.xlu0 %891 }
 0x56d   :  { %2350 = vmatpush.msk.msra.mxu3 %vm760_vm12, %v892_v21  ;;  %v1204_v21 = vld [vmem:[%s3636_s13 + $0x70] sm:$0xff] }
 0x56e   :  { %2351 = vmatmul.msk.f32.vlgmr.msra.gmra.mxu3 %vm756_vm13, %v751_v20  ;;  %v1205_v20 = vld [vmem:[%s3636_s13 + $0x78] sm:$0xff] }
 0x56f   :  { %1046 = vmatpush.msrb.mxu3 %v1007_v41  ;;  %1206 = vmatpush.msra.mxu2 %v1205_v20 }
 0x571   :  { %1047 = vmatpush.msrb.mxu3 %v1006_v42  ;;  %1207 = vmatpush.msra.mxu2 %v1204_v21 }
 0x573   :  { %1048 = vmatpush.msrb.mxu3 %v1005_v43 }
 0x574   :  { %v946_v22 = vpop.permute.xlu0 %945 }
 0x575   :  { %2354 = vmatpush.msk.msra.mxu1 %vm760_vm12, %v946_v22  ;;  %1049 = vmatpush.msrb.mxu3 %v1004_v44  ;;  %v1203_v22 = vld [vmem:[%s3636_s13 + $0x68] sm:$0xff] }
 0x576   :  { %1208 = vmatpush.msra.mxu2 %v1203_v22 }
 0x577   :  { %1164 = vmatpush.msrb.mxu1 %v1121_v14  ;;  %1226 = vmatpush.msra.mxu3 %v1205_v20 }
 0x579   :  { %1165 = vmatpush.msrb.mxu1 %v1120_v15  ;;  %1227 = vmatpush.msra.mxu3 %v1204_v21 }
 0x57b   :  { %1166 = vmatpush.msrb.mxu1 %v1119_v16  ;;  %1228 = vmatpush.msra.mxu3 %v1203_v22 }
 0x57d   :  { %1167 = vmatpush.msrb.mxu1 %v1118_v17 }
 0x57f   :  { %v734_v23 = vpop.xlane.xlu2 %733 }
 0x584   :  { %v807_v36 = vpop.f32.mrf.mxu3 }
 0x587   :  { %v737_v24 = vpop.xlane.xlu2 %736 }
 0x588   :  { %2499 = vrcp.f32 %v737_v24 }
 0x589   :  { %2501 = vrcp.f32 %v734_v23 }
 0x58e   :  { %v2500_v26 = vpop.eup %2499 }
 0x58f   :  { %v753_v27 = vmul.f32 %v2500_v26, %v2488_v6  ;;  %v811_v28 = vpop.permute.xlu2 %810  ;;  %v2502_v31 = vpop.eup %2501 }
 0x590   :  { %2344 = vmatpush.msk.msrb.mxu0 %vm760_vm12, %v811_v28  ;;  %v752_v32 = vmul.f32 %v2502_v31, %v2486_v5 }
 0x591   :  { %2345 = vmatmul.msk.f32.vlgmr.msrb.gmra.mxu0 %vm756_vm13, %v748_v29  ;;  %2355 = vmatmul.msk.f32.vlgmr.msra.gmra.mxu1 %vm756_vm13, %v753_v27 }
 0x592   :  { %2352 = vmatpush.msk.msra.mxu0 %vm760_vm12, %v919_v30 }
 0x594   :  { %1141 = vmatpush.msrb.mxu0 %v1121_v14 }
 0x596   :  { %1142 = vmatpush.msrb.mxu0 %v1120_v15 }
 0x598   :  { %1143 = vmatpush.msrb.mxu0 %v1119_v16 }
 0x599   :  { %2353 = vmatmul.msk.f32.vlgmr.msra.gmra.mxu0 %vm756_vm13, %v752_v32 }
 0x59a   :  { %1144 = vmatpush.msrb.mxu0 %v1118_v17 }
 0x5a0   :  { %v780_v33 = vpop.f32.mrf.mxu2 }
 0x5de   :  { %v888_v34 = vpop.f32.mrf.mxu2 }
 0x5df   :  { %982 = vrot.lane.b32.xlu0 %v888_v34, %s2812_s22  ;;  %v2451_v34 = vld [vmem:[#allocation6] ss:$0 sm:$0xff] }
 0x5e3   :  { %v861_v35 = vpop.f32.mrf.mxu1 }
 0x5e4   :  { %976 = vrot.lane.b32.xlu2 %v861_v35, %s2816_s0 }
 0x5f1   :  { %v915_v39 = vpop.f32.mrf.mxu3 }
 0x60e   :  { %v834_v37 = vpop.f32.mrf.mxu0  ;;  %v969_v38 = vpop.f32.mrf.mxu1 }
 0x60f   :  { %992 = vrot.lane.b32.xlu0 %v969_v38, %s2832_s14  ;;  %974 = vrot.lane.b32.xlu1 %v834_v37, %s2816_s0 }
 0x616   :  { %v942_v40 = vpop.f32.mrf.mxu0 }
 0x617   :  { %984 = vrot.lane.b32.xlu1 %v915_v39, %s2812_s22  ;;  %990 = vrot.lane.b32.xlu2 %v942_v40, %s2832_s14  ;;  %v2452_v39 = vld [vmem:[#allocation8] ss:$0 sm:$0xff] }
 0x63e   :  { %v977_v46 = vpop.permute.xlu2 %976 }
 0x63f   :  { %v997_v60 = vsel %vm450_vm10, %v807_v36, %v977_v46 }
 0x651   :  { %v983_v55 = vpop.permute.xlu0 %982 }
 0x671   :  { %v991_v57 = vpop.permute.xlu2 %990 }
 0x681   :  { %v975_v54 = vpop.permute.xlu1 %974  ;;  %v993_v63 = vpop.permute.xlu0 %992 }
 0x682   :  { %v996_v56 = vsel %vm450_vm10, %v780_v33, %v975_v54 }
 0x683   :  { %v999_v58 = vsel %vm998_vm14, %v996_v56, %v983_v55  ;;  %v1202_v56 = vld [vmem:[%s3636_s13 + $0x60] sm:$0xff] }
 0x684   :  { %v1002_v59 = vsel %vm1001_vm15, %v999_v58, %v991_v57  ;;  %1209 = vmatpush.msra.mxu2 %v1202_v56  ;;  %1229 = vmatpush.msra.mxu3 %v1202_v56  ;;  %v1201_v57 = vld [vmem:[%s3636_s13 + $0x58] sm:$0xff]  ;;  %v1200_v58 = vld [vmem:[%s3636_s13 + $0x50] sm:$0xff] }
 0x685   :  { %2356 = vmatmul.msk.f32.vlgmr.msrb.gmra.mxu2 %vm387_vm7, %v1002_v59  ;;  %v1199_v59 = vld [vmem:[%s3636_s13 + $0x48] sm:$0xff] }
 0x686   :  { %1210 = vmatpush.msra.mxu2 %v1201_v57  ;;  %1230 = vmatpush.msra.mxu3 %v1201_v57 }
 0x688   :  { %1211 = vmatpush.msra.mxu2 %v1200_v58  ;;  %1231 = vmatpush.msra.mxu3 %v1200_v58 }
 0x689   :  { %v985_v62 = vpop.permute.xlu1 %984 }
 0x68a   :  { %v1000_v0 = vsel %vm998_vm14, %v997_v60, %v985_v62  ;;  %1212 = vmatpush.msra.mxu2 %v1199_v59  ;;  %1232 = vmatpush.msra.mxu3 %v1199_v59  ;;  %v1198_v60 = vld [vmem:[%s3636_s13 + $0x40] sm:$0xff]  ;;  %v1197_v62 = vld [vmem:[%s3636_s13 + $0x38] sm:$0xff] }
 0x68b   :  { %v1003_v1 = vsel %vm1001_vm15, %v1000_v0, %v993_v63  ;;  %v1196_v63 = vld [vmem:[%s3636_s13 + $0x30] sm:$0xff]  ;;  %v1195_v0 = vld [vmem:[%s3636_s13 + $0x28] sm:$0xff] }
 0x68c   :  { %2357 = vmatmul.msk.f32.vlgmr.msrb.gmra.mxu3 %vm387_vm7, %v1003_v1  ;;  %1213 = vmatpush.msra.mxu2 %v1198_v60  ;;  %v1194_v1 = vld [vmem:[%s3636_s13 + $0x20] sm:$0xff] }
 0x68d   :  { %1233 = vmatpush.msra.mxu3 %v1198_v60 }
 0x68e   :  { %1214 = vmatpush.msra.mxu2 %v1197_v62 }
 0x68f   :  { %1234 = vmatpush.msra.mxu3 %v1197_v62 }
 0x690   :  { %1215 = vmatpush.msra.mxu2 %v1196_v63 }
 0x691   :  { %1235 = vmatpush.msra.mxu3 %v1196_v63 }
 0x692   :  { %1216 = vmatpush.msra.mxu2 %v1195_v0 }
 0x693   :  { %1236 = vmatpush.msra.mxu3 %v1195_v0 }
 0x694   :  { %1217 = vmatpush.msra.mxu2 %v1194_v1 }
 0x695   :  { %1237 = vmatpush.msra.mxu3 %v1194_v1 }
 0x708   :  { %v1028_v3 = vpop.f32.mrf.mxu2 }
 0x709   :  { %v1054_v45 = vadd.f32 %v1028_v3, %v3091_v50  ;;  %v1192_v3 = vld [vmem:[%s3636_s13 + $0x10] sm:$0xff] }
 0x70b   :  { %v3282_v52 = vadd.f32 %v2450_v2, %v1054_v45  ;;  %v1191_v45 = vld [vmem:[%s3636_s13 + $0x8] sm:$0xff] }
 0x70d   :  { %v1064_v4 = vsel %vm317_vm1, %v3282_v52, 0.0 }
 0x70e   :  { %1065 = vadd.xlane.f32.xlu1 %v1064_v4  ;;  %v1190_v4 = vld [vmem:[%s3636_s13] sm:$0xff] }
 0x70f   :  { %v1051_v49 = vpop.f32.mrf.mxu3 }
 0x710   :  { %v1055_v5 = vadd.f32 %v1051_v49, %v3095_v53  ;;  %v2453_v49 = vld [vmem:[#allocation11] ss:$0 sm:$0xff] }
 0x712   :  { %v3287_v48 = vadd.f32 %v2450_v2, %v1055_v5  ;;  %v1193_v2 = vld [vmem:[%s3636_s13 + $0x18] sm:$0xff] }
 0x713   :  { %1218 = vmatpush.msra.mxu2 %v1193_v2  ;;  %1238 = vmatpush.msra.mxu3 %v1193_v2 }
 0x714   :  { %v1067_v6 = vsel %vm317_vm1, %v3287_v48, 0.0 }
 0x715   :  { %1068 = vadd.xlane.f32.xlu2 %v1067_v6  ;;  %1219 = vmatpush.msra.mxu2 %v1192_v3 }
 0x716   :  { %1239 = vmatpush.msra.mxu3 %v1192_v3  ;;  %v2455_v3 = vld [vmem:[%s3652_s30 + $0x1] ss:$0 sm:$0xff] }
 0x717   :  { %1220 = vmatpush.msra.mxu2 %v1191_v45 }
 0x718   :  { %1240 = vmatpush.msra.mxu3 %v1191_v45 }
 0x719   :  { %1221 = vmatpush.msra.mxu2 %v1190_v4 }
 0x71a   :  { %1241 = vmatpush.msra.mxu3 %v1190_v4 }
 0x781   :  { %v1066_v7 = vpop.xlane.xlu1 %1065 }
 0x782   :  { %v1070_v8 = vmul.f32 %v1066_v7, %v3099_v61 }
 0x784   :  { %v1072_v50 = vsub.f32 %v3282_v52, %v1070_v8 }
 0x786   :  { %v1074_v9 = vmul.f32 %v1072_v50, %v1072_v50 }
 0x788   :  { %v1069_v10 = vpop.xlane.xlu2 %1068  ;;  %v1076_v51 = vsel %vm317_vm1, %v1074_v9, 0.0 }
 0x789   :  { %v1071_v11 = vmul.f32 %v1069_v10, %v3099_v61  ;;  %1077 = vadd.xlane.f32.xlu0 %v1076_v51 }
 0x78b   :  { %v1073_v53 = vsub.f32 %v3287_v48, %v1071_v11 }
 0x78d   :  { %v1075_v12 = vmul.f32 %v1073_v53, %v1073_v53 }
 0x78f   :  { %v1079_v13 = vsel %vm317_vm1, %v1075_v12, 0.0 }
 0x790   :  { %1080 = vadd.xlane.f32.xlu1 %v1079_v13 }
 0x7fc   :  { %v1078_v18 = vpop.xlane.xlu0 %1077 }
 0x7fd   :  { %v1082_v19 = vmul.f32 %v1078_v18, %v3099_v61 }
 0x7ff   :  { %v1084_v47 = vadd.f32 1e-06, %v1082_v19 }
 0x801   :  { %2503 = vrsqrt.f32 %v1084_v47  ;;  %vm1092_vm2 = vweird.f32 %v1084_v47 }
 0x803   :  { %v1081_v23 = vpop.xlane.xlu1 %1080 }
 0x804   :  { %v1083_v24 = vmul.f32 %v1081_v23, %v3099_v61  ;;  %v2454_v23 = vld [vmem:[#allocation12] ss:$0 sm:$0xff] }
 0x806   :  { %v1085_v25 = vadd.f32 1e-06, %v1083_v24 }
 0x807   :  { %v2504_v26 = vpop.eup %2503 }
 0x808   :  { %v1087_v27 = vmul.f32 %v2504_v26, %v1084_v47  ;;  %2505 = vrsqrt.f32 %v1085_v25  ;;  %vm1093_vm0 = vweird.f32 %v2504_v26  ;;  %vm1102_vm5 = vweird.f32 %v1085_v25 }
 0x809   :  { %vm1094_vm3 = vmor %vm1092_vm2, %vm1093_vm0 }
 0x80a   :  { %v1088_v28 = vmul.f32 %v2504_v26, %v1087_v27 }
 0x80c   :  { %v1089_v29 = vmul.f32 0.5, %v1088_v28 }
 0x80e   :  { %v2506_v30 = vpop.eup %2505  ;;  %v1090_v31 = vsub.f32 1.5, %v1089_v29 }
 0x80f   :  { %v1097_v32 = vmul.f32 %v2506_v30, %v1085_v25  ;;  %vm1103_vm4 = vweird.f32 %v2506_v30 }
 0x810   :  { %v1091_v33 = vmul.f32 %v2504_v26, %v1090_v31  ;;  %vm1104_vm6 = vmor %vm1102_vm5, %vm1103_vm4 }
 0x811   :  { %v1098_v35 = vmul.f32 %v2506_v30, %v1097_v32 }
 0x812   :  { %v1095_v36 = vsel %vm1094_vm3, %v2504_v26, %v1091_v33 }
 0x813   :  { %v1106_v37 = vmul.f32 %v1095_v36, %v1072_v50  ;;  %v1099_v38 = vmul.f32 0.5, %v1098_v35 }
 0x815   :  { %v1111_v40 = vmul.f32 %v2451_v34, %v1106_v37  ;;  %v1100_v41 = vsub.f32 1.5, %v1099_v38 }
 0x817   :  { %v1101_v42 = vmul.f32 %v2506_v30, %v1100_v41  ;;  %v1116_v43 = vadd.f32 %v2452_v39, %v1111_v40  ;;  %v2365_v40 = vld [vmem:[%s3628_s5 + $0x38] sm:$0xff]  ;;  %v2364_v41 = vld [vmem:[%s3628_s5 + $0x30] sm:$0xff] }
 0x818   :  { %1337 = vmatpush.msra.mxu0 %v2365_v40  ;;  %1360 = vmatpush.msra.mxu1 %v2365_v40 }
 0x819   :  { %v1105_v44 = vsel %vm1104_vm6, %v2506_v30, %v1101_v42  ;;  %2358 = vmatmul.msk.f32.vlgmr.msrb.gmra.mxu0 %vm387_vm7, %v1116_v43  ;;  %v2363_v42 = vld [vmem:[%s3628_s5 + $0x28] sm:$0xff]  ;;  %v2362_v43 = vld [vmem:[%s3628_s5 + $0x20] sm:$0xff] }
 0x81a   :  { %v1107_v46 = vmul.f32 %v1105_v44, %v1073_v53  ;;  %1338 = vmatpush.msra.mxu0 %v2364_v41  ;;  %1361 = vmatpush.msra.mxu1 %v2364_v41 }
 0x81c   :  { %v1112_v54 = vmul.f32 %v2451_v34, %v1107_v46  ;;  %1339 = vmatpush.msra.mxu0 %v2363_v42  ;;  %1362 = vmatpush.msra.mxu1 %v2363_v42 }
 0x81e   :  { %v1117_v55 = vadd.f32 %v2452_v39, %v1112_v54  ;;  %1340 = vmatpush.msra.mxu0 %v2362_v43  ;;  %1363 = vmatpush.msra.mxu1 %v2362_v43 }
 0x820   :  { %2359 = vmatmul.msk.f32.vlgmr.msrb.gmra.mxu1 %vm387_vm7, %v1117_v55 }
 0x896   :  { %v1146_v5 = vpop.f32.mrf.mxu0 }
 0x897   :  { %v1147_v6 = vadd.f32 %v2453_v49, %v1146_v5 }
 0x899   :  { %v1172_v7 = vmul.f32 %v1147_v6, %v1147_v6 }
 0x89b   :  { %v1174_v8 = vmul.f32 %v1172_v7, %v1147_v6 }
 0x89d   :  { %v1176_v50 = vmul.f32 0.044715, %v1174_v8  ;;  %v1169_v9 = vpop.f32.mrf.mxu1 }
 0x89e   :  { %v1170_v10 = vadd.f32 %v2453_v49, %v1169_v9 }
 0x89f   :  { %v1178_v51 = vadd.f32 %v1176_v50, %v1147_v6 }
 0x8a0   :  { %v1173_v11 = vmul.f32 %v1170_v10, %v1170_v10 }
 0x8a1   :  { %v1180_v53 = vmul.f32 0.7978846, %v1178_v51 }
 0x8a2   :  { %v1175_v12 = vmul.f32 %v1173_v11, %v1170_v10 }
 0x8a3   :  { %2507 = vtanh.f32 %v1180_v53 }
 0x8a4   :  { %v1177_v13 = vmul.f32 0.044715, %v1175_v12  ;;  %v2457_v12 = vld [vmem:[%s3629_s6 + $0x1] ss:$0 sm:$0xff] }
 0x8a6   :  { %v1179_v14 = vadd.f32 %v1177_v13, %v1170_v10 }
 0x8a8   :  { %v1181_v15 = vmul.f32 0.7978846, %v1179_v14 }
 0x8a9   :  { %v2508_v16 = vpop.eup %2507 }
 0x8aa   :  { %2509 = vtanh.f32 %v1181_v15  ;;  %v1184_v17 = vadd.f32 1.0, %v2508_v16 }
 0x8ac   :  { %v1186_v18 = vmul.f32 0.5, %v1184_v17 }
 0x8ae   :  { %v1188_v19 = vmul.f32 %v1186_v18, %v1147_v6  ;;  %v2456_v6 = vld [vmem:[%s3627_s4 + $0x1] ss:$0 sm:$0xff] }
 0x8b0   :  { %v2510_v47 = vpop.eup %2509  ;;  %1222 = vmatmul.f32.vlgmr.msra.gmra.mxu2 %v1188_v19 }
 0x8b1   :  { %v1185_v20 = vadd.f32 1.0, %v2510_v47 }
 0x8b3   :  { %v1187_v21 = vmul.f32 0.5, %v1185_v20 }
 0x8b5   :  { %v1189_v22 = vmul.f32 %v1187_v21, %v1170_v10 }
 0x8b7   :  { %1242 = vmatmul.f32.vlgmr.msra.gmra.mxu3 %v1189_v22 }
 0x933   :  { %v1223_v24 = vpop.f32.mrf.mxu2 }
 0x934   :  { %v1246_v25 = vadd.f32 %v1223_v24, %v3282_v52 }
 0x936   :  { %v3350_v26 = vadd.f32 %v2454_v23, %v1246_v25 }
 0x938   :  { %v1258_v27 = vsel %vm317_vm1, %v3350_v26, 0.0 }
 0x939   :  { %1259 = vadd.xlane.f32.xlu2 %v1258_v27 }
 0x93a   :  { %v1243_v28 = vpop.f32.mrf.mxu3 }
 0x93b   :  { %v1247_v29 = vadd.f32 %v1243_v28, %v3287_v48 }
 0x93d   :  { %v3355_v30 = vadd.f32 %v2454_v23, %v1247_v29 }
 0x93f   :  { %v1261_v31 = vsel %vm317_vm1, %v3355_v30, 0.0 }
 0x940   :  { %1262 = vadd.xlane.f32.xlu0 %v1261_v31 }
 0x9ac   :  { %v1260_v32 = vpop.xlane.xlu2 %1259 }
 0x9ad   :  { %v1264_v33 = vmul.f32 %v1260_v32, %v3099_v61 }
 0x9af   :  { %v1266_v52 = vsub.f32 %v3350_v26, %v1264_v33 }
 0x9b1   :  { %v1268_v34 = vmul.f32 %v1266_v52, %v1266_v52 }
 0x9b3   :  { %v1263_v35 = vpop.xlane.xlu0 %1262  ;;  %v1270_v36 = vsel %vm317_vm1, %v1268_v34, 0.0 }
 0x9b4   :  { %v1265_v37 = vmul.f32 %v1263_v35, %v3099_v61  ;;  %1271 = vadd.xlane.f32.xlu1 %v1270_v36 }
 0x9b6   :  { %v1267_v48 = vsub.f32 %v3355_v30, %v1265_v37 }
 0x9b8   :  { %v1269_v38 = vmul.f32 %v1267_v48, %v1267_v48 }
 0x9ba   :  { %v1273_v39 = vsel %vm317_vm1, %v1269_v38, 0.0 }
 0x9bb   :  { %1274 = vadd.xlane.f32.xlu2 %v1273_v39 }
 0xa27   :  { %v1272_v44 = vpop.xlane.xlu1 %1271 }
 0xa28   :  { %v1276_v46 = vmul.f32 %v1272_v44, %v3099_v61 }
 0xa2a   :  { %v1278_v54 = vadd.f32 1e-06, %v1276_v46 }
 0xa2c   :  { %2511 = vrsqrt.f32 %v1278_v54  ;;  %vm1286_vm9 = vweird.f32 %v1278_v54 }
 0xa2e   :  { %v1275_v55 = vpop.xlane.xlu2 %1274 }
 0xa2f   :  { %v1277_v56 = vmul.f32 %v1275_v55, %v3099_v61 }
 0xa31   :  { %v1279_v57 = vadd.f32 1e-06, %v1277_v56 }
 0xa32   :  { %v2512_v58 = vpop.eup %2511 }
 0xa33   :  { %v1281_v59 = vmul.f32 %v2512_v58, %v1278_v54  ;;  %2513 = vrsqrt.f32 %v1279_v57  ;;  %vm1287_vm8 = vweird.f32 %v2512_v58  ;;  %vm1296_vm3 = vweird.f32 %v1279_v57 }
 0xa34   :  { %vm1288_vm0 = vmor %vm1286_vm9, %vm1287_vm8 }
 0xa35   :  { %v1282_v60 = vmul.f32 %v2512_v58, %v1281_v59 }
 0xa37   :  { %v1283_v62 = vmul.f32 0.5, %v1282_v60 }
 0xa39   :  { %v2514_v63 = vpop.eup %2513  ;;  %v1284_v0 = vsub.f32 1.5, %v1283_v62 }
 0xa3a   :  { %v1291_v1 = vmul.f32 %v2514_v63, %v1279_v57  ;;  %vm1297_vm2 = vweird.f32 %v2514_v63 }
 0xa3b   :  { %v1285_v2 = vmul.f32 %v2512_v58, %v1284_v0  ;;  %vm1298_vm4 = vmor %vm1296_vm3, %vm1297_vm2 }
 0xa3c   :  { %v1292_v45 = vmul.f32 %v2514_v63, %v1291_v1 }
 0xa3d   :  { %v1289_v4 = vsel %vm1288_vm0, %v2512_v58, %v1285_v2 }
 0xa3e   :  { %v1300_v49 = vmul.f32 %v1289_v4, %v1266_v52  ;;  %v1293_v5 = vmul.f32 0.5, %v1292_v45 }
 0xa40   :  { %v1305_v7 = vmul.f32 %v2455_v3, %v1300_v49  ;;  %v1294_v8 = vsub.f32 1.5, %v1293_v5 }
 0xa42   :  { %v1295_v50 = vmul.f32 %v2514_v63, %v1294_v8  ;;  %v1310_v9 = vadd.f32 %v2456_v6, %v1305_v7 }
 0xa44   :  { %v1299_v10 = vsel %vm1298_vm4, %v2514_v63, %v1295_v50  ;;  %2367 = vmatmul.msk.f32.vlgmr.msra.gmra.mxu0 %vm387_vm7, %v1310_v9 }
 0xa45   :  { %v1301_v51 = vmul.f32 %v1299_v10, %v1267_v48 }
 0xa47   :  { %v1306_v11 = vmul.f32 %v2455_v3, %v1301_v51 }
 0xa49   :  { %v1311_v53 = vadd.f32 %v2456_v6, %v1306_v11 }
 0xa4b   :  { %2368 = vmatmul.msk.f32.vlgmr.msra.gmra.mxu1 %vm387_vm7, %v1311_v53 }
 0xac1   :  { %v1342_v13 = vpop.f32.mrf.mxu0 }
 0xac2   :  { %v3390_v14 = vadd.f32 %v2457_v12, %v1342_v13 }
 0xac4   :  { %1378 = vrot.lane.b32.xlu2 %v3390_v14, %s2831_s20  ;;  %1370 = vrot.lane.b32.xlu0 %v3390_v14, %s2829_s11 }
 0xac8   :  { %v1365_v15 = vpop.f32.mrf.mxu1 }
 0xac9   :  { %v3396_v16 = vadd.f32 %v2457_v12, %v1365_v15 }
 0xacb   :  { %1372 = vrot.lane.b32.xlu1 %v3396_v16, %s2829_s11 }
 0xacc   :  { %1382 = vrot.lane.b32.xlu2 %v3390_v14, %s2826_s7  ;;  %1380 = vrot.lane.b32.xlu0 %v3396_v16, %s2831_s20 }
 0xad3   :  { %1374 = vrot.lane.b32.xlu1 %v3390_v14, %s2830_s10 }
 0xad4   :  { %1376 = vrot.lane.b32.xlu0 %v3396_v16, %s2830_s10 }
 0xadb   :  { %1408 = vrot.lane.b32.xlu1 %v3396_v16, %s2826_s7 }
 0xb1e   :  { %v3410_v17 = vpop.permute.xlu2 %1378 }
 0xb1f   :  { %1538 = vrot.lane.b32.xlu1 %v3410_v17, %s2826_s7 }
 0xb26   :  { %v1383_v18 = vpop.permute.xlu2 %1382 }
 0xb27   :  { %2369 = vmatpush.xpose.msk.msrb.mxu0 %vm450_vm10, %v1383_v18 }
 0xb2a   :  { %2370 = vmatmul.msk.f32.vlgmr.msrb.gmra.mxu0 %vm450_vm10, %v3390_v14 }
 0xb36   :  { %v1371_v19 = vpop.permute.xlu0 %1370 }
 0xb37   :  { %1434 = vrot.lane.b32.xlu0 %v1371_v19, %s2826_s7 }
 0xb3d   :  { %v1373_v47 = vpop.permute.xlu1 %1372 }
 0xb3e   :  { %v3418_v20 = vpop.permute.xlu0 %1380  ;;  %1460 = vrot.lane.b32.xlu2 %v1373_v47, %s2826_s7 }
 0xb3f   :  { %1564 = vrot.lane.b32.xlu0 %v3418_v20, %s2826_s7 }
 0xb45   :  { %v3423_v21 = vpop.permute.xlu1 %1374 }
 0xb46   :  { %v3425_v22 = vpop.permute.xlu0 %1376  ;;  %1486 = vrot.lane.b32.xlu2 %v3423_v21, %s2826_s7 }
 0xb47   :  { %1767 = vrot.lane.b32.xlu0 %v1373_v47, %s2825_s18  ;;  %1512 = vrot.lane.b32.xlu1 %v3425_v22, %s2826_s7 }
 0xb4d   :  { %v1409_v23 = vpop.permute.xlu1 %1408 }
 0xb4e   :  { %2371 = vmatpush.xpose.msk.msrb.mxu1 %vm450_vm10, %v1409_v23 }
 0xb4f   :  { %1740 = vrot.lane.b32.xlu1 %v1371_v19, %s2825_s18 }
 0xb51   :  { %2372 = vmatmul.msk.f32.vlgmr.msrb.gmra.mxu1 %vm450_vm10, %v3396_v16 }
 0xb91   :  { %v1539_v24 = vpop.permute.xlu1 %1538 }
 0xb92   :  { %2381 = vmatpush.xpose.msk.msrb.mxu2 %vm450_vm10, %v1539_v24 }
 0xb95   :  { %2382 = vmatmul.msk.f32.vlgmr.msrb.gmra.mxu2 %vm450_vm10, %v3410_v17 }
 0xb98   :  { %v1461_v25 = vpop.permute.xlu2 %1460 }
 0xb99   :  { %2375 = vmatpush.xpose.msk.msra.mxu1 %vm450_vm10, %v1461_v25 }
 0xb9c   :  { %2376 = vmatmul.msk.f32.vlgmr.msra.gmra.mxu1 %vm450_vm10, %v1373_v47 }
 0xba0   :  { %v1487_v31 = vpop.permute.xlu2 %1486 }
 0xba7   :  { %v1405_v27 = vpop.f32.mrf.mxu0 }
 0xba8   :  { %v1590_v28 = vmul.f32 0.35355338, %v1405_v27 }
 0xba9   :  { %v1435_v29 = vpop.permute.xlu0 %1434 }
 0xbaa   :  { %2373 = vmatpush.xpose.msk.msra.mxu0 %vm450_vm10, %v1435_v29  ;;  %v1598_v32 = vsel %vm665_vm11, %v1590_v28, -inf }
 0xbab   :  { %1599 = vmax.xlane.f32.xlu1 %v1598_v32 }
 0xbad   :  { %2374 = vmatmul.msk.f32.vlgmr.msra.gmra.mxu0 %vm450_vm10, %v1371_v19 }
 0xbae   :  { %2377 = vmatpush.xpose.msk.msrb.mxu0 %vm450_vm10, %v1487_v31 }
 0xbb1   :  { %v1565_v33 = vpop.permute.xlu0 %1564 }
 0xbb2   :  { %2383 = vmatpush.xpose.msk.msrb.mxu3 %vm450_vm10, %v1565_v33 }
 0xbb5   :  { %2378 = vmatmul.msk.f32.vlgmr.msrb.gmra.mxu0 %vm450_vm10, %v3423_v21  ;;  %2384 = vmatmul.msk.f32.vlgmr.msrb.gmra.mxu3 %vm450_vm10, %v3418_v20 }
 0xbb9   :  { %v1768_v52 = vpop.permute.xlu0 %1767  ;;  %v1513_v34 = vpop.permute.xlu1 %1512 }
 0xbba   :  { %2379 = vmatpush.xpose.msk.msrb.mxu1 %vm450_vm10, %v1513_v34  ;;  %2391 = vmatpush.msk.msra.mxu3 %vm760_vm12, %v1768_v52 }
 0xbbd   :  { %2380 = vmatmul.msk.f32.vlgmr.msrb.gmra.mxu1 %vm450_vm10, %v3425_v22 }
 0xbc1   :  { %v1741_v35 = vpop.permute.xlu1 %1740 }
 0xbc2   :  { %2389 = vmatpush.msk.msra.mxu2 %vm760_vm12, %v1741_v35 }
 0xbce   :  { %v1431_v36 = vpop.f32.mrf.mxu1 }
 0xbcf   :  { %v1591_v37 = vmul.f32 0.35355338, %v1431_v36 }
 0xbd1   :  { %v1601_v48 = vsel %vm665_vm11, %v1591_v37, -inf }
 0xbd2   :  { %1602 = vmax.xlane.f32.xlu0 %v1601_v48 }
 0xc18   :  { %v1561_v41 = vpop.f32.mrf.mxu2 }
 0xc19   :  { %v1483_v38 = vpop.f32.mrf.mxu1  ;;  %v1596_v42 = vmul.f32 0.35355338, %v1561_v41 }
 0xc1a   :  { %v1593_v39 = vmul.f32 0.35355338, %v1483_v38 }
 0xc1b   :  { %v1616_v43 = vsel %vm665_vm11, %v1596_v42, -inf }
 0xc1c   :  { %v1607_v40 = vsel %vm665_vm11, %v1593_v39, -inf }
 0xc1d   :  { %1608 = vmax.xlane.f32.xlu2 %v1607_v40 }
 0xc1e   :  { %v1600_v55 = vpop.xlane.xlu1 %1599 }
 0xc1f   :  { %v1622_v58 = vsub.f32 %v1590_v28, %v1600_v55 }
 0xc21   :  { %v1630_v60 = vmul.f32 1.442695, %v1622_v58 }
 0xc23   :  { %2515 = vpow2.f32 %v1630_v60 }
 0xc25   :  { %1617 = vmax.xlane.f32.xlu2 %v1616_v43 }
 0xc29   :  { %v3462_v45 = vpop.eup %2515 }
 0xc2a   :  { %v1457_v44 = vpop.f32.mrf.mxu0  ;;  %v1646_v49 = vsel %vm665_vm11, %v3462_v45, 0.0 }
 0xc2b   :  { %v1592_v46 = vmul.f32 0.35355338, %v1457_v44 }
 0xc2d   :  { %v1604_v54 = vsel %vm665_vm11, %v1592_v46, -inf }
 0xc2e   :  { %1605 = vmax.xlane.f32.xlu0 %v1604_v54 }
 0xc32   :  { %v1509_v56 = vpop.f32.mrf.mxu0 }
 0xc33   :  { %v1594_v57 = vmul.f32 0.35355338, %v1509_v56 }
 0xc35   :  { %v1610_v59 = vsel %vm665_vm11, %v1594_v57, -inf }
 0xc36   :  { %1611 = vmax.xlane.f32.xlu0 %v1610_v59 }
 0xc38   :  { %v1587_v62 = vpop.f32.mrf.mxu3 }
 0xc39   :  { %v1597_v63 = vmul.f32 0.35355338, %v1587_v62 }
 0xc3a   :  { %v1535_v0 = vpop.f32.mrf.mxu1 }
 0xc3b   :  { %v1595_v1 = vmul.f32 0.35355338, %v1535_v0  ;;  %v1619_v2 = vsel %vm665_vm11, %v1597_v63, -inf }
 0xc3c   :  { %1620 = vmax.xlane.f32.xlu1 %v1619_v2 }
 0xc3d   :  { %v1613_v3 = vsel %vm665_vm11, %v1595_v1, -inf }
 0xc3e   :  { %1614 = vmax.xlane.f32.xlu2 %v1613_v3 }
 0xc45   :  { %v1603_v4 = vpop.xlane.xlu0 %1602 }
 0xc46   :  { %v1623_v5 = vsub.f32 %v1591_v37, %v1603_v4  ;;  %1647 = vadd.xlane.f32.xlu2 %v1646_v49 }
 0xc48   :  { %v1632_v6 = vmul.f32 1.442695, %v1623_v5 }
 0xc4a   :  { %2517 = vpow2.f32 %v1632_v6 }
 0xc50   :  { %v3466_v7 = vpop.eup %2517 }
 0xc51   :  { %v1649_v8 = vsel %vm665_vm11, %v3466_v7, 0.0 }
 0xc52   :  { %1650 = vadd.xlane.f32.xlu1 %v1649_v8 }
 0xc90   :  { %v1609_v50 = vpop.xlane.xlu2 %1608 }
 0xc91   :  { %v1625_v9 = vsub.f32 %v1593_v39, %v1609_v50 }
 0xc93   :  { %v1636_v10 = vmul.f32 1.442695, %v1625_v9 }
 0xc95   :  { %2519 = vpow2.f32 %v1636_v10 }
 0xc98   :  { %v1618_v51 = vpop.xlane.xlu2 %1617 }
 0xc99   :  { %v1628_v11 = vsub.f32 %v1596_v42, %v1618_v51 }
 0xc9b   :  { %v2520_v53 = vpop.eup %2519  ;;  %v1642_v12 = vmul.f32 1.442695, %v1628_v11 }
 0xc9c   :  { %v1655_v13 = vsel %vm665_vm11, %v2520_v53, 0.0 }
 0xc9d   :  { %2521 = vpow2.f32 %v1642_v12  ;;  %1656 = vadd.xlane.f32.xlu0 %v1655_v13  ;;  %v1936_v13 = vld [vmem:[#allocation3 + $0x38] sm:$0xff] }
 0xca1   :  { %v1606_v15 = vpop.xlane.xlu0 %1605 }
 0xca2   :  { %v1624_v18 = vsub.f32 %v1592_v46, %v1606_v15  ;;  %v1935_v15 = vld [vmem:[#allocation3 + $0x30] sm:$0xff] }
 0xca3   :  { %v3471_v19 = vpop.eup %2521 }
 0xca4   :  { %v1634_v47 = vmul.f32 1.442695, %v1624_v18  ;;  %v1664_v23 = vsel %vm665_vm11, %v3471_v19, 0.0  ;;  %v1934_v18 = vld [vmem:[#allocation3 + $0x28] sm:$0xff] }
 0xca5   :  { %1665 = vadd.xlane.f32.xlu0 %v1664_v23 }
 0xca6   :  { %2523 = vpow2.f32 %v1634_v47 }
 0xca9   :  { %v1612_v27 = vpop.xlane.xlu0 %1611 }
 0xcaa   :  { %v1626_v31 = vsub.f32 %v1594_v57, %v1612_v27 }
 0xcac   :  { %v2524_v24 = vpop.eup %2523  ;;  %v1638_v33 = vmul.f32 1.442695, %v1626_v31 }
 0xcad   :  { %v1652_v25 = vsel %vm665_vm11, %v2524_v24, 0.0 }
 0xcae   :  { %1653 = vadd.xlane.f32.xlu1 %v1652_v25 }
 0xcaf   :  { %v1621_v28 = vpop.xlane.xlu1 %1620 }
 0xcb0   :  { %v1629_v29 = vsub.f32 %v1597_v63, %v1621_v28 }
 0xcb1   :  { %v1615_v52 = vpop.xlane.xlu2 %1614 }
 0xcb2   :  { %v1644_v32 = vmul.f32 1.442695, %v1629_v29  ;;  %v1627_v35 = vsub.f32 %v1595_v1, %v1615_v52 }
 0xcb4   :  { %2525 = vpow2.f32 %v1644_v32  ;;  %v1640_v37 = vmul.f32 1.442695, %v1627_v35  ;;  %v2458_v35 = vld [vmem:[%s3631_s8 + $0x1] ss:$0 sm:$0xff] }
 0xcb5   :  { %2527 = vpow2.f32 %v1638_v33 }
 0xcb6   :  { %2529 = vpow2.f32 %v1640_v37 }
 0xcb9   :  { %1713 = vrot.lane.b32.xlu0 %v3396_v16, %s2825_s18  ;;  %v1648_v44 = vpop.xlane.xlu2 %1647 }
 0xcba   :  { %v2526_v34 = vpop.eup %2525 }
 0xcbb   :  { %v1667_v36 = vsel %vm665_vm11, %v2526_v34, 0.0  ;;  %v2528_v48 = vpop.eup %2527 }
 0xcbc   :  { %1668 = vadd.xlane.f32.xlu2 %v1667_v36  ;;  %v1658_v38 = vsel %vm665_vm11, %v2528_v48, 0.0  ;;  %v2530_v39 = vpop.eup %2529 }
 0xcbd   :  { %v1661_v16 = vsel %vm665_vm11, %v2530_v39, 0.0 }
 0xcc1   :  { %1875 = vrot.lane.b32.xlu0 %v3418_v20, %s2825_s18 }
 0xcc4   :  { %1659 = vadd.xlane.f32.xlu2 %v1658_v38 }
 0xcc5   :  { %v1651_v42 = vpop.xlane.xlu1 %1650 }
 0xcc7   :  { %1848 = vrot.lane.b32.xlu1 %v3410_v17, %s2825_s18 }
 0xcc9   :  { %1821 = vrot.lane.b32.xlu0 %v3425_v22, %s2825_s18 }
 0xccc   :  { %1662 = vadd.xlane.f32.xlu2 %v1661_v16 }
 0xccf   :  { %1794 = vrot.lane.b32.xlu1 %v3423_v21, %s2825_s18 }
 0xce4   :  { %1686 = vrot.lane.b32.xlu2 %v3390_v14, %s2825_s18 }
 0xd10   :  { %v1657_v20 = vpop.xlane.xlu0 %1656 }
 0xd11   :  { %2531 = vrcp.f32 %v1657_v20 }
 0xd12   :  { %2533 = vrcp.f32 %v1651_v42 }
 0xd17   :  { %v2532_v40 = vpop.eup %2531 }
 0xd18   :  { %v1681_v41 = vmul.f32 %v2532_v40, %v2520_v53  ;;  %v1666_v22 = vpop.xlane.xlu0 %1665  ;;  %v2534_v43 = vpop.eup %2533 }
 0xd19   :  { %v1679_v21 = vmul.f32 %v2534_v43, %v3466_v7 }
 0xd1a   :  { %2392 = vmatmul.msk.f32.vlgmr.msra.gmra.mxu3 %vm756_vm13, %v1681_v41 }
 0xd21   :  { %v1654_v17 = vpop.xlane.xlu1 %1653 }
 0xd22   :  { %2535 = vrcp.f32 %v1654_v17 }
 0xd23   :  { %2537 = vrcp.f32 %v1666_v22 }
 0xd28   :  { %v2536_v46 = vpop.eup %2535 }
 0xd29   :  { %v1680_v54 = vmul.f32 %v2536_v46, %v2524_v24  ;;  %v2538_v57 = vpop.eup %2537 }
 0xd2a   :  { %v1684_v62 = vmul.f32 %v2538_v57, %v3471_v19  ;;  %v1933_v19 = vld [vmem:[#allocation3 + $0x20] sm:$0xff] }
 0xd2b   :  { %2390 = vmatmul.msk.f32.vlgmr.msra.gmra.mxu2 %vm756_vm13, %v1680_v54  ;;  %v1714_v14 = vpop.permute.xlu0 %1713 }
 0xd2c   :  { %2387 = vmatpush.msk.msra.mxu1 %vm760_vm12, %v1714_v14  ;;  %v2053_v14 = vld [vmem:[#allocation9 + $0x30] sm:$0xff] }
 0xd2d   :  { %2388 = vmatmul.msk.f32.vlgmr.msra.gmra.mxu1 %vm756_vm13, %v1679_v21  ;;  %v2054_v21 = vld [vmem:[#allocation9 + $0x38] sm:$0xff] }
 0xd2f   :  { %v1669_v55 = vpop.xlane.xlu2 %1668 }
 0xd30   :  { %2539 = vrcp.f32 %v1669_v55  ;;  %v2052_v55 = vld [vmem:[#allocation9 + $0x28] sm:$0xff] }
 0xd31   :  { %2541 = vrcp.f32 %v1648_v44 }
 0xd33   :  { %v1876_v56 = vpop.permute.xlu0 %1875 }
 0xd34   :  { %2399 = vmatpush.msk.msrb.mxu3 %vm760_vm12, %v1876_v56  ;;  %v2051_v56 = vld [vmem:[#allocation9 + $0x20] sm:$0xff] }
 0xd36   :  { %v2540_v58 = vpop.eup %2539  ;;  %2098 = vmatpush.msra.mxu3 %v2054_v21 }
 0xd37   :  { %v1685_v59 = vmul.f32 %v2540_v58, %v2526_v34  ;;  %v1660_v60 = vpop.xlane.xlu2 %1659  ;;  %v2542_v2 = vpop.eup %2541 }
 0xd38   :  { %v1678_v4 = vmul.f32 %v2542_v2, %v3462_v45  ;;  %2099 = vmatpush.msra.mxu3 %v2053_v14 }
 0xd39   :  { %v1849_v63 = vpop.permute.xlu1 %1848  ;;  %2400 = vmatmul.msk.f32.vlgmr.msrb.gmra.mxu3 %vm756_vm13, %v1685_v59 }
 0xd3a   :  { %2397 = vmatpush.msk.msrb.mxu2 %vm760_vm12, %v1849_v63  ;;  %2100 = vmatpush.msra.mxu3 %v2052_v55  ;;  %v2419_v63 = vld [vmem:[%s3636_s13 + $0xe8] sm:$0xff] }
 0xd3b   :  { %2398 = vmatmul.msk.f32.vlgmr.msrb.gmra.mxu2 %vm756_vm13, %v1684_v62  ;;  %v1822_v0 = vpop.permute.xlu0 %1821  ;;  %v2420_v62 = vld [vmem:[%s3636_s13 + $0xf0] sm:$0xff] }
 0xd3c   :  { %2395 = vmatpush.msk.msrb.mxu1 %vm760_vm12, %v1822_v0  ;;  %2075 = vmatpush.msra.mxu2 %v2054_v21 }
 0xd3d   :  { %2101 = vmatpush.msra.mxu3 %v2051_v56 }
 0xd3e   :  { %1975 = vmatpush.msra.mxu1 %v1936_v13  ;;  %2076 = vmatpush.msra.mxu2 %v2053_v14 }
 0xd3f   :  { %v1663_v1 = vpop.xlane.xlu2 %1662 }
 0xd40   :  { %2543 = vrcp.f32 %v1663_v1  ;;  %1976 = vmatpush.msra.mxu1 %v1935_v15  ;;  %2077 = vmatpush.msra.mxu2 %v2052_v55 }
 0xd41   :  { %2545 = vrcp.f32 %v1660_v60  ;;  %v1795_v6 = vpop.permute.xlu1 %1794  ;;  %v2421_v60 = vld [vmem:[%s3636_s13 + $0xf8] sm:$0xff] }
 0xd42   :  { %1977 = vmatpush.msra.mxu1 %v1934_v18  ;;  %2078 = vmatpush.msra.mxu2 %v2051_v56 }
 0xd44   :  { %1978 = vmatpush.msra.mxu1 %v1933_v19 }
 0xd46   :  { %v2544_v3 = vpop.eup %2543 }
 0xd47   :  { %v1683_v49 = vmul.f32 %v2544_v3, %v2530_v39  ;;  %v1687_v5 = vpop.permute.xlu2 %1686  ;;  %v2546_v7 = vpop.eup %2545 }
 0xd48   :  { %2385 = vmatpush.msk.msra.mxu0 %vm760_vm12, %v1687_v5  ;;  %v1682_v8 = vmul.f32 %v2546_v7, %v2528_v48 }
 0xd49   :  { %2386 = vmatmul.msk.f32.vlgmr.msra.gmra.mxu0 %vm756_vm13, %v1678_v4  ;;  %2396 = vmatmul.msk.f32.vlgmr.msrb.gmra.mxu1 %vm756_vm13, %v1683_v49 }
 0xd4a   :  { %2393 = vmatpush.msk.msrb.mxu0 %vm760_vm12, %v1795_v6  ;;  %2161 = vmatpush.msrb.mxu1 %v2421_v60 }
 0xd4c   :  { %1952 = vmatpush.msra.mxu0 %v1936_v13  ;;  %2162 = vmatpush.msrb.mxu1 %v2420_v62 }
 0xd4e   :  { %1953 = vmatpush.msra.mxu0 %v1935_v15  ;;  %2163 = vmatpush.msrb.mxu1 %v2419_v63 }
 0xd50   :  { %1954 = vmatpush.msra.mxu0 %v1934_v18 }
 0xd51   :  { %2394 = vmatmul.msk.f32.vlgmr.msrb.gmra.mxu0 %vm756_vm13, %v1682_v8 }
 0xd52   :  { %1955 = vmatpush.msra.mxu0 %v1933_v19 }
 0xd54   :  { %2141 = vmatpush.msrb.mxu0 %v2421_v60 }
 0xd56   :  { %2142 = vmatpush.msrb.mxu0 %v2420_v62 }
 0xd58   :  { %2143 = vmatpush.msrb.mxu0 %v2419_v63 }
 0xd9d   :  { %v1791_v50 = vpop.f32.mrf.mxu3 }
 0xd9e   :  { %1906 = vrot.lane.b32.xlu2 %v1791_v50, %s2816_s0 }
 0xdaa   :  { %v1737_v45 = vpop.f32.mrf.mxu1 }
 0xdae   :  { %v1764_v9 = vpop.f32.mrf.mxu2 }
 0xdaf   :  { %1904 = vrot.lane.b32.xlu1 %v1764_v9, %s2816_s0  ;;  %v2459_v9 = vld [vmem:[#allocation6 + $0x1] ss:$0 sm:$0xff] }
 0xdbc   :  { %v1899_v12 = vpop.f32.mrf.mxu3 }
 0xdbe   :  { %v1872_v10 = vpop.f32.mrf.mxu2 }
 0xdbf   :  { %1920 = vrot.lane.b32.xlu2 %v1872_v10, %s2832_s14 }
 0xdc6   :  { %v1710_v51 = vpop.f32.mrf.mxu0  ;;  %v1845_v11 = vpop.f32.mrf.mxu1 }
 0xdc7   :  { %1914 = vrot.lane.b32.xlu1 %v1845_v11, %s2812_s22 }
 0xdce   :  { %v1818_v53 = vpop.f32.mrf.mxu0 }
 0xdcf   :  { %1912 = vrot.lane.b32.xlu0 %v1818_v53, %s2812_s22  ;;  %v2460_v53 = vld [vmem:[#allocation8 + $0x1] ss:$0 sm:$0xff] }
 0xdd7   :  { %1922 = vrot.lane.b32.xlu0 %v1899_v12, %s2832_s14 }
 0xdf8   :  { %v1907_v47 = vpop.permute.xlu2 %1906 }
 0xdf9   :  { %v1927_v32 = vsel %vm450_vm10, %v1737_v45, %v1907_v47 }
 0xe19   :  { %v1921_v27 = vpop.permute.xlu2 %1920 }
 0xe21   :  { %v1905_v23 = vpop.permute.xlu1 %1904 }
 0xe22   :  { %v1926_v24 = vsel %vm450_vm10, %v1710_v51, %v1905_v23 }
 0xe39   :  { %v1915_v31 = vpop.permute.xlu1 %1914 }
 0xe3a   :  { %v1929_v33 = vsel %vm998_vm14, %v1927_v32, %v1915_v31  ;;  %v2414_v31 = vld [vmem:[%s3636_s13 + $0xc0] sm:$0xff]  ;;  %v2413_v32 = vld [vmem:[%s3636_s13 + $0xb8] sm:$0xff] }
 0xe41   :  { %v1913_v25 = vpop.permute.xlu0 %1912 }
 0xe42   :  { %v1928_v28 = vsel %vm998_vm14, %v1926_v24, %v1913_v25  ;;  %v2418_v25 = vld [vmem:[%s3636_s13 + $0xe0] sm:$0xff] }
 0xe43   :  { %v1930_v29 = vsel %vm1001_vm15, %v1928_v28, %v1921_v27  ;;  %2144 = vmatpush.msrb.mxu0 %v2418_v25  ;;  %2164 = vmatpush.msrb.mxu1 %v2418_v25  ;;  %v2417_v27 = vld [vmem:[%s3636_s13 + $0xd8] sm:$0xff]  ;;  %v2416_v28 = vld [vmem:[%s3636_s13 + $0xd0] sm:$0xff] }
 0xe44   :  { %2401 = vmatmul.msk.f32.vlgmr.msra.gmra.mxu0 %vm387_vm7, %v1930_v29  ;;  %v2415_v29 = vld [vmem:[%s3636_s13 + $0xc8] sm:$0xff] }
 0xe45   :  { %2145 = vmatpush.msrb.mxu0 %v2417_v27  ;;  %2165 = vmatpush.msrb.mxu1 %v2417_v27 }
 0xe47   :  { %2146 = vmatpush.msrb.mxu0 %v2416_v28  ;;  %2166 = vmatpush.msrb.mxu1 %v2416_v28 }
 0xe49   :  { %v1923_v52 = vpop.permute.xlu0 %1922  ;;  %2147 = vmatpush.msrb.mxu0 %v2415_v29  ;;  %2167 = vmatpush.msrb.mxu1 %v2415_v29 }
 0xe4a   :  { %v1931_v34 = vsel %vm1001_vm15, %v1929_v33, %v1923_v52  ;;  %v2412_v33 = vld [vmem:[%s3636_s13 + $0xb0] sm:$0xff]  ;;  %v2411_v52 = vld [vmem:[%s3636_s13 + $0xa8] sm:$0xff] }
 0xe4b   :  { %2402 = vmatmul.msk.f32.vlgmr.msra.gmra.mxu1 %vm387_vm7, %v1931_v34  ;;  %2148 = vmatpush.msrb.mxu0 %v2414_v31  ;;  %v2410_v34 = vld [vmem:[%s3636_s13 + $0xa0] sm:$0xff] }
 0xe4c   :  { %2168 = vmatpush.msrb.mxu1 %v2414_v31 }
 0xe4d   :  { %2149 = vmatpush.msrb.mxu0 %v2413_v32 }
 0xe4e   :  { %2169 = vmatpush.msrb.mxu1 %v2413_v32 }
 0xe4f   :  { %2150 = vmatpush.msrb.mxu0 %v2412_v33 }
 0xe50   :  { %2170 = vmatpush.msrb.mxu1 %v2412_v33 }
 0xe51   :  { %2151 = vmatpush.msrb.mxu0 %v2411_v52 }
 0xe52   :  { %2171 = vmatpush.msrb.mxu1 %v2411_v52 }
 0xe53   :  { %2152 = vmatpush.msrb.mxu0 %v2410_v34 }
 0xe54   :  { %2172 = vmatpush.msrb.mxu1 %v2410_v34 }
 0xec1   :  { %v1957_v36 = vpop.f32.mrf.mxu0 }
 0xec2   :  { %v1983_v37 = vadd.f32 %v1957_v36, %v3350_v26  ;;  %v2408_v36 = vld [vmem:[%s3636_s13 + $0x90] sm:$0xff] }
 0xec4   :  { %v3526_v48 = vadd.f32 %v2458_v35, %v1983_v37  ;;  %v2407_v37 = vld [vmem:[%s3636_s13 + $0x88] sm:$0xff] }
 0xec6   :  { %v1996_v38 = vsel %vm317_vm1, %v3526_v48, 0.0 }
 0xec7   :  { %1997 = vadd.xlane.f32.xlu1 %v1996_v38  ;;  %v2406_v38 = vld [vmem:[%s3636_s13 + $0x80] sm:$0xff] }
 0xec8   :  { %v1980_v39 = vpop.f32.mrf.mxu1 }
 0xec9   :  { %v1984_v16 = vadd.f32 %v1980_v39, %v3355_v30  ;;  %v2461_v39 = vld [vmem:[#allocation11 + $0x1] ss:$0 sm:$0xff] }
 0xecb   :  { %v3531_v20 = vadd.f32 %v2458_v35, %v1984_v16  ;;  %v2409_v35 = vld [vmem:[%s3636_s13 + $0x98] sm:$0xff] }
 0xecc   :  { %2153 = vmatpush.msrb.mxu0 %v2409_v35  ;;  %2173 = vmatpush.msrb.mxu1 %v2409_v35 }
 0xecd   :  { %v1999_v40 = vsel %vm317_vm1, %v3531_v20, 0.0 }
 0xece   :  { %2000 = vadd.xlane.f32.xlu2 %v1999_v40  ;;  %2154 = vmatpush.msrb.mxu0 %v2408_v36 }
 0xecf   :  { %2174 = vmatpush.msrb.mxu1 %v2408_v36  ;;  %v2463_v36 = vld [vmem:[#allocation14] ss:$0 sm:$0xff] }
 0xed0   :  { %2155 = vmatpush.msrb.mxu0 %v2407_v37 }
 0xed1   :  { %2175 = vmatpush.msrb.mxu1 %v2407_v37 }
 0xed2   :  { %2156 = vmatpush.msrb.mxu0 %v2406_v38 }
 0xed3   :  { %2176 = vmatpush.msrb.mxu1 %v2406_v38 }
 0xf3a   :  { %v1998_v41 = vpop.xlane.xlu1 %1997 }
 0xf3b   :  { %v2002_v42 = vmul.f32 %v1998_v41, %v3099_v61 }
 0xf3d   :  { %v2004_v26 = vsub.f32 %v3526_v48, %v2002_v42 }
 0xf3f   :  { %v2006_v17 = vmul.f32 %v2004_v26, %v2004_v26 }
 0xf41   :  { %v2001_v22 = vpop.xlane.xlu2 %2000  ;;  %v2008_v43 = vsel %vm317_vm1, %v2006_v17, 0.0 }
 0xf42   :  { %v2003_v44 = vmul.f32 %v2001_v22, %v3099_v61  ;;  %2009 = vadd.xlane.f32.xlu0 %v2008_v43 }
 0xf44   :  { %v2005_v30 = vsub.f32 %v3531_v20, %v2003_v44 }
 0xf46   :  { %v2007_v46 = vmul.f32 %v2005_v30, %v2005_v30 }
 0xf48   :  { %v2011_v54 = vsel %vm317_vm1, %v2007_v46, 0.0 }
 0xf49   :  { %2012 = vadd.xlane.f32.xlu2 %v2011_v54 }
 0xfb5   :  { %v2010_v57 = vpop.xlane.xlu0 %2009 }
 0xfb6   :  { %v2014_v58 = vmul.f32 %v2010_v57, %v3099_v61 }
 0xfb8   :  { %v2016_v59 = vadd.f32 1e-06, %v2014_v58 }
 0xfba   :  { %2547 = vrsqrt.f32 %v2016_v59  ;;  %vm2024_vm11 = vweird.f32 %v2016_v59 }
 0xfbc   :  { %v2013_v0 = vpop.xlane.xlu2 %2012 }
 0xfbd   :  { %v2015_v1 = vmul.f32 %v2013_v0, %v3099_v61  ;;  %v2462_v0 = vld [vmem:[#allocation12 + $0x1] ss:$0 sm:$0xff] }
 0xfbf   :  { %v2017_v2 = vadd.f32 1e-06, %v2015_v1 }
 0xfc0   :  { %v2548_v3 = vpop.eup %2547 }
 0xfc1   :  { %v2019_v4 = vmul.f32 %v2548_v3, %v2016_v59  ;;  %2549 = vrsqrt.f32 %v2017_v2  ;;  %vm2025_vm10 = vweird.f32 %v2548_v3  ;;  %vm2034_vm14 = vweird.f32 %v2017_v2 }
 0xfc2   :  { %vm2026_vm12 = vmor %vm2024_vm11, %vm2025_vm10 }
 0xfc3   :  { %v2020_v49 = vmul.f32 %v2548_v3, %v2019_v4 }
 0xfc5   :  { %v2021_v5 = vmul.f32 0.5, %v2020_v49 }
 0xfc7   :  { %v2550_v6 = vpop.eup %2549  ;;  %v2022_v7 = vsub.f32 1.5, %v2021_v5 }
 0xfc8   :  { %v2029_v8 = vmul.f32 %v2550_v6, %v2017_v2  ;;  %vm2035_vm13 = vweird.f32 %v2550_v6 }
 0xfc9   :  { %v2023_v50 = vmul.f32 %v2548_v3, %v2022_v7  ;;  %vm2036_vm15 = vmor %vm2034_vm14, %vm2035_vm13 }
 0xfca   :  { %v2030_v45 = vmul.f32 %v2550_v6, %v2029_v8 }
 0xfcb   :  { %v2027_v10 = vsel %vm2026_vm12, %v2548_v3, %v2023_v50 }
 0xfcc   :  { %v2038_v51 = vmul.f32 %v2027_v10, %v2004_v26  ;;  %v2031_v11 = vmul.f32 0.5, %v2030_v45 }
 0xfce   :  { %v2043_v12 = vmul.f32 %v2459_v9, %v2038_v51  ;;  %v2032_v13 = vsub.f32 1.5, %v2031_v11 }
 0xfd0   :  { %v2033_v15 = vmul.f32 %v2550_v6, %v2032_v13  ;;  %v2048_v18 = vadd.f32 %v2460_v53, %v2043_v12  ;;  %v2248_v13 = vld [vmem:[%s3640_s17 + $0x10] sm:$0xff] }
 0xfd2   :  { %v2037_v19 = vsel %vm2036_vm15, %v2550_v6, %v2033_v15  ;;  %2404 = vmatmul.msk.f32.vlgmr.msra.gmra.mxu2 %vm387_vm7, %v2048_v18  ;;  %v2247_v15 = vld [vmem:[%s3640_s17 + $0x8] sm:$0xff]  ;;  %v2246_v18 = vld [vmem:[%s3640_s17] sm:$0xff] }
 0xfd3   :  { %v2039_v47 = vmul.f32 %v2037_v19, %v2005_v30 }
 0xfd5   :  { %v2044_v23 = vmul.f32 %v2459_v9, %v2039_v47 }
 0xfd7   :  { %v2049_v24 = vadd.f32 %v2460_v53, %v2044_v23 }
 0xfd9   :  { %2405 = vmatmul.msk.f32.vlgmr.msra.gmra.mxu3 %vm387_vm7, %v2049_v24 }
0x1055   :  { %v2080_v16 = vpop.f32.mrf.mxu2 }
0x1056   :  { %v2081_v40 = vadd.f32 %v2461_v39, %v2080_v16 }
0x1058   :  { %v2106_v41 = vmul.f32 %v2081_v40, %v2081_v40 }
0x105a   :  { %v2108_v42 = vmul.f32 %v2106_v41, %v2081_v40 }
0x105c   :  { %v2110_v26 = vmul.f32 0.044715, %v2108_v42  ;;  %v2103_v17 = vpop.f32.mrf.mxu3 }
0x105d   :  { %v2104_v22 = vadd.f32 %v2461_v39, %v2103_v17 }
0x105e   :  { %v2112_v43 = vadd.f32 %v2110_v26, %v2081_v40 }
0x105f   :  { %v2107_v44 = vmul.f32 %v2104_v22, %v2104_v22 }
0x1060   :  { %v2114_v30 = vmul.f32 0.7978846, %v2112_v43 }
0x1061   :  { %v2109_v46 = vmul.f32 %v2107_v44, %v2104_v22 }
0x1062   :  { %2551 = vtanh.f32 %v2114_v30  ;;  %v2250_v30 = vld [vmem:[#allocation17] sm:$0x1] }
0x1063   :  { %v2111_v54 = vmul.f32 0.044715, %v2109_v46 }
0x1065   :  { %v2113_v21 = vadd.f32 %v2111_v54, %v2104_v22 }
0x1067   :  { %v2115_v14 = vmul.f32 0.7978846, %v2113_v21 }
0x1068   :  { %v2552_v55 = vpop.eup %2551 }
0x1069   :  { %2553 = vtanh.f32 %v2115_v14  ;;  %v2118_v56 = vadd.f32 1.0, %v2552_v55 }
0x106b   :  { %v2120_v57 = vmul.f32 0.5, %v2118_v56 }
0x106d   :  { %v2122_v58 = vmul.f32 %v2120_v57, %v2081_v40  ;;  %v2464_v40 = vld [vmem:[#allocation15] ss:$0 sm:$0xff] }
0x106f   :  { %v2554_v59 = vpop.eup %2553  ;;  %2157 = vmatmul.f32.vlgmr.msrb.gmra.mxu0 %v2122_v58 }
0x1070   :  { %v2119_v60 = vadd.f32 1.0, %v2554_v59 }
0x1072   :  { %v2121_v62 = vmul.f32 0.5, %v2119_v60 }
0x1074   :  { %v2123_v63 = vmul.f32 %v2121_v62, %v2104_v22 }
0x1076   :  { %2177 = vmatmul.f32.vlgmr.msrb.gmra.mxu1 %v2123_v63 }
0x10ec   :  { %v2158_v1 = vpop.f32.mrf.mxu0 }
0x10ed   :  { %v2181_v2 = vadd.f32 %v2158_v1, %v3526_v48 }
0x10ef   :  { %v2188_v3 = vadd.f32 %v2462_v0, %v2181_v2 }
0x10f1   :  { %v2192_v4 = vsel %vm317_vm1, %v2188_v3, 0.0 }
0x10f2   :  { %2193 = vadd.xlane.f32.xlu1 %v2192_v4 }
0x10f3   :  { %v2178_v49 = vpop.f32.mrf.mxu1 }
0x10f4   :  { %v2182_v5 = vadd.f32 %v2178_v49, %v3531_v20  ;;  %v2249_v20 = vld [vmem:[%s3640_s17 + $0x18] sm:$0xff]  ;;  %s2833_s17 = smov [#allocation18]  }
0x10f5   :  { %2266 = vmatpush.msrb.mxu2 %v2249_v20  ;;  %2289 = vmatpush.msrb.mxu3 %v2249_v20  ;;  %s2303_s9 = sshll.u32 %s2833_s17, 4  ;;  %s2304_s9 = int_to_ptr.vmem [resolvable:$true] %s2303_s9 }
0x10f6   :  { %v2189_v6 = vadd.f32 %v2462_v0, %v2182_v5 }
0x10f7   :  { %2267 = vmatpush.msrb.mxu2 %v2248_v13  ;;  %2290 = vmatpush.msrb.mxu3 %v2248_v13 }
0x10f8   :  { %v2195_v7 = vsel %vm317_vm1, %v2189_v6, 0.0 }
0x10f9   :  { %2196 = vadd.xlane.f32.xlu0 %v2195_v7  ;;  %2268 = vmatpush.msrb.mxu2 %v2247_v15 }
0x10fa   :  { %2291 = vmatpush.msrb.mxu3 %v2247_v15 }
0x10fb   :  { %2269 = vmatpush.msrb.mxu2 %v2246_v18 }
0x10fc   :  { %2292 = vmatpush.msrb.mxu3 %v2246_v18 }
0x1165   :  { %v2194_v8 = vpop.xlane.xlu1 %2193 }
0x1166   :  { %v2198_v50 = vmul.f32 %v2194_v8, %v3099_v61 }
0x1168   :  { %v2200_v9 = vsub.f32 %v2188_v3, %v2198_v50 }
0x116a   :  { %v2202_v45 = vmul.f32 %v2200_v9, %v2200_v9 }
0x116c   :  { %v2197_v10 = vpop.xlane.xlu0 %2196  ;;  %v2204_v51 = vsel %vm317_vm1, %v2202_v45, 0.0 }
0x116d   :  { %v2199_v48 = vmul.f32 %v2197_v10, %v3099_v61  ;;  %2205 = vadd.xlane.f32.xlu2 %v2204_v51 }
0x116f   :  { %v2201_v11 = vsub.f32 %v2189_v6, %v2199_v48 }
0x1171   :  { %v2203_v53 = vmul.f32 %v2201_v11, %v2201_v11 }
0x1173   :  { %v2207_v12 = vsel %vm317_vm1, %v2203_v53, 0.0 }
0x1174   :  { %2208 = vadd.xlane.f32.xlu1 %v2207_v12 }
0x11e0   :  { %v2206_v19 = vpop.xlane.xlu2 %2205 }
0x11e1   :  { %v2210_v47 = vmul.f32 %v2206_v19, %v3099_v61 }
0x11e3   :  { %v2212_v23 = vadd.f32 1e-06, %v2210_v47 }
0x11e5   :  { %2555 = vrsqrt.f32 %v2212_v23  ;;  %vm2220_vm5 = vweird.f32 %v2212_v23 }
0x11e7   :  { %v2209_v24 = vpop.xlane.xlu1 %2208 }
0x11e8   :  { %v2211_v25 = vmul.f32 %v2209_v24, %v3099_v61 }
0x11ea   :  { %v2213_v27 = vadd.f32 1e-06, %v2211_v25 }
0x11eb   :  { %v2556_v28 = vpop.eup %2555 }
0x11ec   :  { %v2215_v29 = vmul.f32 %v2556_v28, %v2212_v23  ;;  %2557 = vrsqrt.f32 %v2213_v27  ;;  %vm2221_vm1 = vweird.f32 %v2556_v28  ;;  %vm2230_vm9 = vweird.f32 %v2213_v27 }
0x11ed   :  { %vm2222_vm6 = vmor %vm2220_vm5, %vm2221_vm1 }
0x11ee   :  { %v2216_v31 = vmul.f32 %v2556_v28, %v2215_v29 }
0x11f0   :  { %v2217_v32 = vmul.f32 0.5, %v2216_v31 }
0x11f2   :  { %v2558_v33 = vpop.eup %2557  ;;  %v2218_v52 = vsub.f32 1.5, %v2217_v32 }
0x11f3   :  { %v2225_v34 = vmul.f32 %v2558_v33, %v2213_v27  ;;  %vm2231_vm8 = vweird.f32 %v2558_v33 }
0x11f4   :  { %v2219_v35 = vmul.f32 %v2556_v28, %v2218_v52  ;;  %vm2232_vm0 = vmor %vm2230_vm9, %vm2231_vm8 }
0x11f5   :  { %v2226_v37 = vmul.f32 %v2558_v33, %v2225_v34 }
0x11f6   :  { %v2223_v38 = vsel %vm2222_vm6, %v2556_v28, %v2219_v35 }
0x11f7   :  { %v2234_v39 = vmul.f32 %v2223_v38, %v2200_v9  ;;  %v2227_v16 = vmul.f32 0.5, %v2226_v37 }
0x11f9   :  { %v2239_v61 = vmul.f32 %v2463_v36, %v2234_v39  ;;  %v2228_v41 = vsub.f32 1.5, %v2227_v16 }
0x11fb   :  { %v2229_v42 = vmul.f32 %v2558_v33, %v2228_v41  ;;  %v2244_v26 = vadd.f32 %v2464_v40, %v2239_v61 }
0x11fd   :  { %v2233_v17 = vsel %vm2232_vm0, %v2558_v33, %v2229_v42  ;;  %2422 = vmatmul.msk.f32.vlgmr.msrb.gmra.mxu2 %vm387_vm7, %v2244_v26 }
0x11fe   :  { %v2235_v22 = vmul.f32 %v2233_v17, %v2201_v11 }
0x1200   :  { %v2240_v43 = vmul.f32 %v2463_v36, %v2235_v22 }
0x1202   :  { %v2245_v44 = vadd.f32 %v2464_v40, %v2240_v43 }
0x1204   :  { %2423 = vmatmul.msk.f32.vlgmr.msrb.gmra.mxu3 %vm387_vm7, %v2245_v44 }
0x1280   :  { %v2271_v46 = vpop.f32.mrf.mxu2 }
0x1281   :  { %v2272_v54 = vadd.f32 %v2271_v46, %v2250_v30 }
0x1283   :  { %2297 = vst [vmem:[#allocation18] sm:$0x1] %v2272_v54 }
0x1287   :  { %v2294_v21 = vpop.f32.mrf.mxu3 }
0x1288   :  { %v2295_v14 = vadd.f32 %v2294_v21, %v2250_v30 }
0x128a   :  { %2298 = vst [vmem:[#allocation18 + $0x1] sm:$0x1] %v2295_v14 }
0x128b   :  { %2311 = dma.vmem_to_hbm [thread:$0]  %s2304_s9, 32, %s2306_s1, [#allocation5], %s2812_s22, %s2812_s22, %s2813_s2  }
0x128c   :  { %2809 = dma.done.wait [#allocation5], 32  }
0x128d   :  { %2810 = vsyncadd [#allocation5], 4294967264 }
0x128e   :  { %2316 = vsyncpa [#allocation4], 1 }
0x128f   :  { %2317 = vsyncpa [#allocation7], 1 }
0x1290   :  { %2318 = vsyncpa [#allocation10], 1 }
0x1291   :  { %2319 = vsyncpa [#allocation13], 1 }
0x1292   :  { %2320 = vsyncpa [#allocation16], 1 }
0x1293   :  { %2321 = vsyncpa [#allocation5], 1 }

</bundles_post_ra>
